<compile_context>
chip_gen: v7x
topology: tpu7x:2x2x1
jax: 0.10.0
libtpu: 0.0.40
codegen_flags: <defaults>
</compile_context>

<pallas_src>
import functools

import jax
import jax.numpy as jnp
import numpy as np
from jax.experimental import pallas as pl
from jax.experimental.pallas import tpu as pltpu


def _round_up(n, m):
    return ((n + m - 1) // m) * m


def _pick_tile_b(batch, cap=8):
    # Largest divisor of `batch` (<= cap) that still leaves >= 2 batch tiles so
    # the "parallel" grid axis can shard across both v7x TensorCores; falls
    # back to a single tile only when batch == 1.
    divisors = [d for d in range(1, batch + 1) if batch % d == 0 and d <= cap]
    two_plus = [d for d in divisors if batch // d >= 2]
    return max(two_plus) if two_plus else max(divisors)


def _pick_rows_per_chunk(h_out, tile_b, w_out, f_pad, budget_bytes=2 * 1024 * 1024):
    # Largest divisor of H whose f32 pre-activation chunk
    # [tile_b * rows * W, F_PAD] stays under a small VMEM budget (sized for the
    # smallest-VMEM generation, v7x at 64 MiB/TC, with lots of headroom).
    best = 1
    for d in range(1, h_out + 1):
        if h_out % d == 0 and tile_b * d * w_out * f_pad * 4 <= budget_bytes:
            best = d
    return best


# ---------------------------------------------------------------------------
# Fused kernel: in-kernel im2col (9 shifted matmuls) + ReLU + global-average-
# pool + feature_reducer (Linear+ReLU, Dropout=eval id) + classifier.
# ---------------------------------------------------------------------------
def _rcnn_fused_kernel(x_ref, wc_ref, bc_ref, w1_ref, b1_ref, w2_ref, b2_ref,
                       feat_ref, score_ref, *, h_out, w_out, rows_per_chunk,
                       inv_p):
    # x_ref    : [TILE_B, H+2, W+2, C]   bf16  (zero-padded NHWC image)
    # wc_ref   : [9, C, F_PAD]           bf16  (3x3 conv taps as 9 [C,F] mats)
    # bc_ref   : [1, F_PAD]              f32
    # w1_ref   : [F_PAD, HIDDEN]         bf16
    # b1_ref   : [1, HIDDEN]             f32
    # w2_ref   : [HIDDEN, N_PAD]         bf16
    # b2_ref   : [1, N_PAD]              f32
    # feat_ref : [1, TILE_B, HIDDEN]     f32 out
    # score_ref: [1, TILE_B, N_PAD]      f32 out
    tile_b = x_ref.shape[0]
    c_in = x_ref.shape[3]
    f_pad = wc_ref.shape[2]

    n_chunks = h_out // rows_per_chunk
    m = tile_b * rows_per_chunk * w_out

    pooled_sum = jnp.zeros((tile_b, f_pad), jnp.float32)

    # Static row-chunk loop (small trip count at these shapes; see TODO above).
    for ci in range(n_chunks):
        r0 = ci * rows_per_chunk
        # Pre-activation conv output for this chunk, f32 accumulation.
        y = jnp.zeros((m, f_pad), jnp.float32)
        for dh in range(3):
            for dw in range(3):
                # Shifted window of the padded image: the im2col duplication
                # happens VMEM->vreg here, never HBM->VMEM.
                tap = x_ref[:, r0 + dh:r0 + dh + rows_per_chunk,
                            dw:dw + w_out, :]                 # [tb, rc, W, C]
                tap2d = tap.reshape(m, c_in)                  # leading-dim merge
                y = y + jnp.dot(tap2d, wc_ref[dh * 3 + dw],
                                preferred_element_type=jnp.float32)
        y = jnp.maximum(y + bc_ref[...], 0.0)                 # bias + ReLU (f32)
        # Partial global-average-pool: reduce this chunk's spatial positions.
        pooled_sum = pooled_sum + jnp.sum(
            y.reshape(tile_b, rows_per_chunk * w_out, f_pad), axis=1)

    pooled = pooled_sum * inv_p                               # mean over H*W
    # feature_reducer: Linear -> ReLU.  Dropout(0.5): identity (eval mode).
    h = jnp.maximum(
        jnp.dot(pooled.astype(jnp.bfloat16), w1_ref[...],
                preferred_element_type=jnp.float32) + b1_ref[...], 0.0)
    feat_ref[0] = h
    # classifier: Linear(512 -> num_classes+1), lane-padded output columns.
    score_ref[0] = (jnp.dot(h.astype(jnp.bfloat16), w2_ref[...],
                            preferred_element_type=jnp.float32) + b2_ref[...])


# ---------------------------------------------------------------------------
# Parameter init (lane-padded, bf16 matmul operands) and forward wrapper.
# ---------------------------------------------------------------------------
def init_params(key, in_ch, feature_dim, hidden, num_classes):
    k = jax.random.split(key, 6)
    f_pad = _round_up(feature_dim, 128)   # use 256 alignment at resnet scale (v6e/v7x MXU)
    n_out = num_classes + 1
    n_pad = _round_up(n_out, 128)
    assert hidden % 128 == 0

    wc = jax.random.normal(k[0], (3, 3, in_ch, feature_dim), jnp.float32) / np.sqrt(9 * in_ch)
    bc = jax.random.normal(k[1], (1, feature_dim), jnp.float32) * 0.01
    w1 = jax.random.normal(k[2], (feature_dim, hidden), jnp.float32) / np.sqrt(feature_dim)
    b1 = jax.random.normal(k[3], (1, hidden), jnp.float32) * 0.01
    w2 = jax.random.normal(k[4], (hidden, n_out), jnp.float32) / np.sqrt(hidden)
    b2 = jax.random.normal(k[5], (1, n_out), jnp.float32) * 0.01

    def pad_last(a, target):
        return jnp.pad(a, [(0, 0)] * (a.ndim - 1) + [(0, target - a.shape[-1])])

    return {
        # Conv taps reshaped to [9, C, F_PAD]; tap index = dh*3 + dw.
        "wc": pad_last(wc, f_pad).reshape(9, in_ch, f_pad).astype(jnp.bfloat16),
        "bc": pad_last(bc, f_pad),
        "w1": jnp.pad(w1, ((0, f_pad - feature_dim), (0, 0))).astype(jnp.bfloat16),
        "b1": b1,
        "w2": pad_last(w2, n_pad).astype(jnp.bfloat16),
        "b2": pad_last(b2, n_pad),
    }


def rcnn_forward(params, x, num_classes):
    B, C, H, W = x.shape
    n_out = num_classes + 1

    wc, bc = params["wc"], params["bc"]
    w1, b1 = params["w1"], params["b1"]
    w2, b2 = params["w2"], params["b2"]
    f_pad = wc.shape[-1]
    hidden = w1.shape[1]
    n_pad = w2.shape[1]

    # Only XLA-side prep: NHWC transpose, zero-pad H/W by 1 (SAME 3x3), bf16
    # cast.  ~1x image bytes of HBM traffic; no im2col slab, no K padding.
    x_pad = jnp.pad(jnp.transpose(x, (0, 2, 3, 1)),
                    ((0, 0), (1, 1), (1, 1), (0, 0))).astype(jnp.bfloat16)

    tile_b = _pick_tile_b(B)
    nb = B // tile_b
    rpc = _pick_rows_per_chunk(H, tile_b, W, f_pad)

    kernel = functools.partial(_rcnn_fused_kernel, h_out=H, w_out=W,
                               rows_per_chunk=rpc, inv_p=1.0 / (H * W))

    feat, scores_pad = pl.pallas_call(
        kernel,
        out_shape=(
            # [nb, tile_b, ...] so the block's last two dims equal full array
            # dims (keeps small batch tiles legal and stores lane-dense).
            jax.ShapeDtypeStruct((nb, tile_b, hidden), jnp.float32),
            jax.ShapeDtypeStruct((nb, tile_b, n_pad), jnp.float32),
        ),
        grid_spec=pltpu.PrefetchScalarGridSpec(
            num_scalar_prefetch=0,
            grid=(nb,),
            in_specs=[
                # Whole padded image per batch tile; DMA of tile b+1 overlaps
                # the conv of tile b via the BlockSpec pipeline.
                pl.BlockSpec((tile_b, H + 2, W + 2, C), lambda b: (b, 0, 0, 0)),
                pl.BlockSpec((9, C, f_pad), lambda b: (0, 0, 0)),   # resident
                pl.BlockSpec((1, f_pad), lambda b: (0, 0)),
                pl.BlockSpec((f_pad, hidden), lambda b: (0, 0)),    # resident
                pl.BlockSpec((1, hidden), lambda b: (0, 0)),
                pl.BlockSpec((hidden, n_pad), lambda b: (0, 0)),    # resident
                pl.BlockSpec((1, n_pad), lambda b: (0, 0)),
            ],
            out_specs=(
                pl.BlockSpec((1, tile_b, hidden), lambda b: (b, 0, 0)),
                pl.BlockSpec((1, tile_b, n_pad), lambda b: (b, 0, 0)),
            ),
        ),
        compiler_params=pltpu.CompilerParams(
            # Batch-tile axis shards across TensorCores on v7x.
            dimension_semantics=("parallel",),
            # Headroom for scaled-up shapes; stays under v7x's 64 MiB physical.
            vmem_limit_bytes=48 * 1024 * 1024,
        ),
    )(x_pad, wc, bc, w1, b1, w2, b2)

    # torch.flatten(x, 1): pooled is already [B, feature_dim] after the global
    # average pool, so the flatten is a no-op.  Slice off classifier padding.
    return feat.reshape(B, hidden), scores_pad.reshape(B, n_pad)[:, :n_out]


rcnn_forward_jit = jax.jit(rcnn_forward, static_argnums=(2,))


def rcnn_forward_ref(params, x, num_classes, feature_dim):
    # Pure-JAX f32 reference consuming the same bf16-rounded image/params.
    n_out = num_classes + 1
    B, C, H, W = x.shape
    x_pad = jnp.pad(jnp.transpose(x, (0, 2, 3, 1)),
                    ((0, 0), (1, 1), (1, 1), (0, 0)))
    x_pad = x_pad.astype(jnp.bfloat16).astype(jnp.float32)
    wc = params["wc"].astype(jnp.float32).reshape(3, 3, C, -1)[..., :feature_dim]
    y = jnp.zeros((B, H, W, feature_dim), jnp.float32)
    for dh in range(3):
        for dw in range(3):
            y = y + jnp.einsum("bhwc,cf->bhwf",
                               x_pad[:, dh:dh + H, dw:dw + W, :], wc[dh, dw])
    y = jnp.maximum(y + params["bc"][:, :feature_dim], 0.0)
    pooled = jnp.mean(y.reshape(B, H * W, feature_dim), axis=1)
    w1 = params["w1"].astype(jnp.float32)[:feature_dim, :]
    h = jnp.maximum(pooled @ w1 + params["b1"], 0.0)
    w2 = params["w2"].astype(jnp.float32)[:, :n_out]
    scores = h @ w2 + params["b2"][:, :n_out]
    return h, scores


if __name__ == "__main__":
    B, C, H, W = 2, 4, 16, 16
    feature_dim = 64          # stand-in for resnet50's 2048
    hidden = 512              # fixed by the module
    num_classes = 10          # classifier outputs num_classes + 1 = 11

    key = jax.random.PRNGKey(0)
    k_x, k_p = jax.random.split(key)
    x = jax.random.normal(k_x, (B, C, H, W), jnp.float32)
    params = init_params(k_p, C, feature_dim, hidden, num_classes)

    features, scores = rcnn_forward_jit(params, x, num_classes)
    jax.block_until_ready((features, scores))

    assert features.shape == (B, hidden), features.shape
    assert scores.shape == (B, num_classes + 1), scores.shape
    assert features.dtype == jnp.float32 and scores.dtype == jnp.float32

    # Numerical check vs pure-JAX reference (kernel uses bf16 matmul operands
    # with f32 accumulation -> modest tolerance).
    f_ref, s_ref = rcnn_forward_ref(params, x, num_classes, feature_dim)
    np.testing.assert_allclose(np.asarray(features), np.asarray(f_ref),
                               rtol=2e-2, atol=2e-2)
    np.testing.assert_allclose(np.asarray(scores), np.asarray(s_ref),
                               rtol=2e-2, atol=2e-2)

    print("KERNEL_OK")
</pallas_src>

<mosaic_0001>
module attributes {stable_mosaic.version = 11 : i64} {
  func.func @_rcnn_fused_kernel(%arg0: i32, %arg1: memref<1x18x18x4xbf16, #tpu.memory_space<vmem>>, %arg2: memref<9x4x128xbf16, #tpu.memory_space<vmem>>, %arg3: memref<1x128xf32, #tpu.memory_space<vmem>>, %arg4: memref<128x512xbf16, #tpu.memory_space<vmem>>, %arg5: memref<1x512xf32, #tpu.memory_space<vmem>>, %arg6: memref<512x128xbf16, #tpu.memory_space<vmem>>, %arg7: memref<1x128xf32, #tpu.memory_space<vmem>>, %arg8: memref<1x1x512xf32, #tpu.memory_space<vmem>>, %arg9: memref<1x1x128xf32, #tpu.memory_space<vmem>>) attributes {dimension_semantics = [#tpu.dimension_semantics<parallel>], iteration_bounds = array<i64: 2>, scalar_prefetch = 0 : i64, scratch_operands = 0 : i64, tpu.core_type = #tpu.core_type<tc>, window_params = [{transform_indices = @transform_0, window_bounds = array<i64: 1, 18, 18, 4>}, {pipeline_mode = #tpu.pipeline_mode<synchronous>, transform_indices = @transform_1, window_bounds = array<i64: 9, 4, 128>}, {pipeline_mode = #tpu.pipeline_mode<synchronous>, transform_indices = @transform_2, window_bounds = array<i64: 1, 128>}, {pipeline_mode = #tpu.pipeline_mode<synchronous>, transform_indices = @transform_3, window_bounds = array<i64: 128, 512>}, {pipeline_mode = #tpu.pipeline_mode<synchronous>, transform_indices = @transform_4, window_bounds = array<i64: 1, 512>}, {pipeline_mode = #tpu.pipeline_mode<synchronous>, transform_indices = @transform_5, window_bounds = array<i64: 512, 128>}, {pipeline_mode = #tpu.pipeline_mode<synchronous>, transform_indices = @transform_6, window_bounds = array<i64: 1, 128>}, {transform_indices = @transform_7, window_bounds = array<i64: 1, 1, 512>}, {transform_indices = @transform_8, window_bounds = array<i64: 1, 1, 128>}]} {
    %cst = arith.constant 0.000000e+00 : f32
    %0 = vector.broadcast %cst : f32 to vector<1x128xf32>
    %cst_0 = arith.constant 0.000000e+00 : f32
    %1 = vector.broadcast %cst_0 : f32 to vector<256x128xf32>
    %c0 = arith.constant 0 : index
    %c0_1 = arith.constant 0 : index
    %c0_2 = arith.constant 0 : index
    %c0_3 = arith.constant 0 : index
    %2 = vector.load %arg1[%c0, %c0_1, %c0_2, %c0_3] : memref<1x18x18x4xbf16, #tpu.memory_space<vmem>>, vector<1x16x16x4xbf16>
    %3 = vector.shape_cast %2 : vector<1x16x16x4xbf16> to vector<256x4xbf16>
    %c0_4 = arith.constant 0 : index
    %c0_5 = arith.constant 0 : index
    %c0_6 = arith.constant 0 : index
    %4 = vector.load %arg2[%c0_4, %c0_5, %c0_6] : memref<9x4x128xbf16, #tpu.memory_space<vmem>>, vector<1x4x128xbf16>
    %5 = vector.shape_cast %4 : vector<1x4x128xbf16> to vector<4x128xbf16>
    %cst_7 = arith.constant dense<0.000000e+00> : vector<256x128xf32>
    %6 = tpu.matmul %3, %5, %cst_7 {dimension_numbers = #tpu.dot_dimension_numbers<[1], [0], [0], [1], [0, 0, 1, 1], [], []>} : vector<256x4xbf16>, vector<4x128xbf16>, vector<256x128xf32> -> vector<256x128xf32>
    %7 = arith.addf %1, %6 : vector<256x128xf32>
    %c0_8 = arith.constant 0 : index
    %c0_9 = arith.constant 0 : index
    %c1 = arith.constant 1 : index
    %c0_10 = arith.constant 0 : index
    %8 = vector.load %arg1[%c0_8, %c0_9, %c1, %c0_10] : memref<1x18x18x4xbf16, #tpu.memory_space<vmem>>, vector<1x16x16x4xbf16>
    %9 = vector.shape_cast %8 : vector<1x16x16x4xbf16> to vector<256x4xbf16>
    %c1_11 = arith.constant 1 : index
    %c0_12 = arith.constant 0 : index
    %c0_13 = arith.constant 0 : index
    %10 = vector.load %arg2[%c1_11, %c0_12, %c0_13] : memref<9x4x128xbf16, #tpu.memory_space<vmem>>, vector<1x4x128xbf16>
    %11 = vector.shape_cast %10 : vector<1x4x128xbf16> to vector<4x128xbf16>
    %cst_14 = arith.constant dense<0.000000e+00> : vector<256x128xf32>
    %12 = tpu.matmul %9, %11, %cst_14 {dimension_numbers = #tpu.dot_dimension_numbers<[1], [0], [0], [1], [0, 0, 1, 1], [], []>} : vector<256x4xbf16>, vector<4x128xbf16>, vector<256x128xf32> -> vector<256x128xf32>
    %13 = arith.addf %7, %12 : vector<256x128xf32>
    %c0_15 = arith.constant 0 : index
    %c0_16 = arith.constant 0 : index
    %c2 = arith.constant 2 : index
    %c0_17 = arith.constant 0 : index
    %14 = vector.load %arg1[%c0_15, %c0_16, %c2, %c0_17] : memref<1x18x18x4xbf16, #tpu.memory_space<vmem>>, vector<1x16x16x4xbf16>
    %15 = vector.shape_cast %14 : vector<1x16x16x4xbf16> to vector<256x4xbf16>
    %c2_18 = arith.constant 2 : index
    %c0_19 = arith.constant 0 : index
    %c0_20 = arith.constant 0 : index
    %16 = vector.load %arg2[%c2_18, %c0_19, %c0_20] : memref<9x4x128xbf16, #tpu.memory_space<vmem>>, vector<1x4x128xbf16>
    %17 = vector.shape_cast %16 : vector<1x4x128xbf16> to vector<4x128xbf16>
    %cst_21 = arith.constant dense<0.000000e+00> : vector<256x128xf32>
    %18 = tpu.matmul %15, %17, %cst_21 {dimension_numbers = #tpu.dot_dimension_numbers<[1], [0], [0], [1], [0, 0, 1, 1], [], []>} : vector<256x4xbf16>, vector<4x128xbf16>, vector<256x128xf32> -> vector<256x128xf32>
    %19 = arith.addf %13, %18 : vector<256x128xf32>
    %c0_22 = arith.constant 0 : index
    %c1_23 = arith.constant 1 : index
    %c0_24 = arith.constant 0 : index
    %c0_25 = arith.constant 0 : index
    %20 = vector.load %arg1[%c0_22, %c1_23, %c0_24, %c0_25] : memref<1x18x18x4xbf16, #tpu.memory_space<vmem>>, vector<1x16x16x4xbf16>
    %21 = vector.shape_cast %20 : vector<1x16x16x4xbf16> to vector<256x4xbf16>
    %c3 = arith.constant 3 : index
    %c0_26 = arith.constant 0 : index
    %c0_27 = arith.constant 0 : index
    %22 = vector.load %arg2[%c3, %c0_26, %c0_27] : memref<9x4x128xbf16, #tpu.memory_space<vmem>>, vector<1x4x128xbf16>
    %23 = vector.shape_cast %22 : vector<1x4x128xbf16> to vector<4x128xbf16>
    %cst_28 = arith.constant dense<0.000000e+00> : vector<256x128xf32>
    %24 = tpu.matmul %21, %23, %cst_28 {dimension_numbers = #tpu.dot_dimension_numbers<[1], [0], [0], [1], [0, 0, 1, 1], [], []>} : vector<256x4xbf16>, vector<4x128xbf16>, vector<256x128xf32> -> vector<256x128xf32>
    %25 = arith.addf %19, %24 : vector<256x128xf32>
    %c0_29 = arith.constant 0 : index
    %c1_30 = arith.constant 1 : index
    %c1_31 = arith.constant 1 : index
    %c0_32 = arith.constant 0 : index
    %26 = vector.load %arg1[%c0_29, %c1_30, %c1_31, %c0_32] : memref<1x18x18x4xbf16, #tpu.memory_space<vmem>>, vector<1x16x16x4xbf16>
    %27 = vector.shape_cast %26 : vector<1x16x16x4xbf16> to vector<256x4xbf16>
    %c4 = arith.constant 4 : index
    %c0_33 = arith.constant 0 : index
    %c0_34 = arith.constant 0 : index
    %28 = vector.load %arg2[%c4, %c0_33, %c0_34] : memref<9x4x128xbf16, #tpu.memory_space<vmem>>, vector<1x4x128xbf16>
    %29 = vector.shape_cast %28 : vector<1x4x128xbf16> to vector<4x128xbf16>
    %cst_35 = arith.constant dense<0.000000e+00> : vector<256x128xf32>
    %30 = tpu.matmul %27, %29, %cst_35 {dimension_numbers = #tpu.dot_dimension_numbers<[1], [0], [0], [1], [0, 0, 1, 1], [], []>} : vector<256x4xbf16>, vector<4x128xbf16>, vector<256x128xf32> -> vector<256x128xf32>
    %31 = arith.addf %25, %30 : vector<256x128xf32>
    %c0_36 = arith.constant 0 : index
    %c1_37 = arith.constant 1 : index
    %c2_38 = arith.constant 2 : index
    %c0_39 = arith.constant 0 : index
    %32 = vector.load %arg1[%c0_36, %c1_37, %c2_38, %c0_39] : memref<1x18x18x4xbf16, #tpu.memory_space<vmem>>, vector<1x16x16x4xbf16>
    %33 = vector.shape_cast %32 : vector<1x16x16x4xbf16> to vector<256x4xbf16>
    %c5 = arith.constant 5 : index
    %c0_40 = arith.constant 0 : index
    %c0_41 = arith.constant 0 : index
    %34 = vector.load %arg2[%c5, %c0_40, %c0_41] : memref<9x4x128xbf16, #tpu.memory_space<vmem>>, vector<1x4x128xbf16>
    %35 = vector.shape_cast %34 : vector<1x4x128xbf16> to vector<4x128xbf16>
    %cst_42 = arith.constant dense<0.000000e+00> : vector<256x128xf32>
    %36 = tpu.matmul %33, %35, %cst_42 {dimension_numbers = #tpu.dot_dimension_numbers<[1], [0], [0], [1], [0, 0, 1, 1], [], []>} : vector<256x4xbf16>, vector<4x128xbf16>, vector<256x128xf32> -> vector<256x128xf32>
    %37 = arith.addf %31, %36 : vector<256x128xf32>
    %c0_43 = arith.constant 0 : index
    %c2_44 = arith.constant 2 : index
    %c0_45 = arith.constant 0 : index
    %c0_46 = arith.constant 0 : index
    %38 = vector.load %arg1[%c0_43, %c2_44, %c0_45, %c0_46] : memref<1x18x18x4xbf16, #tpu.memory_space<vmem>>, vector<1x16x16x4xbf16>
    %39 = vector.shape_cast %38 : vector<1x16x16x4xbf16> to vector<256x4xbf16>
    %c6 = arith.constant 6 : index
    %c0_47 = arith.constant 0 : index
    %c0_48 = arith.constant 0 : index
    %40 = vector.load %arg2[%c6, %c0_47, %c0_48] : memref<9x4x128xbf16, #tpu.memory_space<vmem>>, vector<1x4x128xbf16>
    %41 = vector.shape_cast %40 : vector<1x4x128xbf16> to vector<4x128xbf16>
    %cst_49 = arith.constant dense<0.000000e+00> : vector<256x128xf32>
    %42 = tpu.matmul %39, %41, %cst_49 {dimension_numbers = #tpu.dot_dimension_numbers<[1], [0], [0], [1], [0, 0, 1, 1], [], []>} : vector<256x4xbf16>, vector<4x128xbf16>, vector<256x128xf32> -> vector<256x128xf32>
    %43 = arith.addf %37, %42 : vector<256x128xf32>
    %c0_50 = arith.constant 0 : index
    %c2_51 = arith.constant 2 : index
    %c1_52 = arith.constant 1 : index
    %c0_53 = arith.constant 0 : index
    %44 = vector.load %arg1[%c0_50, %c2_51, %c1_52, %c0_53] : memref<1x18x18x4xbf16, #tpu.memory_space<vmem>>, vector<1x16x16x4xbf16>
    %45 = vector.shape_cast %44 : vector<1x16x16x4xbf16> to vector<256x4xbf16>
    %c7 = arith.constant 7 : index
    %c0_54 = arith.constant 0 : index
    %c0_55 = arith.constant 0 : index
    %46 = vector.load %arg2[%c7, %c0_54, %c0_55] : memref<9x4x128xbf16, #tpu.memory_space<vmem>>, vector<1x4x128xbf16>
    %47 = vector.shape_cast %46 : vector<1x4x128xbf16> to vector<4x128xbf16>
    %cst_56 = arith.constant dense<0.000000e+00> : vector<256x128xf32>
    %48 = tpu.matmul %45, %47, %cst_56 {dimension_numbers = #tpu.dot_dimension_numbers<[1], [0], [0], [1], [0, 0, 1, 1], [], []>} : vector<256x4xbf16>, vector<4x128xbf16>, vector<256x128xf32> -> vector<256x128xf32>
    %49 = arith.addf %43, %48 : vector<256x128xf32>
    %c0_57 = arith.constant 0 : index
    %c2_58 = arith.constant 2 : index
    %c2_59 = arith.constant 2 : index
    %c0_60 = arith.constant 0 : index
    %50 = vector.load %arg1[%c0_57, %c2_58, %c2_59, %c0_60] : memref<1x18x18x4xbf16, #tpu.memory_space<vmem>>, vector<1x16x16x4xbf16>
    %51 = vector.shape_cast %50 : vector<1x16x16x4xbf16> to vector<256x4xbf16>
    %c8 = arith.constant 8 : index
    %c0_61 = arith.constant 0 : index
    %c0_62 = arith.constant 0 : index
    %52 = vector.load %arg2[%c8, %c0_61, %c0_62] : memref<9x4x128xbf16, #tpu.memory_space<vmem>>, vector<1x4x128xbf16>
    %53 = vector.shape_cast %52 : vector<1x4x128xbf16> to vector<4x128xbf16>
    %cst_63 = arith.constant dense<0.000000e+00> : vector<256x128xf32>
    %54 = tpu.matmul %51, %53, %cst_63 {dimension_numbers = #tpu.dot_dimension_numbers<[1], [0], [0], [1], [0, 0, 1, 1], [], []>} : vector<256x4xbf16>, vector<4x128xbf16>, vector<256x128xf32> -> vector<256x128xf32>
    %55 = arith.addf %49, %54 : vector<256x128xf32>
    %c0_64 = arith.constant 0 : index
    %c0_65 = arith.constant 0 : index
    %56 = vector.load %arg3[%c0_64, %c0_65] : memref<1x128xf32, #tpu.memory_space<vmem>>, vector<1x128xf32>
    %57 = vector.broadcast %56 : vector<1x128xf32> to vector<256x128xf32>
    %58 = arith.addf %55, %57 : vector<256x128xf32>
    %cst_66 = arith.constant 0.000000e+00 : f32
    %59 = vector.broadcast %cst_66 : f32 to vector<256x128xf32>
    %60 = arith.maximumf %58, %59 : vector<256x128xf32>
    %61 = vector.shape_cast %60 : vector<256x128xf32> to vector<1x256x128xf32>
    %cst_67 = arith.constant dense<0.000000e+00> : vector<1x128xf32>
    %62 = vector.multi_reduction <add>, %61, %cst_67 [1] : vector<1x256x128xf32> to vector<1x128xf32>
    %63 = arith.addf %0, %62 : vector<1x128xf32>
    %cst_68 = arith.constant 3.906250e-03 : f32
    %64 = vector.broadcast %cst_68 : f32 to vector<1x128xf32>
    %65 = arith.mulf %63, %64 : vector<1x128xf32>
    %66 = arith.truncf %65 : vector<1x128xf32> to vector<1x128xbf16>
    %c0_69 = arith.constant 0 : index
    %c0_70 = arith.constant 0 : index
    %67 = vector.load %arg4[%c0_69, %c0_70] : memref<128x512xbf16, #tpu.memory_space<vmem>>, vector<128x512xbf16>
    %cst_71 = arith.constant dense<0.000000e+00> : vector<1x512xf32>
    %68 = tpu.matmul %66, %67, %cst_71 {dimension_numbers = #tpu.dot_dimension_numbers<[1], [0], [0], [1], [0, 0, 1, 1], [], []>} : vector<1x128xbf16>, vector<128x512xbf16>, vector<1x512xf32> -> vector<1x512xf32>
    %c0_72 = arith.constant 0 : index
    %c0_73 = arith.constant 0 : index
    %69 = vector.load %arg5[%c0_72, %c0_73] : memref<1x512xf32, #tpu.memory_space<vmem>>, vector<1x512xf32>
    %70 = arith.addf %68, %69 : vector<1x512xf32>
    %cst_74 = arith.constant 0.000000e+00 : f32
    %71 = vector.broadcast %cst_74 : f32 to vector<1x512xf32>
    %72 = arith.maximumf %70, %71 : vector<1x512xf32>
    %c0_75 = arith.constant 0 : index
    %c0_76 = arith.constant 0 : index
    %c0_77 = arith.constant 0 : index
    %73 = vector.load %arg8[%c0_75, %c0_76, %c0_77] : memref<1x1x512xf32, #tpu.memory_space<vmem>>, vector<1x1x512xf32>
    %74 = vector.shape_cast %73 : vector<1x1x512xf32> to vector<1x512xf32>
    %75 = vector.shape_cast %72 : vector<1x512xf32> to vector<1x1x512xf32>
    tpu.vector_store %arg8[%c0_75, %c0_76, %c0_77], %75 {strides = array<i32>} : memref<1x1x512xf32, #tpu.memory_space<vmem>>, vector<1x1x512xf32>,
    %76 = arith.truncf %72 : vector<1x512xf32> to vector<1x512xbf16>
    %c0_78 = arith.constant 0 : index
    %c0_79 = arith.constant 0 : index
    %77 = vector.load %arg6[%c0_78, %c0_79] : memref<512x128xbf16, #tpu.memory_space<vmem>>, vector<512x128xbf16>
    %cst_80 = arith.constant dense<0.000000e+00> : vector<1x128xf32>
    %78 = tpu.matmul %76, %77, %cst_80 {dimension_numbers = #tpu.dot_dimension_numbers<[1], [0], [0], [1], [0, 0, 1, 1], [], []>} : vector<1x512xbf16>, vector<512x128xbf16>, vector<1x128xf32> -> vector<1x128xf32>
    %c0_81 = arith.constant 0 : index
    %c0_82 = arith.constant 0 : index
    %79 = vector.load %arg7[%c0_81, %c0_82] : memref<1x128xf32, #tpu.memory_space<vmem>>, vector<1x128xf32>
    %80 = arith.addf %78, %79 : vector<1x128xf32>
    %c0_83 = arith.constant 0 : index
    %c0_84 = arith.constant 0 : index
    %c0_85 = arith.constant 0 : index
    %81 = vector.load %arg9[%c0_83, %c0_84, %c0_85] : memref<1x1x128xf32, #tpu.memory_space<vmem>>, vector<1x1x128xf32>
    %82 = vector.shape_cast %81 : vector<1x1x128xf32> to vector<1x128xf32>
    %83 = vector.shape_cast %80 : vector<1x128xf32> to vector<1x1x128xf32>
    tpu.vector_store %arg9[%c0_83, %c0_84, %c0_85], %83 {strides = array<i32>} : memref<1x1x128xf32, #tpu.memory_space<vmem>>, vector<1x1x128xf32>,
    return
  }
  func.func @transform_0(%arg0: i32) -> (i32, i32, i32, i32) {
    %c0_i32 = arith.constant 0 : i32
    %c0_i32_0 = arith.constant 0 : i32
    %c0_i32_1 = arith.constant 0 : i32
    %c0_i32_2 = arith.constant 0 : i32
    return %arg0, %c0_i32, %c0_i32_0, %c0_i32_1 : i32, i32, i32, i32
  }
  func.func @transform_1(%arg0: i32) -> (i32, i32, i32) {
    %c0_i32 = arith.constant 0 : i32
    %c0_i32_0 = arith.constant 0 : i32
    %c0_i32_1 = arith.constant 0 : i32
    %c0_i32_2 = arith.constant 0 : i32
    return %c0_i32, %c0_i32_0, %c0_i32_1 : i32, i32, i32
  }
  func.func @transform_2(%arg0: i32) -> (i32, i32) {
    %c0_i32 = arith.constant 0 : i32
    %c0_i32_0 = arith.constant 0 : i32
    %c0_i32_1 = arith.constant 0 : i32
    return %c0_i32, %c0_i32_0 : i32, i32
  }
  func.func @transform_3(%arg0: i32) -> (i32, i32) {
    %c0_i32 = arith.constant 0 : i32
    %c0_i32_0 = arith.constant 0 : i32
    %c0_i32_1 = arith.constant 0 : i32
    return %c0_i32, %c0_i32_0 : i32, i32
  }
  func.func @transform_4(%arg0: i32) -> (i32, i32) {
    %c0_i32 = arith.constant 0 : i32
    %c0_i32_0 = arith.constant 0 : i32
    %c0_i32_1 = arith.constant 0 : i32
    return %c0_i32, %c0_i32_0 : i32, i32
  }
  func.func @transform_5(%arg0: i32) -> (i32, i32) {
    %c0_i32 = arith.constant 0 : i32
    %c0_i32_0 = arith.constant 0 : i32
    %c0_i32_1 = arith.constant 0 : i32
    return %c0_i32, %c0_i32_0 : i32, i32
  }
  func.func @transform_6(%arg0: i32) -> (i32, i32) {
    %c0_i32 = arith.constant 0 : i32
    %c0_i32_0 = arith.constant 0 : i32
    %c0_i32_1 = arith.constant 0 : i32
    return %c0_i32, %c0_i32_0 : i32, i32
  }
  func.func @transform_7(%arg0: i32) -> (i32, i32, i32) {
    %c0_i32 = arith.constant 0 : i32
    %c0_i32_0 = arith.constant 0 : i32
    %c0_i32_1 = arith.constant 0 : i32
    return %arg0, %c0_i32, %c0_i32_0 : i32, i32, i32
  }
  func.func @transform_8(%arg0: i32) -> (i32, i32, i32) {
    %c0_i32 = arith.constant 0 : i32
    %c0_i32_0 = arith.constant 0 : i32
    %c0_i32_1 = arith.constant 0 : i32
    return %arg0, %c0_i32, %c0_i32_0 : i32, i32, i32
  }
}

</mosaic_0001>

<bundles_post_ra>
// kernel: rcnn_forward.1
= control target key start
LH: loop header
LB: loop body
LE: loop exit
PB: predicated region body
PF: predicated region fallthrough
CT: control target
= control target key end

     0   :  { %14 = vsyncpa [#allocation3], 0  ;;  %s9571_s0 = inlined_call_operand.vmem [shape: bf16[2,18,18,4], index: 0, kind: input, shape index: {}]   ;;  %s9572_s1 = inlined_call_operand.vmem [shape: bf16[9,4,128], index: 1, kind: input, shape index: {}]   ;;  %s9573_s2 = inlined_call_operand.vmem [shape: f32[1,128], index: 2, kind: input, shape index: {}]   ;;  %s9574_s3 = inlined_call_operand.vmem [shape: bf16[128,512], index: 3, kind: input, shape index: {}]   ;;  %s9575_s4 = inlined_call_operand.vmem [shape: f32[1,512], index: 4, kind: input, shape index: {}]   ;;  %s9576_s5 = inlined_call_operand.vmem [shape: bf16[512,128], index: 5, kind: input, shape index: {}]   ;;  %s9577_s6 = inlined_call_operand.vmem [shape: f32[1,128], index: 6, kind: input, shape index: {}]   ;;  %s9578_s7 = inlined_call_operand.vmem [shape: f32[2,1,512], index: 7, kind: output, shape index: {0}]   ;;  %s9579_s8 = inlined_call_operand.hbm [shape: f32[2,1,128], index: 8, kind: output, shape index: {1}]  }
   0x1   :  { %16 = vsyncpa [#allocation3 + $0x1], 0  ;;  %s7479_s27 = smov 0   ;;  %s7481_s28 = smov 0  }
   0x2   :  { %s7483_s29 = smov 0   ;;  %s7485_s30 = smov 0  }
   0x3 LB: > { %s7500_s9 = sadd.s32 4294967295, %s7429_s30   ;;  %s5760_s10 = sadd.s32 4294967294, %s7429_s30   ;;  %s7429_s30 = sphi %s7485_s30, %s9657_s30   ;;  %s7425_s29 = sphi %s7483_s29, %s9656_s29   ;;  %s7421_s28 = sphi %s7481_s28, %s9655_s28   ;;  %s7417_s27 = sphi %s7479_s27, %s9654_s27  }
   0x4   : > { %s7504_s11 = sadd.s32 1, %s7429_s30   ;;  %s207_s12 = sadd.s32 1, %s7425_s29 }
   0x5   : > { %s204_s13 = ssub.s32 %s7429_s30, %s7504_s11  ;;  %p217_p0 = scmp.ne.s32.totalorder %s7425_s29, %s7421_s28 }
   0x6   : > { %p205_p1 = scmp.eq.s32.totalorder %s204_s13, 0  ;;  %p218_p2 = scmp.eq.s32.totalorder %s7500_s9, 1 }
   0x7   : > { %p223_p3 = scmp.ne.s32.totalorder %s7421_s28, %s7417_s27  ;;  %p224_p4 = scmp.eq.s32.totalorder %s5760_s10, 1 }
   0x8   : > { %s7515_s14 = scalar_select %p205_p1, %s7425_s29, %s207_s12  }
   0x9   : > { %p7517_p5 = por %p218_p2, %p217_p0  ;;  %p7521_p6 = por %p224_p4, %p223_p3 }
   0xa   : > { %p5763_p7 = scmp.ge.s32.totalorder %s7429_s30, 1  ;;  %p268_p8 = scmp.lt.s32.totalorder %s7429_s30, 3 }
   0xc   : > { %p269_p9 = pnand %p5763_p7, %p268_p8 }
   0xe   : > { %272 = sbr.rel (%p269_p9) target bundleno = 1155 (0x483), region = 48 }
  0x15   : > { %vm850_vm0 = vcmask 1041408   ;;  %v5912_v0 = vld [vmem:[%s9572_s1 + $0x6] sm:$0x3]  ;;  %p305_p10 = scmp.lt.s32.totalorder %s7500_s9, 1  ;;  %v5993_v2 = vld [vmem:[%s9572_s1 + $0x8] sm:$0x3] }
  0x16   : > { %7134 = vmatprep.subr.msk.bf16.mxu0 %vm850_vm0, %v5912_v0  ;;  %v7533_v1 = vsel %vm850_vm0, %v5912_v0, 0  ;;  %v5766_v3 = vld [vmem:[%s9572_s1 + $0x2] sm:$0x3]  ;;  %vm801_vm1 = vcmask 31744   ;;  %vm364_vm2 = vsmask.f32 3328 }
  0x17   : > { %9598 = vst [vmem:[#allocation5_spill] sm:$0xff] %v7533_v1  ;;  %6670 = vmatpush3.bf16.msra.mxu0 %v7533_v1  ;;  %s7543_s23 = scalar_select %p305_p10, %s7500_s9, 1  ;;  %7131 = vmatprep.subr.msk.bf16.mxu1 %vm850_vm0, %v5766_v3  ;;  %v852_v4 = vsel %vm850_vm0, %v5766_v3, 0  ;;  %v6058_v6 = vld [vmem:[%s9572_s1 + $0xa] sm:$0x3]  ;;  %v2654_v8 = vsel %vm850_vm0, %v5993_v2, 0 }
  0x18   : > { %7136 = vmatprep.subr.msk.bf16.mxu0 %vm850_vm0, %v5993_v2  ;;  %6568 = vmatpush3.bf16.msra.mxu1 %v852_v4  ;;  %vm365_vm3 = vsmask.f32 7440  ;;  %v9599_v33 = vmov 0  ;;  %v7589_v38 = vsel %vm850_vm0, %v6058_v6, 0  ;;  %vm1355_vm5 = vcmask 1042432   ;;  %s303_s21 = sand.u32 1, %s7421_s28  }
  0x19   : > { %s7141_s24 = smul.u32 216, %s7543_s23  ;;  %vm7583_vm4 = vmor %vm364_vm2, %vm365_vm3  ;;  %vm1356_vm6 = vcmask 1046532   ;;  %s304_s25 = scalar_lea.vmem [#allocation2], %s303_s21 }
  0x1a   : > { %v9600_v33 = vsel %vm7583_vm4, 4294967295, %v9599_v33  ;;  %vm7998_vm7 = vmor %vm1355_vm5, %vm1356_vm6  ;;  %s5681_s26 = sshll.u32 %s304_s25, 4  ;;  %s7433_s18 = smov [#allocation2]   ;;  %s9531_s26 = int_to_ptr.vmem [resolvable:$true] %s5681_s26 }
  0x1b   : > { %s7552_s10 = scalar_lea.vmem %s9571_s0, %s7141_s24  ;;  %9601 = vst [vmem:[#allocation6_spill] sm:$0xff] %v9600_v33  ;;  %s6367_s24 = sshll.u32 %s7500_s9, 4 }
  0x1c   : > { %v7183_v5 = vld [vmem:[%s7552_s10 + $0xc] sm:$0xff]   ;;  %v7184_v7 = vld [vmem:[%s7552_s10 + $0x18] sm:$0xff]   ;;  %v7185_v9 = vld [vmem:[%s7552_s10 + $0x24] sm:$0xff]   ;;  %s9529_s17 = scalar_lea.hbm %s9579_s8, %s6367_s24  ;;  %s7367_s9 = scalar_lea.vmem %s9531_s26, 16 }
  0x1d   : > { %6671 = vmatprep.mubr.msk.bf16.mxu0 %vm801_vm1, %v7183_v5  ;;  %v7564_v10 = vld [vmem:[%s7552_s10] sm:$0xf]  ;;  %v7567_v11 = vld [vmem:[%s7552_s10 + $0x4] sm:$0xf]  ;;  %v348_v12 = vld [vmem:[%s7552_s10 + $0x8] sm:$0x1]  ;;  %p7368_p11 = scmp.ne.s32.totalorder %s9531_s26, %s7367_s9 }
  0x1e   : > { %6672 = vmatmul.mubr.msk.bf16.vlgmr.msra.gmra.mrb[0].mxu0 %vm801_vm1, %v7184_v7  ;;  %v368_v13 = vshrl.u32 %v7564_v10, 16  ;;  %v371_v14 = vshll.u32 %v7564_v10, 16  ;;  %v377_v15 = vshll.u32 %v7567_v11, 16  ;;  %v381_v16 = vshrl.u32 %v7567_v11, 16  ;;  %v7186_v18 = vld [vmem:[%s7552_s10 + $0x30] sm:$0xff]   ;;  %v7187_v24 = vld [vmem:[%s7552_s10 + $0x3c] sm:$0xff]  }
  0x1f   : > { %6704 = vmatpush3.bf16.msra.mxu0 %v2654_v8  ;;  %6675 = vmatprep.mubr.msk.bf16.mxu0 %vm801_vm1, %v7185_v9  ;;  %v387_v17 = vshll.u32 %v348_v12, 16  ;;  %v317_v23 = vld [vmem:[%s7552_s10 + $0xc] sm:$0xf]  ;;  %v318_v26 = vld [vmem:[%s7552_s10 + $0x10] sm:$0xf]  ;;  %v5799_v48 = vcombine.low %v7564_v10, %v7567_v11  ;;  %p7369_p12 = pnand %p7368_p11, %p7517_p5  ;;  %s7371_s19 = sshll.u32 %s7433_s18, 4  ;;  %s7372_s19 = int_to_ptr.vmem [resolvable:$false] %s7371_s19 }
  0x20   : > { %7137 = vmatprep.subr.msk.bf16.mxu0 %vm850_vm0, %v6058_v6  ;;  %v370_v19 = vrot.slane %v368_v13, 4  ;;  %v373_v20 = vrot.slane %v371_v14, 5  ;;  %v379_v21 = vrot.slane %v377_v15, 5  ;;  %v383_v22 = vrot.slane %v381_v16, 4  ;;  %v349_v27 = vld [vmem:[%s7552_s10 + $0x14] sm:$0x1]  ;;  %p7374_p0 = scmp.lt.s32.totalorder %s9531_s26, %s7372_s19 }
  0x21   : > { %v389_v25 = vrot.slane %v387_v17, 5  ;;  %v392_v28 = vshrl.u32 %v317_v23, 16  ;;  %v395_v31 = vshll.u32 %v317_v23, 16  ;;  %v401_v32 = vshll.u32 %v318_v26, 16  ;;  %v319_v37 = vld [vmem:[%s7552_s10 + $0x18] sm:$0xf]  ;;  %p7370_p13 = pneg %p7369_p12 }
  0x22   : > { %v374_v29 = vor.u32 %v373_v20, %v370_v19  ;;  %v384_v30 = vor.u32 %v383_v22, %v379_v21  ;;  %v405_v35 = vshrl.u32 %v318_v26, 16  ;;  %v411_v36 = vshll.u32 %v349_v27, 16  ;;  %v320_v43 = vld [vmem:[%s7552_s10 + $0x1c] sm:$0xf]  ;;  %v350_v46 = vld [vmem:[%s7552_s10 + $0x20] sm:$0x1] }
  0x23   : > { %v394_v34 = vrot.slane %v392_v28, 4  ;;  %v397_v41 = vrot.slane %v395_v31, 5  ;;  %v403_v42 = vrot.slane %v401_v32, 5  ;;  %v416_v47 = vshrl.u32 %v319_v37, 16  ;;  %v321_v57 = vld [vmem:[%s7552_s10 + $0x24] sm:$0xf] }
  0x24   : > { %v375_v39 = vrot.slane %v374_v29, 4  ;;  %v385_v40 = vrot.slane %v384_v30, 4  ;;  %v407_v44 = vrot.slane %v405_v35, 4  ;;  %v413_v45 = vrot.slane %v411_v36, 5  ;;  %v322_v62 = vld [vmem:[%s7552_s10 + $0x28] sm:$0xf] }
  0x25   : > { %v398_v51 = vor.u32 %v397_v41, %v394_v34  ;;  %v419_v52 = vshll.u32 %v319_v37, 16  ;;  %v418_v55 = vrot.slane %v416_v47, 4  ;;  %v425_v56 = vshll.u32 %v320_v43, 16  ;;  %v7188_v2 = vld [vmem:[%s7552_s10 + $0x48] sm:$0xff]   ;;  %v5947_v29 = vld [vmem:[%s7552_s10 + $0x14] sm:$0x1] }
  0x26   : > { %6676 = vmatmul.mubr.msk.bf16.gmra.mrb[4].mxu0 %vm801_vm1, %v7186_v18  ;;  %v380_v49 = vsel %vm7583_vm4, %v375_v39, %v379_v21  ;;  %v390_v50 = vsel %vm7583_vm4, %v385_v40, %v389_v25  ;;  %v408_v54 = vor.u32 %v407_v44, %v403_v42  ;;  %v429_v60 = vshrl.u32 %v320_v43, 16  ;;  %v351_v9 = vld [vmem:[%s7552_s10 + $0x2c] sm:$0x1]  ;;  %v5946_v21 = vld [vmem:[%s7552_s10 + $0x10] sm:$0xf] }
  0x27   : > { %6679 = vmatprep.mubr.msk.bf16.mxu0 %vm801_vm1, %v7187_v24  ;;  %v5767_v53 = vcombine.low %v380_v49, %v390_v50  ;;  %v399_v58 = vrot.slane %v398_v51, 4  ;;  %v421_v59 = vrot.slane %v419_v52, 5  ;;  %v435_v61 = vshll.u32 %v350_v46, 16  ;;  %v5945_v12 = vld [vmem:[%s7552_s10 + $0xc] sm:$0xf] }
  0x28   : > { %v409_v63 = vrot.slane %v408_v54, 4  ;;  %v427_v0 = vrot.slane %v425_v56, 5  ;;  %v440_v3 = vshrl.u32 %v321_v57, 16  ;;  %v443_v4 = vshll.u32 %v321_v57, 16  ;;  %v323_v36 = vld [vmem:[%s7552_s10 + $0x30] sm:$0xf] }
  0x29   : > { %6569 = vmatprep.mubr.msk.bf16.mxu1 %vm801_vm1, %v5767_v53  ;;  %v404_v5 = vsel %vm7583_vm4, %v399_v58, %v403_v42  ;;  %v422_v6 = vor.u32 %v421_v59, %v418_v55  ;;  %v431_v7 = vrot.slane %v429_v60, 4  ;;  %v437_v8 = vrot.slane %v435_v61, 5  ;;  %v324_v42 = vld [vmem:[%s7552_s10 + $0x34] sm:$0xf]  ;;  %v352_v51 = vld [vmem:[%s7552_s10 + $0x38] sm:$0x1] }
  0x2a   : > { %v414_v13 = vsel %vm7583_vm4, %v409_v63, %v413_v45  ;;  %v442_v14 = vrot.slane %v440_v3, 4  ;;  %v445_v15 = vrot.slane %v443_v4, 5  ;;  %v449_v16 = vshll.u32 %v322_v62, 16  ;;  %v5948_v57 = vld [vmem:[%s7552_s10 + $0x18] sm:$0xf] }
  0x2b   : > { %v5768_v17 = vcombine.low %v404_v5, %v414_v13  ;;  %v423_v18 = vrot.slane %v422_v6, 4  ;;  %v432_v19 = vor.u32 %v431_v7, %v427_v0  ;;  %v453_v20 = vshrl.u32 %v322_v62, 16  ;;  %v5949_v62 = vld [vmem:[%s7552_s10 + $0x1c] sm:$0xf]  ;;  %v7967_v10 = vld [vmem:[%s7552_s10 + $0xc4] sm:$0xf] }
  0x2c   : > { %v446_v22 = vor.u32 %v445_v15, %v442_v14  ;;  %v451_v23 = vrot.slane %v449_v16, 5  ;;  %v459_v24 = vshll.u32 %v351_v9, 16  ;;  %v2172_v25 = vshrl.u32 %v5945_v12, 16  ;;  %v325_v15 = vld [vmem:[%s7552_s10 + $0x3c] sm:$0xf] }
  0x2d   : > { %6570 = vmatmul.mubr.msk.bf16.vlgmr.msra.gmra.mrb[0].mxu1 %vm801_vm1, %v5768_v17  ;;  %v428_v26 = vsel %vm7583_vm4, %v423_v18, %v427_v0  ;;  %v433_v27 = vrot.slane %v432_v19, 4  ;;  %v455_v28 = vrot.slane %v453_v20, 4  ;;  %v2175_v30 = vshll.u32 %v5945_v12, 16  ;;  %v5950_v12 = vld [vmem:[%s7552_s10 + $0x20] sm:$0x1] }
  0x2e   : > { %6680 = vmatmul.mubr.msk.bf16.gmra.mrb[8].mxu0 %vm801_vm1, %v7188_v2  ;;  %v447_v31 = vrot.slane %v446_v22, 4  ;;  %v461_v32 = vrot.slane %v459_v24, 5  ;;  %v2174_v34 = vrot.slane %v2172_v25, 4  ;;  %v2181_v35 = vshll.u32 %v5946_v21, 16  ;;  %v6031_v1 = vld [vmem:[%s7552_s10 + $0x48] sm:$0xe] }
  0x2f   : > { %v438_v37 = vsel %vm7583_vm4, %v433_v27, %v437_v8  ;;  %v456_v39 = vor.u32 %v455_v28, %v451_v23  ;;  %v2177_v40 = vrot.slane %v2175_v30, 5  ;;  %v2185_v41 = vshrl.u32 %v5946_v21, 16  ;;  %v326_v27 = vld [vmem:[%s7552_s10 + $0x40] sm:$0xf] }
  0x30   : > { %v5769_v43 = vcombine.low %v428_v26, %v438_v37  ;;  %v452_v44 = vsel %vm7583_vm4, %v447_v31, %v451_v23  ;;  %v2183_v45 = vrot.slane %v2181_v35, 5  ;;  %v2191_v46 = vshll.u32 %v5947_v29, 16  ;;  %v5951_v35 = vld [vmem:[%s7552_s10 + $0x24] sm:$0xf] }
  0x31   : > { %v457_v47 = vrot.slane %v456_v39, 4  ;;  %v2178_v49 = vor.u32 %v2177_v40, %v2174_v34  ;;  %v2187_v50 = vrot.slane %v2185_v41, 4  ;;  %v464_v52 = vshrl.u32 %v323_v36, 16 }
  0x32   : > { %6573 = vmatprep.mubr.msk.bf16.mxu1 %vm801_vm1, %v5769_v43  ;;  %v2193_v53 = vrot.slane %v2191_v46, 5  ;;  %v467_v54 = vshll.u32 %v323_v36, 16  ;;  %v473_v55 = vshll.u32 %v324_v42, 16  ;;  %v477_v56 = vshrl.u32 %v324_v42, 16 }
  0x33   : > { %v462_v58 = vsel %vm7583_vm4, %v457_v47, %v461_v32  ;;  %v2179_v59 = vrot.slane %v2178_v49, 4  ;;  %v2188_v60 = vor.u32 %v2187_v50, %v2183_v45  ;;  %v466_v61 = vrot.slane %v464_v52, 4  ;;  %v353_v32 = vld [vmem:[%s7552_s10 + $0x44] sm:$0x1]  ;;  %v5952_v47 = vld [vmem:[%s7552_s10 + $0x28] sm:$0xf] }
  0x34   : > { %v5770_v63 = vcombine.low %v452_v44, %v462_v58  ;;  %v469_v0 = vrot.slane %v467_v54, 5  ;;  %v475_v2 = vrot.slane %v473_v55, 5  ;;  %v479_v3 = vrot.slane %v477_v56, 4  ;;  %v5953_v55 = vld [vmem:[%s7552_s10 + $0x2c] sm:$0x1] }
  0x35   : > { %v2184_v4 = vsel %vm7583_vm4, %v2179_v59, %v2183_v45  ;;  %v2189_v5 = vrot.slane %v2188_v60, 4  ;;  %v483_v6 = vshll.u32 %v352_v51, 16  ;;  %v2196_v7 = vshrl.u32 %v5948_v57, 16  ;;  %v327_v56 = vld [vmem:[%s7552_s10 + $0x48] sm:$0xf] }
  0x36   : > { %6574 = vmatmul.mubr.msk.bf16.gmra.mrb[4].mxu1 %vm801_vm1, %v5770_v63  ;;  %v470_v8 = vor.u32 %v469_v0, %v466_v61  ;;  %v480_v9 = vor.u32 %v479_v3, %v475_v2  ;;  %v2199_v13 = vshll.u32 %v5948_v57, 16  ;;  %v2205_v14 = vshll.u32 %v5949_v62, 16 }
  0x37   : > { %v2194_v16 = vsel %vm7583_vm4, %v2189_v5, %v2193_v53  ;;  %v485_v17 = vrot.slane %v483_v6, 5  ;;  %v2198_v18 = vrot.slane %v2196_v7, 4  ;;  %v2209_v19 = vshrl.u32 %v5949_v62, 16  ;;  %v328_v5 = vld [vmem:[%s7552_s10 + $0x4c] sm:$0xf] }
  0x38   : > { %v5994_v20 = vcombine.low %v2184_v4, %v2194_v16  ;;  %v471_v21 = vrot.slane %v470_v8, 4  ;;  %v481_v22 = vrot.slane %v480_v9, 4  ;;  %v2201_v23 = vrot.slane %v2199_v13, 5 }
  0x39   : > { %v2207_v24 = vrot.slane %v2205_v14, 5  ;;  %v2211_v25 = vrot.slane %v2209_v19, 4  ;;  %v2215_v26 = vshll.u32 %v5950_v12, 16  ;;  %v488_v28 = vshrl.u32 %v325_v15, 16  ;;  %v354_v12 = vld [vmem:[%s7552_s10 + $0x50] sm:$0x1] }
  0x3a   : > { %6705 = vmatprep.mubr.msk.bf16.mxu0 %vm801_vm1, %v5994_v20  ;;  %v476_v29 = vsel %vm7583_vm4, %v471_v21, %v475_v2  ;;  %v486_v30 = vsel %vm7583_vm4, %v481_v22, %v485_v17  ;;  %v2202_v31 = vor.u32 %v2201_v23, %v2198_v18  ;;  %v491_v34 = vshll.u32 %v325_v15, 16  ;;  %v5954_v18 = vld [vmem:[%s7552_s10 + $0x30] sm:$0xf]  ;;  %v5955_v23 = vld [vmem:[%s7552_s10 + $0x34] sm:$0xf] }
  0x3b   : > { %v5771_v36 = vcombine.low %v476_v29, %v486_v30  ;;  %v2212_v37 = vor.u32 %v2211_v25, %v2207_v24  ;;  %v2217_v39 = vrot.slane %v2215_v26, 5  ;;  %v490_v40 = vrot.slane %v488_v28, 4  ;;  %v5956_v30 = vld [vmem:[%s7552_s10 + $0x38] sm:$0x1] }
  0x3c   : > { %v2203_v41 = vrot.slane %v2202_v31, 4  ;;  %v493_v42 = vrot.slane %v491_v34, 5  ;;  %v497_v43 = vshll.u32 %v326_v27, 16  ;;  %v501_v44 = vshrl.u32 %v326_v27, 16 }
  0x3d   : > { %6577 = vmatprep.mubr.msk.bf16.mxu1 %vm801_vm1, %v5771_v36  ;;  %v2213_v45 = vrot.slane %v2212_v37, 4  ;;  %v507_v46 = vshll.u32 %v353_v32, 16  ;;  %v2220_v49 = vshrl.u32 %v5951_v35, 16  ;;  %v2223_v50 = vshll.u32 %v5951_v35, 16 }
  0x3e   : > { %v2208_v51 = vsel %vm7583_vm4, %v2203_v41, %v2207_v24  ;;  %v494_v52 = vor.u32 %v493_v42, %v490_v40  ;;  %v499_v53 = vrot.slane %v497_v43, 5  ;;  %v503_v54 = vrot.slane %v501_v44, 4  ;;  %v329_v42 = vld [vmem:[%s7552_s10 + $0x54] sm:$0xf] }
  0x3f   : > { %v2218_v57 = vsel %vm7583_vm4, %v2213_v45, %v2217_v39  ;;  %v509_v58 = vrot.slane %v507_v46, 5  ;;  %v2222_v59 = vrot.slane %v2220_v49, 4  ;;  %v2225_v60 = vrot.slane %v2223_v50, 5 }
  0x40   : > { %v5995_v61 = vcombine.low %v2208_v51, %v2218_v57  ;;  %v495_v62 = vrot.slane %v494_v52, 4  ;;  %v504_v63 = vor.u32 %v503_v54, %v499_v53  ;;  %v2229_v0 = vshll.u32 %v5952_v47, 16 }
  0x41   : > { %v2226_v2 = vor.u32 %v2225_v60, %v2222_v59  ;;  %v2233_v3 = vshrl.u32 %v5952_v47, 16  ;;  %v2239_v4 = vshll.u32 %v5953_v55, 16  ;;  %v512_v6 = vshrl.u32 %v327_v56, 16  ;;  %v330_v47 = vld [vmem:[%s7552_s10 + $0x58] sm:$0xf] }
  0x42   : > { %6706 = vmatmul.mubr.msk.bf16.vlgmr.msra.gmra.mrb[0].mxu0 %vm801_vm1, %v5995_v61  ;;  %v500_v7 = vsel %vm7583_vm4, %v495_v62, %v499_v53  ;;  %v505_v8 = vrot.slane %v504_v63, 4  ;;  %v2231_v9 = vrot.slane %v2229_v0, 5  ;;  %v515_v13 = vshll.u32 %v327_v56, 16  ;;  %v355_v55 = vld [vmem:[%s7552_s10 + $0x5c] sm:$0x1] }
  0x43   : > { %6738 = vmatpush3.bf16.msra.mxu0 %v7589_v38  ;;  %v2227_v14 = vrot.slane %v2226_v2, 4  ;;  %v2235_v15 = vrot.slane %v2233_v3, 4  ;;  %v2241_v16 = vrot.slane %v2239_v4, 5  ;;  %v514_v17 = vrot.slane %v512_v6, 4  ;;  %v5957_v62 = vld [vmem:[%s7552_s10 + $0x3c] sm:$0xf] }
  0x44   : > { %v510_v19 = vsel %vm7583_vm4, %v505_v8, %v509_v58  ;;  %v517_v20 = vrot.slane %v515_v13, 5  ;;  %v521_v21 = vshll.u32 %v328_v5, 16  ;;  %v525_v22 = vshrl.u32 %v328_v5, 16  ;;  %v5958_v4 = vld [vmem:[%s7552_s10 + $0x40] sm:$0xf] }
  0x45   : > { %v5772_v24 = vcombine.low %v500_v7, %v510_v19  ;;  %v2232_v25 = vsel %vm7583_vm4, %v2227_v14, %v2231_v9  ;;  %v2236_v26 = vor.u32 %v2235_v15, %v2231_v9  ;;  %v531_v38 = vshll.u32 %v354_v12, 16  ;;  %v5959_v13 = vld [vmem:[%s7552_s10 + $0x44] sm:$0x1] }
  0x46   : > { %v518_v27 = vor.u32 %v517_v20, %v514_v17  ;;  %v523_v28 = vrot.slane %v521_v21, 5  ;;  %v527_v29 = vrot.slane %v525_v22, 4  ;;  %v2244_v31 = vshrl.u32 %v5954_v18, 16  ;;  %v331_v20 = vld [vmem:[%s7552_s10 + $0x60] sm:$0xf] }
  0x47   : > { %6578 = vmatmul.mubr.msk.bf16.gmra.mrb[8].mxu1 %vm801_vm1, %v5772_v24  ;;  %v2237_v32 = vrot.slane %v2236_v26, 4  ;;  %v533_v34 = vrot.slane %v531_v38, 5  ;;  %v2247_v35 = vshll.u32 %v5954_v18, 16  ;;  %v2253_v36 = vshll.u32 %v5955_v23, 16 }
  0x48   : > { %v519_v37 = vrot.slane %v518_v27, 4  ;;  %v528_v39 = vor.u32 %v527_v29, %v523_v28  ;;  %v2246_v40 = vrot.slane %v2244_v31, 4  ;;  %v2257_v41 = vshrl.u32 %v5955_v23, 16  ;;  %v356_v31 = vld [vmem:[%s7552_s10 + $0x68] sm:$0x1] }
  0x49   : > { %v2242_v43 = vsel %vm7583_vm4, %v2237_v32, %v2241_v16  ;;  %v2249_v44 = vrot.slane %v2247_v35, 5  ;;  %v2255_v45 = vrot.slane %v2253_v36, 5  ;;  %v2263_v46 = vshll.u32 %v5956_v30, 16 }
  0x4a   : > { %v5996_v49 = vcombine.low %v2232_v25, %v2242_v43  ;;  %v524_v50 = vsel %vm7583_vm4, %v519_v37, %v523_v28  ;;  %v529_v51 = vrot.slane %v528_v39, 4  ;;  %v2259_v52 = vrot.slane %v2257_v41, 4  ;;  %v332_v25 = vld [vmem:[%s7552_s10 + $0x64] sm:$0xf] }
  0x4b   : > { %v2250_v53 = vor.u32 %v2249_v44, %v2246_v40  ;;  %v2265_v54 = vrot.slane %v2263_v46, 5  ;;  %v536_v56 = vshrl.u32 %v329_v42, 16  ;;  %v539_v57 = vshll.u32 %v329_v42, 16  ;;  %v5960_v40 = vld [vmem:[%s7552_s10 + $0x48] sm:$0xf] }
  0x4c   : > { %6709 = vmatprep.mubr.msk.bf16.mxu0 %vm801_vm1, %v5996_v49  ;;  %v534_v58 = vsel %vm7583_vm4, %v529_v51, %v533_v34  ;;  %v2260_v59 = vor.u32 %v2259_v52, %v2255_v45  ;;  %v545_v60 = vshll.u32 %v330_v47, 16  ;;  %v549_v61 = vshrl.u32 %v330_v47, 16 }
  0x4d   : > { %v5773_v63 = vcombine.low %v524_v50, %v534_v58  ;;  %v2251_v0 = vrot.slane %v2250_v53, 4  ;;  %v538_v2 = vrot.slane %v536_v56, 4  ;;  %v541_v3 = vrot.slane %v539_v57, 5  ;;  %v5962_v53 = vld [vmem:[%s7552_s10 + $0x50] sm:$0x1] }
  0x4e   : > { %v2261_v5 = vrot.slane %v2260_v59, 4  ;;  %v547_v6 = vrot.slane %v545_v60, 5  ;;  %v551_v7 = vrot.slane %v549_v61, 4  ;;  %v555_v8 = vshll.u32 %v355_v55, 16 }
  0x4f   : > { %6581 = vmatprep.mubr.msk.bf16.mxu1 %vm801_vm1, %v5773_v63  ;;  %v2256_v9 = vsel %vm7583_vm4, %v2251_v0, %v2255_v45  ;;  %v542_v12 = vor.u32 %v541_v3, %v538_v2  ;;  %v2268_v14 = vshrl.u32 %v5957_v62, 16  ;;  %v2271_v15 = vshll.u32 %v5957_v62, 16  ;;  %v7694_v45 = vld [vmem:[%s7552_s10 + $0x4c] sm:$0xf] }
  0x50   : > { %v2266_v16 = vsel %vm7583_vm4, %v2261_v5, %v2265_v54  ;;  %v552_v17 = vor.u32 %v551_v7, %v547_v6  ;;  %v557_v18 = vrot.slane %v555_v8, 5  ;;  %v2277_v19 = vshll.u32 %v5958_v4, 16  ;;  %v333_v0 = vld [vmem:[%s7552_s10 + $0x6c] sm:$0xf] }
  0x51   : > { %v5997_v21 = vcombine.low %v2256_v9, %v2266_v16  ;;  %v543_v22 = vrot.slane %v542_v12, 4  ;;  %v2270_v23 = vrot.slane %v2268_v14, 4  ;;  %v2273_v24 = vrot.slane %v2271_v15, 5 }
  0x52   : > { %v553_v26 = vrot.slane %v552_v17, 4  ;;  %v2279_v38 = vrot.slane %v2277_v19, 5  ;;  %v2281_v27 = vshrl.u32 %v5958_v4, 16  ;;  %v2287_v28 = vshll.u32 %v5959_v13, 16  ;;  %v357_v13 = vld [vmem:[%s7552_s10 + $0x74] sm:$0x1] }
  0x53   : > { %6710 = vmatmul.mubr.msk.bf16.gmra.mrb[4].mxu0 %vm801_vm1, %v5997_v21  ;;  %v548_v29 = vsel %vm7583_vm4, %v543_v22, %v547_v6  ;;  %v2274_v30 = vor.u32 %v2273_v24, %v2270_v23  ;;  %v560_v32 = vshrl.u32 %v331_v20, 16  ;;  %v563_v34 = vshll.u32 %v331_v20, 16  ;;  %v334_v6 = vld [vmem:[%s7552_s10 + $0x70] sm:$0xf]  ;;  %v7714_v23 = vld [vmem:[%s9572_s1] sm:$0x3] }
  0x54   : > { %v558_v35 = vsel %vm7583_vm4, %v553_v26, %v557_v18  ;;  %v2283_v36 = vrot.slane %v2281_v27, 4  ;;  %v2289_v37 = vrot.slane %v2287_v28, 5  ;;  %v569_v39 = vshll.u32 %v332_v25, 16  ;;  %v5963_v18 = vld [vmem:[%s7552_s10 + $0x54] sm:$0xf]  ;;  %7132 = vmatprep.subr.msk.bf16.mxu1 %vm850_vm0, %v7714_v23 }
  0x55   : > { %v5774_v41 = vcombine.low %v548_v29, %v558_v35  ;;  %v2275_v42 = vrot.slane %v2274_v30, 4  ;;  %v562_v43 = vrot.slane %v560_v32, 4  ;;  %v565_v44 = vrot.slane %v563_v34, 5  ;;  %v7719_v27 = vld [vmem:[%s7552_s10 + $0x58] sm:$0xf] }
  0x56   : > { %v2284_v46 = vor.u32 %v2283_v36, %v2279_v38  ;;  %v571_v47 = vrot.slane %v569_v39, 5  ;;  %v573_v49 = vshrl.u32 %v332_v25, 16  ;;  %v579_v50 = vshll.u32 %v356_v31, 16  ;;  %v7726_v36 = vld [vmem:[%s7552_s10 + $0x5c] sm:$0x1] }
  0x57   : > { %6582 = vmatmul.mubr.msk.bf16.gmra.mrb[12].mxu1 %vm801_vm1, %v5774_v41  ;;  %v2280_v51 = vsel %vm7583_vm4, %v2275_v42, %v2279_v38  ;;  %v566_v52 = vor.u32 %v565_v44, %v562_v43  ;;  %v2292_v54 = vshrl.u32 %v5960_v40, 16  ;;  %v2295_v55 = vshll.u32 %v5960_v40, 16  ;;  %v7734_v43 = vld [vmem:[%s7552_s10 + $0x78] sm:$0xf] }
  0x58   : > { %v2285_v56 = vrot.slane %v2284_v46, 4  ;;  %v575_v57 = vrot.slane %v573_v49, 4  ;;  %v581_v58 = vrot.slane %v579_v50, 5  ;;  %v2301_v59 = vshll.u32 %v7694_v45, 16  ;;  %v7737_v50 = vld [vmem:[%s7552_s10 + $0x7c] sm:$0xf] }
  0x59   : > { %v567_v60 = vrot.slane %v566_v52, 4  ;;  %v2294_v61 = vrot.slane %v2292_v54, 4  ;;  %v2297_v62 = vrot.slane %v2295_v55, 5  ;;  %v2305_v63 = vshrl.u32 %v7694_v45, 16 }
  0x5a   : > { %v2290_v2 = vsel %vm7583_vm4, %v2285_v56, %v2289_v37  ;;  %v576_v3 = vor.u32 %v575_v57, %v571_v47  ;;  %v2303_v4 = vrot.slane %v2301_v59, 5  ;;  %v2311_v5 = vshll.u32 %v5962_v53, 16 }
  0x5b   : > { %v5998_v7 = vcombine.low %v2280_v51, %v2290_v2  ;;  %v572_v8 = vsel %vm7583_vm4, %v567_v60, %v571_v47  ;;  %v2298_v9 = vor.u32 %v2297_v62, %v2294_v61  ;;  %v2307_v12 = vrot.slane %v2305_v63, 4  ;;  %v358_v62 = vld [vmem:[%s7552_s10 + $0x80] sm:$0x1] }
  0x5c   : > { %v577_v14 = vrot.slane %v576_v3, 4  ;;  %v2313_v15 = vrot.slane %v2311_v5, 5  ;;  %v584_v16 = vshrl.u32 %v333_v0, 16  ;;  %v587_v17 = vshll.u32 %v333_v0, 16  ;;  %v5966_v0 = vld [vmem:[%s7552_s10 + $0x60] sm:$0xf] }
  0x5d   : > { %6713 = vmatprep.mubr.msk.bf16.mxu0 %vm801_vm1, %v5998_v7  ;;  %v2299_v19 = vrot.slane %v2298_v9, 4  ;;  %v2308_v20 = vor.u32 %v2307_v12, %v2303_v4  ;;  %v593_v21 = vshll.u32 %v334_v6, 16  ;;  %v597_v22 = vshrl.u32 %v334_v6, 16  ;;  %v7752_v6 = vld [vmem:[%s7552_s10 + $0x64] sm:$0xf] }
  0x5e   : > { %v582_v24 = vsel %vm7583_vm4, %v577_v14, %v581_v58  ;;  %v586_v25 = vrot.slane %v584_v16, 4  ;;  %v589_v26 = vrot.slane %v587_v17, 5  ;;  %v603_v38 = vshll.u32 %v357_v13, 16  ;;  %v7757_v17 = vld [vmem:[%s9572_s1 + $0xc] sm:$0x3] }
  0x5f   : > { %v5775_v28 = vcombine.low %v572_v8, %v582_v24  ;;  %v2304_v29 = vsel %vm7583_vm4, %v2299_v19, %v2303_v4  ;;  %v2309_v30 = vrot.slane %v2308_v20, 4  ;;  %v595_v31 = vrot.slane %v593_v21, 5  ;;  %v7765_v20 = vld [vmem:[%s7552_s10 + $0x68] sm:$0x1]  ;;  %v337_v24 = vld [vmem:[%s7552_s10 + $0x84] sm:$0xf]  ;;  %7138 = vmatprep.subr.msk.bf16.mxu0 %vm850_vm0, %v7757_v17 }
  0x60   : > { %v590_v32 = vor.u32 %v589_v26, %v586_v25  ;;  %v599_v34 = vrot.slane %v597_v22, 4  ;;  %v605_v35 = vrot.slane %v603_v38, 5  ;;  %v2316_v37 = vshrl.u32 %v5963_v18, 16 }
  0x61   : > { %6585 = vmatprep.mubr.msk.bf16.mxu1 %vm801_vm1, %v5775_v28  ;;  %v2314_v39 = vsel %vm7583_vm4, %v2309_v30, %v2313_v15  ;;  %v2319_v40 = vshll.u32 %v5963_v18, 16  ;;  %v2325_v41 = vshll.u32 %v7719_v27, 16  ;;  %v2329_v42 = vshrl.u32 %v7719_v27, 16 }
  0x62   : > { %v5999_v44 = vcombine.low %v2304_v29, %v2314_v39  ;;  %v591_v46 = vrot.slane %v590_v32, 4  ;;  %v600_v47 = vor.u32 %v599_v34, %v595_v31  ;;  %v2318_v49 = vrot.slane %v2316_v37, 4  ;;  %v338_v29 = vld [vmem:[%s7552_s10 + $0x88] sm:$0xf] }
  0x63   : > { %v2321_v51 = vrot.slane %v2319_v40, 5  ;;  %v2327_v52 = vrot.slane %v2325_v41, 5  ;;  %v2331_v53 = vrot.slane %v2329_v42, 4  ;;  %v2335_v54 = vshll.u32 %v7726_v36, 16  ;;  %v359_v40 = vld [vmem:[%s7552_s10 + $0x8c] sm:$0x1] }
  0x64   : > { %6714 = vmatmul.mubr.msk.bf16.gmra.mrb[8].mxu0 %vm801_vm1, %v5999_v44  ;;  %v596_v55 = vsel %vm7583_vm4, %v591_v46, %v595_v31  ;;  %v601_v56 = vrot.slane %v600_v47, 4  ;;  %v608_v57 = vshrl.u32 %v7734_v43, 16  ;;  %v611_v58 = vshll.u32 %v7734_v43, 16 }
  0x65   : > { %v2322_v59 = vor.u32 %v2321_v51, %v2318_v49  ;;  %v2332_v60 = vor.u32 %v2331_v53, %v2327_v52  ;;  %v2337_v61 = vrot.slane %v2335_v54, 5  ;;  %v617_v63 = vshll.u32 %v7737_v50, 16  ;;  %v5969_v49 = vld [vmem:[%s7552_s10 + $0x6c] sm:$0xf] }
  0x66   : > { %v606_v2 = vsel %vm7583_vm4, %v601_v56, %v605_v35  ;;  %v610_v3 = vrot.slane %v608_v57, 4  ;;  %v613_v4 = vrot.slane %v611_v58, 5  ;;  %v621_v5 = vshrl.u32 %v7737_v50, 16 }
  0x67   : > { %v5776_v7 = vcombine.low %v596_v55, %v606_v2  ;;  %v2323_v8 = vrot.slane %v2322_v59, 4  ;;  %v2333_v9 = vrot.slane %v2332_v60, 4  ;;  %v619_v12 = vrot.slane %v617_v63, 5  ;;  %v7782_v59 = vld [vmem:[%s7552_s10 + $0x70] sm:$0xf] }
  0x68   : > { %v614_v13 = vor.u32 %v613_v4, %v610_v3  ;;  %v623_v14 = vrot.slane %v621_v5, 4  ;;  %v627_v15 = vshll.u32 %v358_v62, 16  ;;  %v2340_v16 = vshrl.u32 %v5966_v0, 16  ;;  %v7788_v4 = vld [vmem:[%s7552_s10 + $0x74] sm:$0x1] }
  0x69   : > { %6586 = vmatmul.mubr.msk.bf16.gmra.mrb[16].mxu1 %vm801_vm1, %v5776_v7  ;;  %v2328_v18 = vsel %vm7583_vm4, %v2323_v8, %v2327_v52  ;;  %v2338_v19 = vsel %vm7583_vm4, %v2333_v9, %v2337_v61  ;;  %v2343_v21 = vshll.u32 %v5966_v0, 16  ;;  %v2349_v22 = vshll.u32 %v7752_v6, 16 }
  0x6a   : > { %v6000_v25 = vcombine.low %v2328_v18, %v2338_v19  ;;  %v615_v26 = vrot.slane %v614_v13, 4  ;;  %v624_v38 = vor.u32 %v623_v14, %v619_v12  ;;  %v629_v28 = vrot.slane %v627_v15, 5  ;;  %v7792_v13 = vld [vmem:[%s7552_s10 + $0x90] sm:$0xf]  ;;  %v7798_v19 = vld [vmem:[%s7552_s10 + $0x94] sm:$0xf] }
  0x6b   : > { %v2342_v30 = vrot.slane %v2340_v16, 4  ;;  %v2345_v31 = vrot.slane %v2343_v21, 5  ;;  %v2351_v32 = vrot.slane %v2349_v22, 5  ;;  %v2353_v34 = vshrl.u32 %v7752_v6, 16 }
  0x6c   : > { %6717 = vmatprep.mubr.msk.bf16.mxu0 %vm801_vm1, %v6000_v25  ;;  %v620_v35 = vsel %vm7583_vm4, %v615_v26, %v619_v12  ;;  %v625_v37 = vrot.slane %v624_v38, 4  ;;  %v2359_v39 = vshll.u32 %v7765_v20, 16  ;;  %v632_v41 = vshrl.u32 %v337_v24, 16 }
  0x6d   : > { %v2346_v42 = vor.u32 %v2345_v31, %v2342_v30  ;;  %v2355_v44 = vrot.slane %v2353_v34, 4  ;;  %v635_v46 = vshll.u32 %v337_v24, 16  ;;  %v641_v47 = vshll.u32 %v338_v29, 16 }
  0x6e   : > { %v630_v51 = vsel %vm7583_vm4, %v625_v37, %v629_v28  ;;  %v2361_v52 = vrot.slane %v2359_v39, 5  ;;  %v634_v53 = vrot.slane %v632_v41, 4  ;;  %v645_v54 = vshrl.u32 %v338_v29, 16  ;;  %v360_v29 = vld [vmem:[%s7552_s10 + $0x98] sm:$0x1] }
  0x6f   : > { %v5777_v55 = vcombine.low %v620_v35, %v630_v51  ;;  %v2347_v56 = vrot.slane %v2346_v42, 4  ;;  %v2356_v57 = vor.u32 %v2355_v44, %v2351_v32  ;;  %v637_v58 = vrot.slane %v635_v46, 5  ;;  %v5972_v37 = vld [vmem:[%s7552_s10 + $0x78] sm:$0xf]  ;;  %v7812_v44 = vld [vmem:[%s7552_s10 + $0x7c] sm:$0xf] }
  0x70   : > { %v643_v60 = vrot.slane %v641_v47, 5  ;;  %v647_v61 = vrot.slane %v645_v54, 4  ;;  %v651_v62 = vshll.u32 %v359_v40, 16  ;;  %v2364_v63 = vshrl.u32 %v5969_v49, 16 }
  0x71   : > { %6589 = vmatprep.mubr.msk.bf16.mxu1 %vm801_vm1, %v5777_v55  ;;  %v2352_v0 = vsel %vm7583_vm4, %v2347_v56, %v2351_v32  ;;  %v2357_v2 = vrot.slane %v2356_v57, 4  ;;  %v638_v3 = vor.u32 %v637_v58, %v634_v53  ;;  %v2367_v5 = vshll.u32 %v5969_v49, 16  ;;  %v7822_v57 = vld [vmem:[%s7552_s10 + $0x9c] sm:$0xf] }
  0x72   : > { %v648_v7 = vor.u32 %v647_v61, %v643_v60  ;;  %v653_v8 = vrot.slane %v651_v62, 5  ;;  %v2366_v9 = vrot.slane %v2364_v63, 4  ;;  %v2373_v12 = vshll.u32 %v7782_v59, 16  ;;  %v7826_v63 = vld [vmem:[%s7552_s10 + $0xa0] sm:$0xf] }
  0x73   : > { %v2362_v14 = vsel %vm7583_vm4, %v2357_v2, %v2361_v52  ;;  %v639_v15 = vrot.slane %v638_v3, 4  ;;  %v2369_v16 = vrot.slane %v2367_v5, 5  ;;  %v2377_v18 = vshrl.u32 %v7782_v59, 16  ;;  %v7816_v52 = vld [vmem:[%s7552_s10 + $0x80] sm:$0x1] }
  0x74   : > { %v6001_v21 = vcombine.low %v2352_v0, %v2362_v14  ;;  %v649_v22 = vrot.slane %v648_v7, 4  ;;  %v2375_v24 = vrot.slane %v2373_v12, 5  ;;  %v2383_v25 = vshll.u32 %v7788_v4, 16  ;;  %v361_v14 = vld [vmem:[%s7552_s10 + $0xa4] sm:$0x1] }
  0x75   : > { %v644_v26 = vsel %vm7583_vm4, %v639_v15, %v643_v60  ;;  %v2370_v38 = vor.u32 %v2369_v16, %v2366_v9  ;;  %v2379_v28 = vrot.slane %v2377_v18, 4  ;;  %v656_v30 = vshrl.u32 %v7792_v13, 16 }
  0x76   : > { %6718 = vmatmul.mubr.msk.bf16.gmra.mrb[12].mxu0 %vm801_vm1, %v6001_v21  ;;  %v654_v31 = vsel %vm7583_vm4, %v649_v22, %v653_v8  ;;  %v2385_v32 = vrot.slane %v2383_v25, 5  ;;  %v659_v34 = vshll.u32 %v7792_v13, 16  ;;  %v665_v35 = vshll.u32 %v7798_v19, 16  ;;  %v5975_v22 = vld [vmem:[%s7552_s10 + $0x84] sm:$0xf] }
  0x77   : > { %v5778_v39 = vcombine.low %v644_v26, %v654_v31  ;;  %v2371_v40 = vrot.slane %v2370_v38, 4  ;;  %v2380_v41 = vor.u32 %v2379_v28, %v2375_v24  ;;  %v658_v42 = vrot.slane %v656_v30, 4 }
  0x78   : > { %v661_v46 = vrot.slane %v659_v34, 5  ;;  %v667_v47 = vrot.slane %v665_v35, 5  ;;  %v669_v49 = vshrl.u32 %v7798_v19, 16  ;;  %v675_v51 = vshll.u32 %v360_v29, 16 }
  0x79   : > { %6590 = vmatmul.mubr.msk.bf16.gmra.mrb[20].mxu1 %vm801_vm1, %v5778_v39  ;;  %v2376_v53 = vsel %vm7583_vm4, %v2371_v40, %v2375_v24  ;;  %v2381_v54 = vrot.slane %v2380_v41, 4  ;;  %v2388_v55 = vshrl.u32 %v5972_v37, 16  ;;  %v2391_v56 = vshll.u32 %v5972_v37, 16  ;;  %v7847_v40 = vld [vmem:[%s7552_s10 + $0x8c] sm:$0x1] }
  0x7a   : > { %v662_v58 = vor.u32 %v661_v46, %v658_v42  ;;  %v671_v60 = vrot.slane %v669_v49, 4  ;;  %v677_v61 = vrot.slane %v675_v51, 5  ;;  %v2397_v62 = vshll.u32 %v7812_v44, 16  ;;  %v7852_v49 = vld [vmem:[%s7552_s10 + $0xa8] sm:$0xf] }
  0x7b   : > { %v2386_v0 = vsel %vm7583_vm4, %v2381_v54, %v2385_v32  ;;  %v2390_v2 = vrot.slane %v2388_v55, 4  ;;  %v2393_v3 = vrot.slane %v2391_v56, 5  ;;  %v2401_v5 = vshrl.u32 %v7812_v44, 16  ;;  %v7841_v32 = vld [vmem:[%s7552_s10 + $0x88] sm:$0xf] }
  0x7c   : > { %v6002_v7 = vcombine.low %v2376_v53, %v2386_v0  ;;  %v663_v8 = vrot.slane %v662_v58, 4  ;;  %v672_v9 = vor.u32 %v671_v60, %v667_v47  ;;  %v2399_v12 = vrot.slane %v2397_v62, 5 }
  0x7d   : > { %v2394_v15 = vor.u32 %v2393_v3, %v2390_v2  ;;  %v2403_v16 = vrot.slane %v2401_v5, 4  ;;  %v2407_v18 = vshll.u32 %v7816_v52, 16  ;;  %v680_v21 = vshrl.u32 %v7822_v57, 16  ;;  %v7860_v5 = vld [vmem:[%s7552_s10 + $0xac] sm:$0xf] }
  0x7e   : > { %6721 = vmatprep.mubr.msk.bf16.mxu0 %vm801_vm1, %v6002_v7  ;;  %v668_v24 = vsel %vm7583_vm4, %v663_v8, %v667_v47  ;;  %v673_v25 = vrot.slane %v672_v9, 4  ;;  %v683_v26 = vshll.u32 %v7822_v57, 16  ;;  %v689_v38 = vshll.u32 %v7826_v63, 16 }
  0x7f   : > { %v2395_v28 = vrot.slane %v2394_v15, 4  ;;  %v2404_v29 = vor.u32 %v2403_v16, %v2399_v12  ;;  %v2409_v30 = vrot.slane %v2407_v18, 5  ;;  %v682_v31 = vrot.slane %v680_v21, 4 }
  0x80   : > { %v678_v34 = vsel %vm7583_vm4, %v673_v25, %v677_v61  ;;  %v685_v35 = vrot.slane %v683_v26, 5  ;;  %v691_v37 = vrot.slane %v689_v38, 5  ;;  %v693_v39 = vshrl.u32 %v7826_v63, 16 }
  0x81   : > { %v5779_v41 = vcombine.low %v668_v24, %v678_v34  ;;  %v2400_v42 = vsel %vm7583_vm4, %v2395_v28, %v2399_v12  ;;  %v2405_v46 = vrot.slane %v2404_v29, 4  ;;  %v699_v47 = vshll.u32 %v361_v14, 16  ;;  %v362_v14 = vld [vmem:[%s7552_s10 + $0xb0] sm:$0x1]  ;;  %v7875_v34 = vld [vmem:[%s7552_s10 + $0x94] sm:$0xf] }
  0x82   : > { %v686_v51 = vor.u32 %v685_v35, %v682_v31  ;;  %v695_v53 = vrot.slane %v693_v39, 4  ;;  %v2412_v54 = vshrl.u32 %v5975_v22, 16  ;;  %v2415_v55 = vshll.u32 %v5975_v22, 16  ;;  %v5978_v22 = vld [vmem:[%s7552_s10 + $0x90] sm:$0xf] }
  0x83   : > { %6593 = vmatprep.mubr.msk.bf16.mxu1 %vm801_vm1, %v5779_v41  ;;  %v2410_v56 = vsel %vm7583_vm4, %v2405_v46, %v2409_v30  ;;  %v701_v58 = vrot.slane %v699_v47, 5  ;;  %v2421_v60 = vshll.u32 %v7841_v32, 16  ;;  %v2425_v61 = vshrl.u32 %v7841_v32, 16  ;;  %v7881_v46 = vld [vmem:[%s7552_s10 + $0xb4] sm:$0xf] }
  0x84   : > { %v6003_v62 = vcombine.low %v2400_v42, %v2410_v56  ;;  %v687_v0 = vrot.slane %v686_v51, 4  ;;  %v696_v2 = vor.u32 %v695_v53, %v691_v37  ;;  %v2414_v3 = vrot.slane %v2412_v54, 4  ;;  %v7878_v42 = vld [vmem:[%s7552_s10 + $0x98] sm:$0x1] }
  0x85   : > { %v2417_v7 = vrot.slane %v2415_v55, 5  ;;  %v2423_v8 = vrot.slane %v2421_v60, 5  ;;  %v2427_v9 = vrot.slane %v2425_v61, 4  ;;  %v2431_v12 = vshll.u32 %v7847_v40, 16  ;;  %v7890_v61 = vld [vmem:[%s7552_s10 + $0xb8] sm:$0xf] }
  0x86   : > { %6722 = vmatmul.mubr.msk.bf16.gmra.mrb[16].mxu0 %vm801_vm1, %v6003_v62  ;;  %v692_v15 = vsel %vm7583_vm4, %v687_v0, %v691_v37  ;;  %v697_v16 = vrot.slane %v696_v2, 4  ;;  %v704_v18 = vshrl.u32 %v7852_v49, 16  ;;  %v707_v21 = vshll.u32 %v7852_v49, 16 }
  0x87   : > { %v2418_v24 = vor.u32 %v2417_v7, %v2414_v3  ;;  %v2428_v25 = vor.u32 %v2427_v9, %v2423_v8  ;;  %v2433_v26 = vrot.slane %v2431_v12, 5  ;;  %v713_v38 = vshll.u32 %v7860_v5, 16 }
  0x88   : > { %v702_v28 = vsel %vm7583_vm4, %v697_v16, %v701_v58  ;;  %v706_v29 = vrot.slane %v704_v18, 4  ;;  %v709_v30 = vrot.slane %v707_v21, 5  ;;  %v717_v31 = vshrl.u32 %v7860_v5, 16 }
  0x89   : > { %v5780_v35 = vcombine.low %v692_v15, %v702_v28  ;;  %v2419_v37 = vrot.slane %v2418_v24, 4  ;;  %v2429_v39 = vrot.slane %v2428_v25, 4  ;;  %v715_v41 = vrot.slane %v713_v38, 5  ;;  %v7903_v28 = vld [vmem:[%s7552_s10 + $0xa0] sm:$0xf] }
  0x8a   : > { %v710_v47 = vor.u32 %v709_v30, %v706_v29  ;;  %v719_v51 = vrot.slane %v717_v31, 4  ;;  %v723_v53 = vshll.u32 %v362_v14, 16  ;;  %v2436_v54 = vshrl.u32 %v5978_v22, 16 }
  0x8b   : > { %6594 = vmatmul.mubr.msk.bf16.gmra.mrb[24].mxu1 %vm801_vm1, %v5780_v35  ;;  %v2424_v55 = vsel %vm7583_vm4, %v2419_v37, %v2423_v8  ;;  %v2434_v56 = vsel %vm7583_vm4, %v2429_v39, %v2433_v26  ;;  %v2439_v58 = vshll.u32 %v5978_v22, 16  ;;  %v2445_v60 = vshll.u32 %v7875_v34, 16  ;;  %v363_v8 = vld [vmem:[%s7552_s10 + $0xbc] sm:$0x1] }
  0x8c   : > { %v6004_v62 = vcombine.low %v2424_v55, %v2434_v56  ;;  %v711_v0 = vrot.slane %v710_v47, 4  ;;  %v720_v2 = vor.u32 %v719_v51, %v715_v41  ;;  %v725_v3 = vrot.slane %v723_v53, 5  ;;  %v5981_v22 = vld [vmem:[%s7552_s10 + $0x9c] sm:$0xf]  ;;  %v7911_v51 = vld [vmem:[%s9572_s1 + $0x4] sm:$0x3] }
  0x8d   : > { %v2438_v7 = vrot.slane %v2436_v54, 4  ;;  %v2441_v9 = vrot.slane %v2439_v58, 5  ;;  %v2447_v12 = vrot.slane %v2445_v60, 5  ;;  %v2449_v14 = vshrl.u32 %v7875_v34, 16  ;;  %v7916_v58 = vld [vmem:[%s7552_s10 + $0xa4] sm:$0x1] }
  0x8e   : > { %6725 = vmatprep.mubr.msk.bf16.mxu0 %vm801_vm1, %v6004_v62  ;;  %v716_v15 = vsel %vm7583_vm4, %v711_v0, %v715_v41  ;;  %v721_v16 = vrot.slane %v720_v2, 4  ;;  %v2455_v18 = vshll.u32 %v7878_v42, 16  ;;  %v728_v21 = vshrl.u32 %v7881_v46, 16  ;;  %v5984_v60 = vld [vmem:[%s7552_s10 + $0xa8] sm:$0xf] }
  0x8f   : > { %v2442_v24 = vor.u32 %v2441_v9, %v2438_v7  ;;  %v2451_v25 = vrot.slane %v2449_v14, 4  ;;  %v731_v26 = vshll.u32 %v7881_v46, 16  ;;  %v737_v38 = vshll.u32 %v7890_v61, 16  ;;  %v7923_v7 = vld [vmem:[%s7552_s10 + $0xac] sm:$0xf] }
  0x90   : > { %v726_v29 = vsel %vm7583_vm4, %v721_v16, %v725_v3  ;;  %v2457_v30 = vrot.slane %v2455_v18, 5  ;;  %v730_v31 = vrot.slane %v728_v21, 4  ;;  %v741_v35 = vshrl.u32 %v7890_v61, 16 }
  0x91   : > { %v5781_v37 = vcombine.low %v716_v15, %v726_v29  ;;  %v2443_v39 = vrot.slane %v2442_v24, 4  ;;  %v2452_v41 = vor.u32 %v2451_v25, %v2447_v12  ;;  %v733_v47 = vrot.slane %v731_v26, 5 }
  0x92   : > { %v739_v53 = vrot.slane %v737_v38, 5  ;;  %v743_v54 = vrot.slane %v741_v35, 4  ;;  %v747_v55 = vshll.u32 %v363_v8, 16  ;;  %v1144_v56 = vsel %vm850_vm0, %v7714_v23, 0  ;;  %v7932_v38 = vld [vmem:[%s7552_s10 + $0xb0] sm:$0x1] }
  0x93   : > { %6597 = vmatprep.mubr.msk.bf16.mxu1 %vm801_vm1, %v5781_v37  ;;  %v2448_v62 = vsel %vm7583_vm4, %v2443_v39, %v2447_v12  ;;  %v2453_v0 = vrot.slane %v2452_v41, 4  ;;  %v734_v2 = vor.u32 %v733_v47, %v730_v31  ;;  %6602 = vmatpush3.bf16.msra.mxu1 %v1144_v56  ;;  %v2460_v3 = vshrl.u32 %v5981_v22, 16 }
  0x94   : > { %v744_v9 = vor.u32 %v743_v54, %v739_v53  ;;  %v749_v14 = vrot.slane %v747_v55, 5  ;;  %v2463_v8 = vshll.u32 %v5981_v22, 16  ;;  %v2469_v23 = vshll.u32 %v7903_v28, 16  ;;  %7133 = vmatprep.subr.msk.bf16.mxu1 %vm850_vm0, %v7911_v51  ;;  %v5987_v22 = vld [vmem:[%s7552_s10 + $0xb4] sm:$0xf] }
  0x95   : > { %v2458_v15 = vsel %vm7583_vm4, %v2453_v0, %v2457_v30  ;;  %v735_v12 = vrot.slane %v734_v2, 4  ;;  %v2462_v16 = vrot.slane %v2460_v3, 4  ;;  %v2473_v18 = vshrl.u32 %v7903_v28, 16 }
  0x96   : > { %v6005_v21 = vcombine.low %v2448_v62, %v2458_v15  ;;  %v745_v24 = vrot.slane %v744_v9, 4  ;;  %v2465_v25 = vrot.slane %v2463_v8, 5  ;;  %v2471_v26 = vrot.slane %v2469_v23, 5  ;;  %v7943_v62 = vld [vmem:[%s7552_s10 + $0xb8] sm:$0xf] }
  0x97   : > { %v740_v29 = vsel %vm7583_vm4, %v735_v12, %v739_v53  ;;  %v2475_v31 = vrot.slane %v2473_v18, 4  ;;  %v2479_v35 = vshll.u32 %v7916_v58, 16  ;;  %v2484_v30 = vshrl.u32 %v5984_v60, 16  ;;  %v7947_v8 = vld [vmem:[%s7552_s10 + $0xbc] sm:$0x1] }
  0x98   : > { %6726 = vmatmul.mubr.msk.bf16.gmra.mrb[20].mxu0 %vm801_vm1, %v6005_v21  ;;  %v750_v37 = vsel %vm7583_vm4, %v745_v24, %v749_v14  ;;  %v2466_v39 = vor.u32 %v2465_v25, %v2462_v16  ;;  %v2487_v41 = vshll.u32 %v5984_v60, 16  ;;  %v2493_v47 = vshll.u32 %v7923_v7, 16  ;;  %v7311_v23 = vld [vmem:[%s7552_s10 + $0xc] sm:$0xf]  ;;  %v7953_v15 = vld [vmem:[%s7552_s10 + $0x10] sm:$0xf] }
  0x99   : > { %v5782_v54 = vcombine.low %v740_v29, %v750_v37  ;;  %v2476_v55 = vor.u32 %v2475_v31, %v2471_v26  ;;  %v2481_v53 = vrot.slane %v2479_v35, 5  ;;  %v2486_v56 = vrot.slane %v2484_v30, 4  ;;  %v5990_v18 = vld [vmem:[%s7552_s10 + $0xc0] sm:$0xf] }
  0x9a   : > { %v2467_v0 = vrot.slane %v2466_v39, 4  ;;  %v2489_v2 = vrot.slane %v2487_v41, 5  ;;  %v2495_v3 = vrot.slane %v2493_v47, 5  ;;  %v2497_v9 = vshrl.u32 %v7923_v7, 16 }
  0x9b   : > { %6598 = vmatmul.mubr.msk.bf16.gmra.mrb[28].mxu1 %vm801_vm1, %v5782_v54  ;;  %v2477_v60 = vrot.slane %v2476_v55, 4  ;;  %v2503_v14 = vshll.u32 %v7932_v38, 16  ;;  %v5800_v12 = vcombine.low %v7311_v23, %v7953_v15  ;;  %v2508_v16 = vshrl.u32 %v5987_v22, 16  ;;  %v7313_v54 = vld [vmem:[%s7552_s10 + $0x18] sm:$0xf] }
  0x9c   : > { %v2472_v21 = vsel %vm7583_vm4, %v2467_v0, %v2471_v26  ;;  %6603 = vmatprep.mubr.msk.bf16.mxu1 %vm801_vm1, %v5799_v48  ;;  %v2490_v24 = vor.u32 %v2489_v2, %v2486_v56  ;;  %v2499_v25 = vrot.slane %v2497_v9, 4  ;;  %v2511_v29 = vshll.u32 %v5987_v22, 16  ;;  %v7973_v55 = vld [vmem:[%s7552_s10 + $0x1c] sm:$0xf]  ;;  %v7977_v56 = vld [vmem:[%s7552_s10 + $0xc8] sm:$0x1] }
  0x9d   : > { %v2482_v31 = vsel %vm7583_vm4, %v2477_v60, %v2481_v53  ;;  %v2505_v35 = vrot.slane %v2503_v14, 5  ;;  %v2510_v30 = vrot.slane %v2508_v16, 4  ;;  %v2517_v37 = vshll.u32 %v7943_v62, 16 }
  0x9e   : > { %v6006_v39 = vcombine.low %v2472_v21, %v2482_v31  ;;  %v2491_v26 = vrot.slane %v2490_v24, 4  ;;  %v2500_v41 = vor.u32 %v2499_v25, %v2495_v3  ;;  %v2513_v47 = vrot.slane %v2511_v29, 5  ;;  %v6026_v24 = vld [vmem:[%s7552_s10 + $0xc] sm:$0xe] }
  0x9f   : > { %v2519_v11 = vrot.slane %v2517_v37, 5  ;;  %v2521_v48 = vshrl.u32 %v7943_v62, 16  ;;  %v2527_v22 = vshll.u32 %v7947_v8, 16  ;;  %v5801_v53 = vcombine.low %v7313_v54, %v7973_v55 }
  0xa0   : > { %6729 = vmatprep.mubr.msk.bf16.mxu0 %vm801_vm1, %v6006_v39  ;;  %v2496_v0 = vsel %vm7583_vm4, %v2491_v26, %v2495_v3  ;;  %v2501_v2 = vrot.slane %v2500_v41, 4  ;;  %v2514_v9 = vor.u32 %v2513_v47, %v2510_v30  ;;  %v2532_v60 = vshrl.u32 %v5990_v18, 16  ;;  %v7315_v47 = vld [vmem:[%s7552_s10 + $0x24] sm:$0xf] }
  0xa1   : > { %v2523_v14 = vrot.slane %v2521_v48, 4  ;;  %v2529_v23 = vrot.slane %v2527_v22, 5  ;;  %v2535_v16 = vshll.u32 %v5990_v18, 16  ;;  %v2541_v21 = vshll.u32 %v7967_v10, 16  ;;  %v7994_v48 = vld [vmem:[%s7552_s10 + $0x28] sm:$0xf] }
  0xa2   : > { %v2506_v25 = vsel %vm7583_vm4, %v2501_v2, %v2505_v35  ;;  %v2515_v29 = vrot.slane %v2514_v9, 4  ;;  %v2534_v31 = vrot.slane %v2532_v60, 4  ;;  %v2545_v37 = vshrl.u32 %v7967_v10, 16  ;;  %v7317_v9 = vld [vmem:[%s7552_s10 + $0x10] sm:$0xf] }
  0xa3   : > { %v6007_v39 = vcombine.low %v2496_v0, %v2506_v25  ;;  %6604 = vmatmul.mubr.msk.bf16.vlgmr.msra.gmra.mrb[0].mxu1 %vm801_vm1, %v5800_v12  ;;  %v2524_v3 = vor.u32 %v2523_v14, %v2519_v11  ;;  %v2537_v30 = vrot.slane %v2535_v16, 5  ;;  %v2543_v26 = vrot.slane %v2541_v21, 5  ;;  %v6027_v14 = vld [vmem:[%s7552_s10 + $0x18] sm:$0xe]  ;;  %v7318_v25 = vld [vmem:[%s7552_s10 + $0x14] sm:$0x1] }
  0xa4   : > { %v2520_v18 = vsel %vm7583_vm4, %v2515_v29, %v2519_v11  ;;  %6607 = vmatprep.mubr.msk.bf16.mxu1 %vm801_vm1, %v5801_v53  ;;  %v2547_v41 = vrot.slane %v2545_v37, 4  ;;  %v2551_v35 = vshll.u32 %v7977_v56, 16  ;;  %v5802_v22 = vcombine.low %v7315_v47, %v7994_v48  ;;  %v8009_v37 = vld [vmem:[%s7552_s10 + $0x34] sm:$0xf] }
  0xa5   : > { %6730 = vmatmul.mubr.msk.bf16.gmra.mrb[24].mxu0 %vm801_vm1, %v6007_v39  ;;  %v2525_v12 = vrot.slane %v2524_v3, 4  ;;  %v2538_v54 = vor.u32 %v2537_v30, %v2534_v31  ;;  %v6042_v2 = vrot.slane %v6026_v24, 9  ;;  %v2915_v60 = vrot.slane %v7317_v9, 5  ;;  %v7319_v31 = vld [vmem:[%s7552_s10 + $0x30] sm:$0xf] }
  0xa6   : > { %v2548_v11 = vor.u32 %v2547_v41, %v2543_v26  ;;  %v2553_v53 = vrot.slane %v2551_v35, 5  ;;  %v2918_v29 = vrot.slane %v7318_v25, 5  ;;  %v5803_v39 = vcombine.low %v7319_v31, %v8009_v37  ;;  %v7324_v31 = vld [vmem:[%s7552_s10 + $0x2c] sm:$0x1] }
  0xa7   : > { %v2530_v16 = vsel %vm7583_vm4, %v2525_v12, %v2529_v23  ;;  %v2539_v21 = vrot.slane %v2538_v54, 4  ;;  %v2916_v24 = vsel %vm7998_vm7, %v6042_v2, %v2915_v60  ;;  %v2917_v41 = vrot.slane %v2915_v60, 4  ;;  %v7321_v23 = vld [vmem:[%s7552_s10 + $0x1c] sm:$0xf]  ;;  %v6028_v12 = vld [vmem:[%s7552_s10 + $0x24] sm:$0xe] }
  0xa8   : > { %v6008_v3 = vcombine.low %v2520_v18, %v2530_v16  ;;  %v2549_v30 = vrot.slane %v2548_v11, 4  ;;  %v2922_v47 = vrot.slane %v7321_v23, 5  ;;  %v6043_v11 = vrot.slane %v6027_v14, 9  ;;  %v7322_v2 = vld [vmem:[%s7552_s10 + $0x20] sm:$0x1] }
  0xa9   : > { %v2544_v35 = vsel %vm7583_vm4, %v2539_v21, %v2543_v26  ;;  %v2919_v18 = vsel %vm7998_vm7, %v2917_v41, %v2918_v29  ;;  %v2925_v9 = vrot.slane %v7322_v2, 5  ;;  %v6044_v21 = vrot.slane %v6028_v12, 9  ;;  %v6029_v14 = vld [vmem:[%s7552_s10 + $0x30] sm:$0xe]  ;;  %v6030_v41 = vld [vmem:[%s7552_s10 + $0x3c] sm:$0xe] }
  0xaa   : > { %6733 = vmatprep.mubr.msk.bf16.mxu0 %vm801_vm1, %v6008_v3  ;;  %v2554_v54 = vsel %vm7583_vm4, %v2549_v30, %v2553_v53  ;;  %v6059_v26 = vcombine.low %v2916_v24, %v2919_v18  ;;  %v2924_v16 = vrot.slane %v2922_v47, 4  ;;  %v7323_v53 = vld [vmem:[%s7552_s10 + $0x28] sm:$0xf]  ;;  %v2932_v29 = vrot.slane %v7324_v31, 5  ;;  %v7325_v3 = vld [vmem:[%s7552_s10 + $0x34] sm:$0xf] }
  0xab   : > { %v6009_v60 = vcombine.low %v2544_v35, %v2554_v54  ;;  %6608 = vmatmul.mubr.msk.bf16.gmra.mrb[4].mxu1 %vm801_vm1, %v5802_v22  ;;  %v2929_v25 = vrot.slane %v7323_v53, 5  ;;  %v2936_v22 = vrot.slane %v7325_v3, 5  ;;  %v2923_v30 = vsel %vm7998_vm7, %v6043_v11, %v2922_v47  ;;  %v7326_v35 = vld [vmem:[%s7552_s10 + $0x3c] sm:$0xf]  ;;  %v8039_v23 = vld [vmem:[%s7552_s10 + $0x40] sm:$0xf] }
  0xac   : > { %6611 = vmatprep.mubr.msk.bf16.mxu1 %vm801_vm1, %v5803_v39  ;;  %v2926_v39 = vsel %vm7998_vm7, %v2924_v16, %v2925_v9  ;;  %9604 = vst [vmem:[#allocation7_spill] sm:$0xff] %v8039_v23  ;;  %v5804_v12 = vcombine.low %v7326_v35, %v8039_v23  ;;  %v7328_v18 = vld [vmem:[%s7552_s10 + $0x48] sm:$0xf]  ;;  %v8046_v2 = vld [vmem:[%s7552_s10 + $0x4c] sm:$0xf]  ;;  %v6046_v35 = vrot.slane %v6030_v41, 9 }
  0xad   : > { %6734 = vmatmul.mubr.msk.bf16.gmra.mrb[28].mxu0 %vm801_vm1, %v6009_v60  ;;  %v2931_v24 = vrot.slane %v2929_v25, 4  ;;  %v2930_v54 = vsel %vm7998_vm7, %v6044_v21, %v2929_v25  ;;  %v5805_v47 = vcombine.low %v7328_v18, %v8046_v2  ;;  %v7330_v11 = vld [vmem:[%s7552_s10 + $0x40] sm:$0xf]  ;;  %v2938_v16 = vrot.slane %v2936_v22, 4  ;;  %v7331_v53 = vld [vmem:[%s7552_s10 + $0x38] sm:$0x1] }
  0xae   : > { %6739 = vmatprep.mubr.msk.bf16.mxu0 %vm801_vm1, %v6059_v26  ;;  %v2943_v60 = vrot.slane %v7330_v11, 5  ;;  %v6045_v26 = vrot.slane %v6029_v14, 9  ;;  %v2939_v31 = vrot.slane %v7331_v53, 5  ;;  %v6060_v3 = vcombine.low %v2923_v30, %v2926_v39  ;;  %v7332_v21 = vld [vmem:[%s7552_s10 + $0x44] sm:$0x1] }
  0xaf   : > { %v2933_v9 = vsel %vm7998_vm7, %v2931_v24, %v2932_v29  ;;  %v2946_v25 = vrot.slane %v7332_v21, 5  ;;  %v2950_v18 = vrot.slane %v7694_v45, 5  ;;  %v3483_v11 = vsel %vm850_vm0, %v7757_v17, 0  ;;  %v6032_v29 = vld [vmem:[%s7552_s10 + $0x54] sm:$0xe] }
  0xb0   : > { %v2945_v33 = vrot.slane %v2943_v60, 4  ;;  %v6061_v23 = vcombine.low %v2930_v54, %v2933_v9  ;;  %v2937_v14 = vsel %vm7998_vm7, %v6045_v26, %v2936_v22  ;;  %v2940_v30 = vsel %vm7998_vm7, %v2938_v16, %v2939_v31  ;;  %v8069_v17 = vld [vmem:[%s9572_s1 + $0xe] sm:$0x3]  ;;  %v7333_v41 = vld [vmem:[%s7552_s10 + $0x50] sm:$0x1] }
  0xb1   : > { %v6047_v39 = vrot.slane %v6031_v1, 9  ;;  %v2957_v45 = vrot.slane %v7719_v27, 5  ;;  %v2944_v24 = vsel %vm7998_vm7, %v6046_v35, %v2943_v60  ;;  %v2952_v1 = vrot.slane %v2950_v18, 4  ;;  %v7334_v54 = vld [vmem:[%s7552_s10 + $0x54] sm:$0xf] }
  0xb2   : > { %v2947_v22 = vsel %vm7998_vm7, %v2945_v33, %v2946_v25  ;;  %v2953_v27 = vrot.slane %v7333_v41, 5  ;;  %v6048_v60 = vrot.slane %v6032_v29, 9  ;;  %v6035_v26 = vld [vmem:[%s7552_s10 + $0x78] sm:$0xe]  ;;  %v6062_v33 = vcombine.low %v2937_v14, %v2940_v30  ;;  %v7336_v16 = vld [vmem:[%s7552_s10 + $0x60] sm:$0xf] }
  0xb3   : > { %6612 = vmatmul.mubr.msk.bf16.gmra.mrb[8].mxu1 %vm801_vm1, %v5804_v12  ;;  %v8078_v12 = vld [vmem:[%s7552_s10 + $0x60] sm:$0xe]  ;;  %v8089_v53 = vld [vmem:[%s7552_s10 + $0x64] sm:$0xf]  ;;  %v8094_v35 = vld [vmem:[%s7552_s10 + $0x70] sm:$0xf]  ;;  %v6063_v25 = vcombine.low %v2944_v24, %v2947_v22  ;;  %v5809_v14 = vcombine.low %v7734_v43, %v7737_v50 }
  0xb4   : > { %6615 = vmatprep.mubr.msk.bf16.mxu1 %vm801_vm1, %v5805_v47  ;;  %v8083_v47 = vld [vmem:[%s7552_s10 + $0x58] sm:$0xf]  ;;  %v5807_v31 = vcombine.low %v7336_v16, %v8089_v53  ;;  %v2960_v21 = vrot.slane %v7726_v36, 5  ;;  %v2959_v29 = vrot.slane %v2957_v45, 4  ;;  %v8107_v30 = vld [vmem:[%s7552_s10 + $0x6c] sm:$0xe] }
  0xb5   : > { %6740 = vmatmul.mubr.msk.bf16.vlgmr.msra.gmra.mrb[0].mxu0 %vm801_vm1, %v6060_v3  ;;  %v5806_v9 = vcombine.low %v7334_v54, %v8083_v47  ;;  %v7338_v3 = vld [vmem:[%s7552_s10 + $0x6c] sm:$0xf]  ;;  %v6036_v41 = vld [vmem:[%s7552_s10 + $0x84] sm:$0xe]  ;;  %v2954_v54 = vsel %vm7998_vm7, %v2952_v1, %v2953_v27  ;;  %v6051_v36 = vrot.slane %v6035_v26, 9  ;;  %v2978_v16 = vrot.slane %v7812_v44, 5 }
  0xb6   : > { %6772 = vmatpush3.bf16.msra.mxu0 %v3483_v11  ;;  %6743 = vmatprep.mubr.msk.bf16.mxu0 %vm801_vm1, %v6061_v23  ;;  %v5808_v23 = vcombine.low %v7338_v3, %v8094_v35  ;;  %v8102_v11 = vsel %vm7998_vm7, %v6047_v39, %v2950_v18  ;;  %v2981_v3 = vrot.slane %v7816_v52, 5  ;;  %v6037_v24 = vld [vmem:[%s7552_s10 + $0x90] sm:$0xe]  ;;  %v2958_v18 = vsel %vm7998_vm7, %v6048_v60, %v2957_v45  ;;  %v6038_v50 = vld [vmem:[%s7552_s10 + $0x9c] sm:$0xe] }
  0xb7   : > { %7139 = vmatprep.subr.msk.bf16.mxu0 %vm850_vm0, %v8069_v17  ;;  %v6049_v39 = vrot.slane %v8078_v12, 9  ;;  %v2964_v22 = vrot.slane %v7752_v6, 5  ;;  %v2967_v43 = vrot.slane %v7765_v20, 5  ;;  %v8124_v1 = vsel %vm7998_vm7, %v6051_v36, %v2978_v16 }
  0xb8   : > { %v2980_v44 = vrot.slane %v2978_v16, 4  ;;  %v6052_v52 = vrot.slane %v6036_v41, 9  ;;  %v2985_v27 = vrot.slane %v7841_v32, 5  ;;  %v6064_v45 = vcombine.low %v8102_v11, %v2954_v54 }
  0xb9   : > { %v6050_v6 = vrot.slane %v8107_v30, 9  ;;  %v2988_v20 = vrot.slane %v7847_v40, 5  ;;  %v6053_v12 = vrot.slane %v6037_v24, 9  ;;  %v2971_v40 = vrot.slane %v7782_v59, 5 }
  0xba   : > { %v8136_v60 = vsel %vm7998_vm7, %v2980_v44, %v2981_v3  ;;  %v8140_v32 = vsel %vm7998_vm7, %v6052_v52, %v2985_v27  ;;  %v2987_v26 = vrot.slane %v2985_v27, 4  ;;  %v2992_v11 = vrot.slane %v7875_v34, 5 }
  0xbb   : > { %6616 = vmatmul.mubr.msk.bf16.gmra.mrb[12].mxu1 %vm801_vm1, %v5806_v9  ;;  %v2961_v9 = vsel %vm7998_vm7, %v2959_v29, %v2960_v21  ;;  %v2995_v21 = vrot.slane %v7878_v42, 5  ;;  %v1569_v30 = vsel %vm850_vm0, %v7911_v51, 0  ;;  %v6054_v41 = vrot.slane %v6038_v50, 9 }
  0xbc   : > { %6619 = vmatprep.mubr.msk.bf16.mxu1 %vm801_vm1, %v5807_v31  ;;  %v6039_v31 = vld [vmem:[%s7552_s10 + $0xa8] sm:$0xe]  ;;  %v8151_v29 = vsel %vm7998_vm7, %v2987_v26, %v2988_v20  ;;  %v2999_v54 = vrot.slane %v7903_v28, 5  ;;  %v2994_v34 = vrot.slane %v2992_v11, 4  ;;  %6636 = vmatpush3.bf16.msra.mxu1 %v1569_v30  ;;  %v3002_v42 = vrot.slane %v7916_v58, 5 }
  0xbd   : > { %6744 = vmatmul.mubr.msk.bf16.gmra.mrb[4].mxu0 %vm801_vm1, %v6062_v33  ;;  %v6068_v33 = vcombine.low %v8124_v1, %v8136_v60  ;;  %v6069_v59 = vcombine.low %v8140_v32, %v8151_v29  ;;  %v6065_v36 = vcombine.low %v2958_v18, %v2961_v9  ;;  %v2966_v16 = vrot.slane %v2964_v22, 4  ;;  %v7340_v28 = vld [vmem:[%s9572_s1 + $0x6] sm:$0x3]  ;;  %v6041_v9 = vld [vmem:[%s7552_s10 + $0xc0] sm:$0xe] }
  0xbe   : > { %6747 = vmatprep.mubr.msk.bf16.mxu0 %vm801_vm1, %v6063_v25  ;;  %v8160_v25 = vsel %vm7998_vm7, %v6053_v12, %v2992_v11  ;;  %v8165_v3 = vsel %vm7998_vm7, %v6054_v41, %v2999_v54  ;;  %v3001_v51 = vrot.slane %v2999_v54, 4  ;;  %7135 = vmatprep.subr.msk.bf16.mxu1 %vm850_vm0, %v7340_v28  ;;  %v8173_v24 = vsel %vm7998_vm7, %v2994_v34, %v2995_v21  ;;  %v7341_v26 = vld [vmem:[%s7552_s10 + $0x84] sm:$0xf] }
  0xbf   : > { %v6055_v50 = vrot.slane %v6039_v31, 9  ;;  %v3006_v58 = vrot.slane %v7923_v7, 5  ;;  %v3009_v18 = vrot.slane %v7932_v38, 5  ;;  %v2973_v44 = vrot.slane %v2971_v40, 4  ;;  %v8205_v31 = vld [vmem:[%s7552_s10 + $0x88] sm:$0xf] }
  0xc0   : > { %v2974_v52 = vrot.slane %v7788_v4, 5  ;;  %v6070_v27 = vcombine.low %v8160_v25, %v8173_v24  ;;  %v8183_v20 = vsel %vm7998_vm7, %v3001_v51, %v3002_v42  ;;  %v2965_v4 = vsel %vm7998_vm7, %v6049_v39, %v2964_v22  ;;  %v7344_v51 = vld [vmem:[%s7552_s10 + $0x8] sm:$0x1] }
  0xc1   : > { %v6071_v7 = vcombine.low %v8165_v3, %v8183_v20  ;;  %v8190_v38 = vsel %vm7998_vm7, %v6055_v50, %v3006_v58  ;;  %v2968_v12 = vsel %vm7998_vm7, %v2966_v16, %v2967_v43  ;;  %v5810_v11 = vcombine.low %v7341_v26, %v8205_v31  ;;  %v7346_v26 = vld [vmem:[%s7552_s10 + $0x20] sm:$0x1]  ;;  %v7348_v3 = vld [vmem:[%s7552_s10 + $0x38] sm:$0x1] }
  0xc2   : > { %v2975_v39 = vsel %vm7998_vm7, %v2973_v44, %v2974_v52  ;;  %v5811_v43 = vcombine.low %v7792_v13, %v7798_v19  ;;  %v6066_v21 = vcombine.low %v2965_v4, %v2968_v12  ;;  %v6057_v30 = vrot.slane %v6041_v9, 9  ;;  %v7343_v13 = vld [vmem:[%s7552_s10 + $0x4] sm:$0xf]  ;;  %v1309_v44 = vld [vmem:[%s7552_s10 + $0x18] sm:$0xe] }
  0xc3   : > { %6620 = vmatmul.mubr.msk.bf16.gmra.mrb[16].mxu1 %vm801_vm1, %v5808_v23  ;;  %v3008_v23 = vrot.slane %v3006_v58, 4  ;;  %v3020_v41 = vrot.slane %v7967_v10, 5  ;;  %v3023_v54 = vrot.slane %v7977_v56, 5  ;;  %v1360_v19 = vrot.slane %v7343_v13, 5  ;;  %v1307_v56 = vld [vmem:[%s7552_s10] sm:$0xe] }
  0xc4   : > { %6623 = vmatprep.mubr.msk.bf16.mxu1 %vm801_vm1, %v5809_v14  ;;  %v5813_v16 = vcombine.low %v7852_v49, %v7860_v5  ;;  %v1363_v28 = vrot.slane %v7344_v51, 5  ;;  %v5831_v50 = vrot.slane %v1307_v56, 9  ;;  %v1308_v49 = vld [vmem:[%s7552_s10 + $0xc] sm:$0xe]  ;;  %v1374_v5 = vrot.slane %v7973_v55, 5  ;;  %v9606_v51 = vld [vmem:[#allocation5_spill] sm:$0xff] }
  0xc5   : > { %6748 = vmatmul.mubr.msk.bf16.gmra.mrb[8].mxu0 %vm801_vm1, %v6064_v45  ;;  %v8200_v14 = vsel %vm7998_vm7, %v3008_v23, %v3009_v18  ;;  %v2972_v45 = vsel %vm7998_vm7, %v6050_v6, %v2971_v40  ;;  %v8221_v6 = vsel %vm7998_vm7, %v6057_v30, %v3020_v41  ;;  %v3022_v40 = vrot.slane %v3020_v41, 4  ;;  %v1312_v56 = vld [vmem:[%s7552_s10 + $0x3c] sm:$0xe] }
  0xc6   : > { %6751 = vmatprep.mubr.msk.bf16.mxu0 %vm801_vm1, %v6065_v36  ;;  %v6072_v22 = vcombine.low %v8190_v38, %v8200_v14  ;;  %v6067_v34 = vcombine.low %v2972_v45, %v2975_v39  ;;  %v5812_v36 = vcombine.low %v7822_v57, %v7826_v63  ;;  %v1362_v58 = vrot.slane %v1360_v19, 4  ;;  %v1310_v39 = vld [vmem:[%s7552_s10 + $0x24] sm:$0xe] }
  0xc7   : > { %v8228_v10 = vsel %vm7998_vm7, %v3022_v40, %v3023_v54  ;;  %v1367_v18 = vrot.slane %v7953_v15, 5  ;;  %v1361_v57 = vsel %vm7998_vm7, %v5831_v50, %v1360_v19  ;;  %v6040_v15 = vld [vmem:[%s7552_s10 + $0xb4] sm:$0xe]  ;;  %v5814_v1 = vcombine.low %v7881_v46, %v7890_v61  ;;  %v7347_v54 = vld [vmem:[%s7552_s10 + $0x2c] sm:$0x1] }
  0xc8   : > { %v6074_v42 = vcombine.low %v8221_v6, %v8228_v10  ;;  %v1364_v63 = vsel %vm7998_vm7, %v1362_v58, %v1363_v28  ;;  %v3013_v60 = vrot.slane %v7943_v62, 5  ;;  %v5832_v4 = vrot.slane %v1308_v49, 9  ;;  %v1313_v58 = vld [vmem:[%s7552_s10 + $0x48] sm:$0xe]  ;;  %v7205_v49 = vld [vmem:[%s7552_s10 + $0x18] sm:$0xff]  }
  0xc9   : > { %v5848_v23 = vcombine.low %v1361_v57, %v1364_v63  ;;  %v1369_v12 = vrot.slane %v1367_v18, 4  ;;  %v5833_v9 = vrot.slane %v1309_v44, 9  ;;  %v1376_v55 = vrot.slane %v1374_v5, 4  ;;  %v7352_v10 = vld [vmem:[%s7552_s10 + $0x68] sm:$0x1] }
  0xca   : > { %v1377_v32 = vrot.slane %v7346_v26, 5  ;;  %v6056_v29 = vrot.slane %v6040_v15, 9  ;;  %v1368_v46 = vsel %vm7998_vm7, %v5832_v4, %v1367_v18  ;;  %v1381_v62 = vrot.slane %v7994_v48, 5  ;;  %v1311_v48 = vld [vmem:[%s7552_s10 + $0x30] sm:$0xe] }
  0xcb   : > { %6624 = vmatmul.mubr.msk.bf16.gmra.mrb[20].mxu1 %vm801_vm1, %v5810_v11  ;;  %v3016_v11 = vrot.slane %v7947_v8, 5  ;;  %v1375_v45 = vsel %vm7998_vm7, %v5833_v9, %v1374_v5  ;;  %v5834_v30 = vrot.slane %v1310_v39, 9  ;;  %v1391_v20 = vrot.slane %v7348_v3, 5  ;;  %v1316_v9 = vld [vmem:[%s7552_s10 + $0x6c] sm:$0xe] }
  0xcc   : > { %6627 = vmatprep.mubr.msk.bf16.mxu1 %vm801_vm1, %v5811_v43  ;;  %v1378_v8 = vsel %vm7998_vm7, %v1376_v55, %v1377_v32  ;;  %v1388_v43 = vrot.slane %v8009_v37, 5  ;;  %v3014_v25 = vsel %vm7998_vm7, %v6056_v29, %v3013_v60  ;;  %v1383_v41 = vrot.slane %v1381_v62, 4  ;;  %v7351_v32 = vld [vmem:[%s7552_s10 + $0x5c] sm:$0x1] }
  0xcd   : > { %6752 = vmatmul.mubr.msk.bf16.gmra.mrb[12].mxu0 %vm801_vm1, %v6066_v21  ;;  %v5835_v37 = vrot.slane %v1311_v48, 9  ;;  %v1382_v13 = vsel %vm7998_vm7, %v5834_v30, %v1381_v62  ;;  %v1402_v18 = vrot.slane %v8046_v2, 5  ;;  %v5836_v63 = vrot.slane %v1312_v56, 9  ;;  %v7354_v48 = vld [vmem:[%s7552_s10 + $0x74] sm:$0x1] }
  0xce   : > { %6755 = vmatprep.mubr.msk.bf16.mxu0 %vm801_vm1, %v6067_v34  ;;  %v1384_v34 = vrot.slane %v7347_v54, 5  ;;  %v1390_v40 = vrot.slane %v1388_v43, 4  ;;  %v5837_v15 = vrot.slane %v1313_v58, 9  ;;  %v1409_v2 = vrot.slane %v8083_v47, 5  ;;  %v7207_v30 = vld [vmem:[%s7552_s10 + $0x30] sm:$0xff]  }
  0xcf   : > { %v1389_v28 = vsel %vm7998_vm7, %v5835_v37, %v1388_v43  ;;  %v1404_v44 = vrot.slane %v1402_v18, 4  ;;  %v1423_v55 = vrot.slane %v8094_v35, 5  ;;  %v1412_v29 = vrot.slane %v7351_v32, 5  ;;  %v6156_v58 = vld [vmem:[%s7552_s10 + $0x18] sm:$0xf] }
  0xd0   : > { %v1385_v19 = vsel %vm7998_vm7, %v1383_v41, %v1384_v34  ;;  %v1392_v50 = vsel %vm7998_vm7, %v1390_v40, %v1391_v20  ;;  %v1403_v47 = vsel %vm7998_vm7, %v5837_v15, %v1402_v18  ;;  %v1411_v35 = vrot.slane %v1409_v2, 4  ;;  %v7355_v40 = vld [vmem:[%s7552_s10 + $0x80] sm:$0x1] }
  0xd1   : > { %v5851_v57 = vcombine.low %v1382_v13, %v1385_v19  ;;  %v5852_v38 = vcombine.low %v1389_v28, %v1392_v50  ;;  %v5840_v62 = vrot.slane %v1316_v9, 9  ;;  %v1425_v43 = vrot.slane %v1423_v55, 4  ;;  %v7357_v28 = vld [vmem:[%s7552_s10 + $0x94] sm:$0xf] }
  0xd2   : > { %v1413_v54 = vsel %vm7998_vm7, %v1411_v35, %v1412_v29  ;;  %v1433_v3 = vrot.slane %v7355_v40, 5  ;;  %v1444_v50 = vrot.slane %v7357_v28, 5  ;;  %v3730_v9 = vshll.u32 %v6156_v58, 16  ;;  %v7361_v40 = vld [vmem:[%s7552_s10 + $0xac] sm:$0xf] }
  0xd3   : > { %6628 = vmatmul.mubr.msk.bf16.gmra.mrb[24].mxu1 %vm801_vm1, %v5812_v36  ;;  %v9605_v36 = vld [vmem:[#allocation7_spill] sm:$0xff] }
  0xd4   : > { %6631 = vmatprep.mubr.msk.bf16.mxu1 %vm801_vm1, %v5813_v16  ;;  %v1395_v16 = vrot.slane %v9605_v36, 5  ;;  %v1322_v28 = vld [vmem:[%s7552_s10 + $0xb4] sm:$0xe] }
  0xd5   : > { %6756 = vmatmul.mubr.msk.bf16.gmra.mrb[16].mxu0 %vm801_vm1, %v6068_v33  ;;  %v7345_v33 = vld [vmem:[%s7552_s10 + $0x14] sm:$0x1] }
  0xd6   : > { %6759 = vmatprep.mubr.msk.bf16.mxu0 %vm801_vm1, %v6069_v59  ;;  %v1370_v52 = vrot.slane %v7345_v33, 5  ;;  %v3015_v59 = vrot.slane %v3013_v60, 4  ;;  %v1397_v14 = vrot.slane %v1395_v16, 4  ;;  %v1314_v33 = vld [vmem:[%s7552_s10 + $0x54] sm:$0xe]  ;;  %v1396_v4 = vsel %vm7998_vm7, %v5836_v63, %v1395_v16 }
  0xd7   : > { %v5838_v26 = vrot.slane %v1314_v33, 9  ;;  %v7356_v16 = vld [vmem:[%s7552_s10 + $0x8c] sm:$0x1]  ;;  %v1320_v63 = vld [vmem:[%s7552_s10 + $0x9c] sm:$0xe] }
  0xd8   : > { %v1371_v61 = vsel %vm7998_vm7, %v1369_v12, %v1370_v52  ;;  %v3017_v24 = vsel %vm7998_vm7, %v3015_v59, %v3016_v11  ;;  %v1416_v52 = vrot.slane %v8089_v53, 5  ;;  %v1317_v59 = vld [vmem:[%s7552_s10 + $0x78] sm:$0xe] }
  0xd9   : > { %v5849_v21 = vcombine.low %v1368_v46, %v1371_v61  ;;  %v1318_v46 = vld [vmem:[%s7552_s10 + $0x84] sm:$0xe]  ;;  %v1410_v41 = vsel %vm7998_vm7, %v5838_v26, %v1409_v2  ;;  %v5841_v37 = vrot.slane %v1317_v59, 9  ;;  %v1446_v2 = vrot.slane %v1444_v50, 4 }
  0xda   : > { %v1418_v6 = vrot.slane %v1416_v52, 4  ;;  %v5842_v19 = vrot.slane %v1318_v46, 9  ;;  %v5855_v18 = vcombine.low %v1410_v41, %v1413_v54 }
  0xdb   : > { %6632 = vmatmul.mubr.msk.bf16.gmra.mrb[28].mxu1 %vm801_vm1, %v5814_v1  ;;  %v7350_v1 = vld [vmem:[%s7552_s10 + $0x50] sm:$0x1] }
  0xdc   : > { %6637 = vmatprep.mubr.msk.bf16.mxu1 %vm801_vm1, %v5848_v23  ;;  %v1405_v60 = vrot.slane %v7350_v1, 5  ;;  %v1315_v23 = vld [vmem:[%s7552_s10 + $0x60] sm:$0xe]  ;;  %v6160_v1 = vld [vmem:[%s7552_s10 + $0x28] sm:$0xf] }
  0xdd   : > { %6760 = vmatmul.mubr.msk.bf16.gmra.mrb[20].mxu0 %vm801_vm1, %v6070_v27  ;;  %v5850_v27 = vcombine.low %v1375_v45, %v1378_v8  ;;  %v5839_v11 = vrot.slane %v1315_v23, 9  ;;  %v7353_v45 = vld [vmem:[%s7552_s10 + $0x7c] sm:$0xf]  ;;  %v3760_v29 = vshll.u32 %v6160_v1, 16  ;;  %v3764_v59 = vshrl.u32 %v6160_v1, 16 }
  0xde   : > { %6763 = vmatprep.mubr.msk.bf16.mxu0 %vm801_vm1, %v6071_v7  ;;  %v6073_v7 = vcombine.low %v3014_v25, %v3017_v24  ;;  %v1406_v53 = vsel %vm7998_vm7, %v1404_v44, %v1405_v60  ;;  %v1430_v8 = vrot.slane %v7353_v45, 5  ;;  %v1437_v25 = vrot.slane %v8205_v31, 5  ;;  %v7206_v24 = vld [vmem:[%s7552_s10 + $0x24] sm:$0xff]   ;;  %v1319_v31 = vld [vmem:[%s7552_s10 + $0x90] sm:$0xe] }
  0xdf   : > { %v5854_v39 = vcombine.low %v1403_v47, %v1406_v53  ;;  %v1417_v34 = vsel %vm7998_vm7, %v5839_v11, %v1416_v52  ;;  %v5843_v44 = vrot.slane %v1319_v31, 9  ;;  %v7358_v52 = vld [vmem:[%s7552_s10 + $0x98] sm:$0x1]  ;;  %v7209_v53 = vld [vmem:[%s7552_s10 + $0x48] sm:$0xff]   ;;  %v8438_v54 = vrot.slane %v3760_v29, 5 }
  0xe0   : > { %v1432_v13 = vrot.slane %v1430_v8, 4  ;;  %v1439_v36 = vrot.slane %v1437_v25, 4  ;;  %v8396_v60 = vsel %vm7998_vm7, %v5842_v19, %v1437_v25  ;;  %v1447_v23 = vrot.slane %v7358_v52, 5  ;;  %v8444_v31 = vld [vmem:[%s7552_s10 + $0x34] sm:$0xf] }
  0xe1   : > { %v8412_v11 = vsel %vm7998_vm7, %v5843_v44, %v1444_v50  ;;  %v7363_v50 = vld [vmem:[%s7552_s10 + $0xb8] sm:$0xf]  ;;  %v3784_v1 = vshll.u32 %v8444_v31, 16 }
  0xe2   : > { %v8389_v15 = vsel %vm7998_vm7, %v1432_v13, %v1433_v3  ;;  %v1458_v3 = vrot.slane %v7361_v40, 5 }
  0xe3   : > { %6638 = vmatmul.mubr.msk.bf16.vlgmr.msra.gmra.mrb[0].mxu1 %vm801_vm1, %v5849_v21  ;;  %v1426_v21 = vrot.slane %v7354_v48, 5 }
  0xe4   : > { %6641 = vmatprep.mubr.msk.bf16.mxu1 %vm801_vm1, %v5850_v27  ;;  %6874 = vmatpush3.bf16.msra.mxu1 %v9606_v51  ;;  %v4209_v27 = vsel %vm850_vm0, %v8069_v17, 0  ;;  %v8358_v17 = vld [vmem:[%s9572_s1 + $0x10] sm:$0x3]  ;;  %v1440_v51 = vrot.slane %v7356_v16, 5  ;;  %v1460_v52 = vrot.slane %v1458_v3, 4 }
  0xe5   : > { %6764 = vmatmul.mubr.msk.bf16.gmra.mrb[24].mxu0 %vm801_vm1, %v6072_v22  ;;  %v7349_v22 = vld [vmem:[%s7552_s10 + $0x44] sm:$0x1]  ;;  %v8370_v56 = vsel %vm7998_vm7, %v1425_v43, %v1426_v21  ;;  %v8430_v43 = vld [vmem:[%s7552_s10 + $0x20] sm:$0x1]  ;;  %v3732_v21 = vrot.slane %v3730_v9, 5 }
  0xe6   : > { %6767 = vmatprep.mubr.msk.bf16.mxu0 %vm801_vm1, %v6073_v7  ;;  %v1398_v5 = vrot.slane %v7349_v22, 5  ;;  %v8365_v7 = vsel %vm7998_vm7, %v5840_v62, %v1423_v55  ;;  %v8400_v33 = vsel %vm7998_vm7, %v1439_v36, %v1440_v51  ;;  %v8423_v62 = vld [vmem:[%s7552_s10 + $0xa4] sm:$0x1]  ;;  %v7362_v16 = vld [vmem:[%s7552_s10 + $0xb0] sm:$0x1] }
  0xe7   : > { %v5857_v22 = vcombine.low %v8365_v7, %v8370_v56  ;;  %v5859_v46 = vcombine.low %v8396_v60, %v8400_v33  ;;  %v1454_v45 = vrot.slane %v8423_v62, 5  ;;  %v1461_v51 = vrot.slane %v7362_v16, 5  ;;  %v7213_v16 = vld [vmem:[%s7552_s10 + $0x78] sm:$0xff]   ;;  %v8532_v33 = vld [vmem:[%s7552_s10 + $0x4c] sm:$0xf] }
  0xe8   : > { %v1399_v12 = vsel %vm7998_vm7, %v1397_v14, %v1398_v5  ;;  %v7208_v14 = vld [vmem:[%s7552_s10 + $0x3c] sm:$0xff]   ;;  %v8385_v5 = vsel %vm7998_vm7, %v5841_v37, %v1430_v8 }
  0xe9   : > { %v5853_v61 = vcombine.low %v1396_v4, %v1399_v12  ;;  %v8404_v4 = vld [vmem:[%s7552_s10 + $0xa8] sm:$0xe]  ;;  %v3727_v12 = vshrl.u32 %v6156_v58, 16  ;;  %v5858_v35 = vcombine.low %v8385_v5, %v8389_v15  ;;  %v1465_v58 = vrot.slane %v7363_v50, 5  ;;  %v7211_v5 = vld [vmem:[%s7552_s10 + $0x60] sm:$0xff]  }
  0xea   : > { %v5845_v8 = vrot.slane %v8404_v4, 9 }
  0xeb   : > { %6642 = vmatmul.mubr.msk.bf16.gmra.mrb[4].mxu1 %vm801_vm1, %v5851_v57  ;;  %v3729_v48 = vrot.slane %v3727_v12, 4  ;;  %v1467_v9 = vrot.slane %v1465_v58, 4 }
  0xec   : > { %6645 = vmatprep.mubr.msk.bf16.mxu1 %vm801_vm1, %v5852_v38  ;;  %v6159_v38 = vld [vmem:[%s7552_s10 + $0x24] sm:$0xf] }
  0xed   : > { %6768 = vmatmul.mubr.msk.bf16.gmra.mrb[28].mxu0 %vm801_vm1, %v6074_v42  ;;  %v1419_v42 = vrot.slane %v7352_v10, 5  ;;  %v3751_v26 = vshrl.u32 %v6159_v38, 16  ;;  %v3754_v32 = vshll.u32 %v6159_v38, 16  ;;  %v7359_v10 = vld [vmem:[%s7552_s10 + $0xa0] sm:$0xf] }
  0xee   : > { %6773 = vmatprep.mubr.msk.bf16.mxu0 %vm801_vm1, %v7205_v49  ;;  %v6157_v49 = vld [vmem:[%s7552_s10 + $0x1c] sm:$0xf] }
  0xef   : > { %v1420_v20 = vsel %vm7998_vm7, %v1418_v6, %v1419_v42  ;;  %v3736_v55 = vshll.u32 %v6157_v49, 16  ;;  %v3740_v47 = vshrl.u32 %v6157_v49, 16  ;;  %v5844_v6 = vrot.slane %v1320_v63, 9 }
  0xf0   : > { %v5856_v57 = vcombine.low %v1417_v34, %v1420_v20  ;;  %v1451_v42 = vrot.slane %v7359_v10, 5  ;;  %v3756_v41 = vrot.slane %v3754_v32, 5  ;;  %v3766_v34 = vrot.slane %v3764_v59, 4 }
  0xf1   : > { %v8432_v25 = vrot.slane %v3736_v55, 5  ;;  %v3746_v49 = vshll.u32 %v8430_v43, 16  ;;  %v7364_v55 = vld [vmem:[%s7552_s10 + $0xbc] sm:$0x1]  ;;  %v8476_v10 = vrot.slane %v3784_v1, 5 }
  0xf2   : > { %v8448_v19 = vsel %vm7998_vm7, %v5844_v6, %v1451_v42  ;;  %v1453_v36 = vrot.slane %v1451_v42, 4  ;;  %v3767_v44 = vor.u32 %v3766_v34, %v8438_v54 }
  0xf3   : > { %6646 = vmatmul.mubr.msk.bf16.gmra.mrb[8].mxu1 %vm801_vm1, %v5853_v61  ;;  %v8420_v61 = vsel %vm7998_vm7, %v1446_v2, %v1447_v23  ;;  %v3788_v2 = vshrl.u32 %v8444_v31, 16  ;;  %v5846_v23 = vrot.slane %v1322_v28, 9  ;;  %v3748_v56 = vrot.slane %v3746_v49, 5 }
  0xf4   : > { %6649 = vmatprep.mubr.msk.bf16.mxu1 %vm801_vm1, %v5854_v39  ;;  %v6162_v39 = vld [vmem:[%s7552_s10 + $0x30] sm:$0xf]  ;;  %v5860_v37 = vcombine.low %v8412_v11, %v8420_v61  ;;  %v3768_v6 = vrot.slane %v3767_v44, 4  ;;  %v8543_v61 = vsel %vm850_vm0, %v8358_v17, 0 }
  0xf5   : > { %6774 = vmatmul.mubr.msk.bf16.vlgmr.msra.gmra.mrb[0].mxu0 %vm801_vm1, %v7206_v24  ;;  %v3742_v24 = vrot.slane %v3740_v47, 4  ;;  %v3775_v20 = vshrl.u32 %v6162_v39, 16  ;;  %v3778_v13 = vshll.u32 %v6162_v39, 16  ;;  %v1468_v47 = vrot.slane %v7364_v55, 5 }
  0xf6   : > { %6806 = vmatpush3.bf16.msra.mxu0 %v4209_v27  ;;  %6777 = vmatprep.mubr.msk.bf16.mxu0 %vm801_vm1, %v7207_v30  ;;  %v8436_v27 = vld [vmem:[%s7552_s10 + $0x2c] sm:$0x1]  ;;  %v3753_v30 = vrot.slane %v3751_v26, 4  ;;  %v3790_v42 = vrot.slane %v3788_v2, 4  ;;  %v8480_v39 = vsel %vm7998_vm7, %v5845_v8, %v1458_v3  ;;  %v8496_v3 = vsel %vm7998_vm7, %v5846_v23, %v1465_v58  ;;  %v8558_v2 = vld [vmem:[%s7552_s10 + $0x58] sm:$0xf] }
  0xf7   : > { %7140 = vmatprep.subr.msk.bf16.mxu0 %vm850_vm0, %v8358_v17  ;;  %v3743_v63 = vor.u32 %v3742_v24, %v8432_v25  ;;  %v3770_v38 = vshll.u32 %v8436_v27, 16  ;;  %v3777_v4 = vrot.slane %v3775_v20, 4  ;;  %v3780_v12 = vrot.slane %v3778_v13, 5  ;;  %v6168_v20 = vld [vmem:[%s7552_s10 + $0x48] sm:$0xf]  ;;  %v7212_v8 = vld [vmem:[%s7552_s10 + $0x6c] sm:$0xff]  }
  0xf8   : > { %v3757_v15 = vor.u32 %v3756_v41, %v3753_v30  ;;  %v1455_v30 = vsel %vm7998_vm7, %v1453_v36, %v1454_v45  ;;  %v8490_v41 = vsel %vm7998_vm7, %v1460_v52, %v1461_v51  ;;  %v8500_v13 = vsel %vm7998_vm7, %v1467_v9, %v1468_v47  ;;  %v8568_v9 = vld [vmem:[%s7552_s10 + $0x64] sm:$0xf] }
  0xf9   : > { %v3744_v7 = vrot.slane %v3743_v63, 4  ;;  %v3791_v58 = vor.u32 %v3790_v42, %v8476_v10  ;;  %v5861_v49 = vcombine.low %v8448_v19, %v1455_v30  ;;  %v6171_v19 = vld [vmem:[%s7552_s10 + $0x54] sm:$0xf] }
  0xfa   : > { %v3758_v59 = vrot.slane %v3757_v15, 4 }
  0xfb   : > { %6650 = vmatmul.mubr.msk.bf16.gmra.mrb[12].mxu1 %vm801_vm1, %v5855_v18  ;;  %v7210_v18 = vld [vmem:[%s7552_s10 + $0x54] sm:$0xff]   ;;  %v3749_v51 = vsel %vm7583_vm4, %v3744_v7, %v3748_v56  ;;  %v8552_v15 = vrot.slane %v3791_v58, 4  ;;  %v3847_v7 = vshrl.u32 %v6171_v19, 16  ;;  %v3850_v56 = vshll.u32 %v6171_v19, 16 }
  0xfc   : > { %6653 = vmatprep.mubr.msk.bf16.mxu1 %vm801_vm1, %v5856_v57  ;;  %v3733_v57 = vor.u32 %v3732_v21, %v3729_v48  ;;  %v3781_v48 = vor.u32 %v3780_v12, %v3777_v4  ;;  %v3763_v28 = vsel %vm7583_vm4, %v3758_v59, %v8438_v54  ;;  %v3823_v54 = vshrl.u32 %v6168_v20, 16  ;;  %v6174_v12 = vld [vmem:[%s7552_s10 + $0x60] sm:$0xf] }
  0xfd   : > { %6778 = vmatmul.mubr.msk.bf16.gmra.mrb[4].mxu0 %vm801_vm1, %v7208_v14  ;;  %v6165_v14 = vld [vmem:[%s7552_s10 + $0x3c] sm:$0xf]  ;;  %v3832_v4 = vshll.u32 %v8532_v33, 16  ;;  %v3860_v59 = vshrl.u32 %v8558_v2, 16  ;;  %v3871_v42 = vshrl.u32 %v6174_v12, 16 }
  0xfe   : > { %6781 = vmatprep.mubr.msk.bf16.mxu0 %vm801_vm1, %v7209_v53  ;;  %v8469_v53 = vld [vmem:[%s7552_s10 + $0x40] sm:$0xf]  ;;  %v3799_v26 = vshrl.u32 %v6165_v14, 16  ;;  %v3802_v32 = vshll.u32 %v6165_v14, 16  ;;  %v3734_v29 = vrot.slane %v3733_v57, 4  ;;  %v5863_v14 = vcombine.low %v8496_v3, %v8500_v13 }
  0xff   : > { %v3808_v21 = vshll.u32 %v8469_v53, 16  ;;  %v3812_v24 = vshrl.u32 %v8469_v53, 16  ;;  %v3825_v23 = vrot.slane %v3823_v54, 4  ;;  %v8607_v54 = vld [vmem:[%s7552_s10 + $0x7c] sm:$0xf] }
 0x100   : > { %v3801_v34 = vrot.slane %v3799_v26, 4  ;;  %v3804_v40 = vrot.slane %v3802_v32, 5  ;;  %v3739_v45 = vsel %vm7583_vm4, %v3734_v29, %v8432_v25  ;;  %v8519_v25 = vrot.slane %v3781_v48, 4  ;;  %v7214_v29 = vld [vmem:[%s7552_s10 + $0x84] sm:$0xff]  }
 0x101   : > { %v8524_v57 = vrot.slane %v3808_v21, 5  ;;  %v3814_v63 = vrot.slane %v3812_v24, 4  ;;  %v8539_v11 = vcombine.low %v3739_v45, %v3749_v51  ;;  %v3836_v26 = vshrl.u32 %v8532_v33, 16  ;;  %v6180_v51 = vld [vmem:[%s7552_s10 + $0x78] sm:$0xf] }
 0x102   : > { %v3805_v60 = vor.u32 %v3804_v40, %v3801_v34  ;;  %v3880_v48 = vshll.u32 %v8568_v9, 16  ;;  %v3884_v21 = vshrl.u32 %v8568_v9, 16  ;;  %v8589_v34 = vrot.slane %v3832_v4, 5  ;;  %v6177_v40 = vld [vmem:[%s7552_s10 + $0x6c] sm:$0xf]  ;;  %v7219_v24 = vld [vmem:[%s7552_s10 + $0xb4] sm:$0xff]  }
 0x103   : > { %6654 = vmatmul.mubr.msk.bf16.gmra.mrb[16].mxu1 %vm801_vm1, %v5857_v22  ;;  %v3772_v22 = vrot.slane %v3770_v38, 5  ;;  %v5862_v38 = vcombine.low %v8480_v39, %v8490_v41  ;;  %v3815_v52 = vor.u32 %v3814_v63, %v8524_v57  ;;  %v3874_v39 = vshll.u32 %v6174_v12, 16 }
 0x104   : > { %6657 = vmatprep.mubr.msk.bf16.mxu1 %vm801_vm1, %v5858_v35  ;;  %v8474_v35 = vld [vmem:[%s7552_s10 + $0x38] sm:$0x1]  ;;  %v8570_v55 = vrot.slane %v3805_v60, 4  ;;  %v3838_v45 = vrot.slane %v3836_v26, 4  ;;  %v3862_v63 = vrot.slane %v3860_v59, 4  ;;  %v3873_v60 = vrot.slane %v3871_v42, 4 }
 0x105   : > { %6782 = vmatmul.mubr.msk.bf16.gmra.mrb[8].mxu0 %vm801_vm1, %v7210_v18  ;;  %v3794_v36 = vshll.u32 %v8474_v35, 16  ;;  %v3773_v50 = vsel %vm7583_vm4, %v3768_v6, %v3772_v22  ;;  %v8522_v18 = vld [vmem:[%s7552_s10 + $0x44] sm:$0x1]  ;;  %v3856_v22 = vshll.u32 %v8558_v2, 16  ;;  %v7215_v6 = vld [vmem:[%s7552_s10 + $0x90] sm:$0xff]   ;;  %v8585_v30 = vrot.slane %v3815_v52, 4 }
 0x106   : > { %6785 = vmatprep.mubr.msk.bf16.mxu0 %vm801_vm1, %v7211_v5  ;;  %v8550_v5 = vcombine.low %v3763_v28, %v3773_v50  ;;  %v3818_v1 = vshll.u32 %v8522_v18, 16  ;;  %v3849_v28 = vrot.slane %v3847_v7, 4  ;;  %v3852_v50 = vrot.slane %v3850_v56, 5  ;;  %v7216_v56 = vld [vmem:[%s7552_s10 + $0x9c] sm:$0xff]  }
 0x107   : > { %v8554_v44 = vrot.slane %v3794_v36, 5  ;;  %v8604_v58 = vrot.slane %v3856_v22, 5  ;;  %v3886_v19 = vrot.slane %v3884_v21, 4  ;;  %v3895_v52 = vshrl.u32 %v6177_v40, 16 }
 0x108   : > { %v8587_v41 = vrot.slane %v3818_v1, 5  ;;  %v8616_v1 = vld [vmem:[%s7552_s10 + $0x68] sm:$0x1]  ;;  %v3919_v26 = vshrl.u32 %v6180_v51, 16  ;;  %v3932_v7 = vshrl.u32 %v8607_v54, 16  ;;  %v3839_v59 = vor.u32 %v3838_v45, %v8589_v34 }
 0x109   : > { %v3897_v45 = vrot.slane %v3895_v52, 4 }
 0x10a   : > { %v3840_v3 = vrot.slane %v3839_v59, 4 }
 0x10b   : > { %6658 = vmatmul.mubr.msk.bf16.gmra.mrb[20].mxu1 %vm801_vm1, %v5859_v46  ;;  %v3826_v46 = vshll.u32 %v6168_v20, 16  ;;  %v6183_v20 = vld [vmem:[%s7552_s10 + $0x84] sm:$0xf] }
 0x10c   : > { %6661 = vmatprep.mubr.msk.bf16.mxu1 %vm801_vm1, %v5860_v37  ;;  %v8546_v37 = vld [vmem:[%s7552_s10 + $0x50] sm:$0x1]  ;;  %v3943_v52 = vshrl.u32 %v6183_v20, 16 }
 0x10d   : > { %6786 = vmatmul.mubr.msk.bf16.gmra.mrb[12].mxu0 %vm801_vm1, %v7212_v8  ;;  %v3828_v47 = vrot.slane %v3826_v46, 5  ;;  %v3842_v32 = vshll.u32 %v8546_v37, 16  ;;  %v3876_v46 = vrot.slane %v3874_v39, 5  ;;  %v7217_v39 = vld [vmem:[%s7552_s10 + $0xa8] sm:$0xff]  }
 0x10e   : > { %6789 = vmatprep.mubr.msk.bf16.mxu0 %vm801_vm1, %v7213_v16  ;;  %v8600_v16 = vld [vmem:[%s7552_s10 + $0x70] sm:$0xf] }
 0x10f   : > { %v3829_v8 = vor.u32 %v3828_v47, %v3825_v23  ;;  %v8597_v36 = vrot.slane %v3842_v32, 5  ;;  %v3898_v23 = vshll.u32 %v6177_v40, 16  ;;  %v3904_v4 = vshll.u32 %v8600_v16, 16  ;;  %v7218_v47 = vld [vmem:[%s7552_s10 + $0x54] sm:$0xff]  }
 0x110   : > { %v3908_v12 = vshrl.u32 %v8600_v16, 16  ;;  %v3922_v32 = vshll.u32 %v6180_v51, 16  ;;  %v3877_v21 = vor.u32 %v3876_v46, %v3873_v60  ;;  %v3890_v51 = vshll.u32 %v8616_v1, 16 }
 0x111   : > { %v8624_v22 = vrot.slane %v3829_v8, 4  ;;  %v8638_v8 = vld [vmem:[%s7552_s10 + $0x74] sm:$0x1] }
 0x112   : > { %v3910_v17 = vrot.slane %v3908_v12, 4  ;;  %v3924_v60 = vrot.slane %v3922_v32, 5  ;;  %v7220_v32 = vld [vmem:[%s7552_s10 + $0x60] sm:$0xff]  }
 0x113   : > { %6662 = vmatmul.mubr.msk.bf16.gmra.mrb[24].mxu1 %vm801_vm1, %v5861_v49  ;;  %v8611_v49 = vld [vmem:[%s7552_s10 + $0x5c] sm:$0x1] }
 0x114   : > { %6665 = vmatprep.mubr.msk.bf16.mxu1 %vm801_vm1, %v5862_v38  ;;  %v8613_v38 = vrot.slane %v3880_v48, 5  ;;  %v3866_v42 = vshll.u32 %v8611_v49, 16  ;;  %v3863_v48 = vor.u32 %v3862_v63, %v8604_v58  ;;  %v3921_v63 = vrot.slane %v3919_v26, 4 }
 0x115   : > { %6790 = vmatmul.mubr.msk.bf16.gmra.mrb[16].mxu0 %vm801_vm1, %v7214_v29  ;;  %v3928_v29 = vshll.u32 %v8607_v54, 16  ;;  %v3914_v26 = vshll.u32 %v8638_v8, 16 }
 0x116   : > { %6793 = vmatprep.mubr.msk.bf16.mxu0 %vm801_vm1, %v7215_v6  ;;  %v3853_v6 = vor.u32 %v3852_v50, %v3849_v28  ;;  %v3887_v40 = vor.u32 %v3886_v19, %v8613_v38  ;;  %v3900_v28 = vrot.slane %v3898_v23, 5  ;;  %v8640_v50 = vrot.slane %v3904_v4, 5 }
 0x117   : > { %v8643_v46 = vrot.slane %v3928_v29, 5  ;;  %v3934_v19 = vrot.slane %v3932_v7, 4  ;;  %v3868_v13 = vrot.slane %v3866_v42, 5  ;;  %v3946_v23 = vshll.u32 %v6183_v20, 16  ;;  %v7222_v20 = vld [vmem:[%s7552_s10 + $0x6c] sm:$0xff]  }
 0x118   : > { %v3854_v4 = vrot.slane %v3853_v6, 4  ;;  %v3864_v12 = vrot.slane %v3863_v48, 4  ;;  %v3821_v29 = vsel %vm7583_vm4, %v8585_v30, %v8587_v41  ;;  %v3888_v7 = vrot.slane %v3887_v40, 4 }
 0x119   : > { %v3901_v59 = vor.u32 %v3900_v28, %v3897_v45  ;;  %v3911_v42 = vor.u32 %v3910_v17, %v8640_v50  ;;  %v3935_v6 = vor.u32 %v3934_v19, %v8643_v46  ;;  %v3835_v30 = vsel %vm7583_vm4, %v8624_v22, %v8589_v34  ;;  %v8683_v22 = vld [vmem:[%s7552_s10 + $0x8c] sm:$0x1] }
 0x11a   : > { %v3845_v41 = vsel %vm7583_vm4, %v3840_v3, %v8597_v36  ;;  %v3945_v40 = vrot.slane %v3943_v52, 4  ;;  %v3948_v17 = vrot.slane %v3946_v23, 5  ;;  %v3859_v45 = vsel %vm7583_vm4, %v3854_v4, %v8604_v58  ;;  %v6186_v3 = vld [vmem:[%s7552_s10 + $0x90] sm:$0xf]  ;;  %v8703_v4 = vld [vmem:[%s7552_s10 + $0x94] sm:$0xf] }
 0x11b   : > { %6666 = vmatmul.mubr.msk.bf16.gmra.mrb[28].mxu1 %vm801_vm1, %v5863_v14  ;;  %v8647_v14 = vld [vmem:[%s7552_s10 + $0x80] sm:$0x1]  ;;  %v3869_v28 = vsel %vm7583_vm4, %v3864_v12, %v3868_v13  ;;  %v8680_v34 = vrot.slane %v3914_v26, 5  ;;  %v8698_v52 = vrot.slane %v3935_v6, 4  ;;  %v9608_v12 = vsel %vm7583_vm4, %v8552_v15, %v8554_v44  ;;  %v7223_v6 = vld [vmem:[%s7552_s10 + $0xcc] sm:$0xff]  }
 0x11c   : > { %6683 = vmatprep.mubr.msk.bf16.mxu1 %vm801_vm1, %v7218_v47  ;;  %v3878_v47 = vrot.slane %v3877_v21, 4  ;;  %v3938_v48 = vshll.u32 %v8647_v14, 16  ;;  %v8661_v21 = vld [vmem:[%s7552_s10 + $0x88] sm:$0xf]  ;;  %v3962_v15 = vshll.u32 %v8683_v22, 16  ;;  %v8727_v44 = vcombine.low %v3835_v30, %v3845_v41 }
 0x11d   : > { %6794 = vmatmul.mubr.msk.bf16.gmra.mrb[20].mxu0 %vm801_vm1, %v7216_v56  ;;  %v3892_v56 = vrot.slane %v3890_v51, 5  ;;  %v7221_v51 = vld [vmem:[%s7552_s10 + $0xc0] sm:$0xff]   ;;  %v3952_v58 = vshll.u32 %v8661_v21, 16  ;;  %v3956_v19 = vshrl.u32 %v8661_v21, 16  ;;  %v6245_v30 = vld [vmem:[%s7552_s10 + $0x78] sm:$0xe] }
 0x11e   : > { %6797 = vmatprep.mubr.msk.bf16.mxu0 %vm801_vm1, %v7217_v39  ;;  %v3925_v39 = vor.u32 %v3924_v60, %v3921_v63  ;;  %v3883_v63 = vsel %vm7583_vm4, %v3878_v47, %v8613_v38  ;;  %v8688_v60 = vrot.slane %v3901_v59, 4  ;;  %v8694_v38 = vrot.slane %v3911_v42, 4  ;;  %v6239_v59 = vld [vmem:[%s7552_s10 + $0x30] sm:$0xe] }
 0x11f   : > { %v3893_v36 = vsel %vm7583_vm4, %v3888_v7, %v3892_v56  ;;  %v8700_v23 = vrot.slane %v3938_v48, 5  ;;  %v9609_v47 = vsel %vm7583_vm4, %v8519_v25, %v8476_v10  ;;  %v3949_v7 = vor.u32 %v3948_v17, %v3945_v40  ;;  %v7225_v48 = vld [vmem:[%s7552_s10 + $0x84] sm:$0xff]   ;;  %v6243_v17 = vld [vmem:[%s7552_s10 + $0x60] sm:$0xe] }
 0x120   : > { %v8696_v13 = vrot.slane %v3925_v39, 4  ;;  %v8716_v26 = vcombine.low %v9609_v47, %v9608_v12  ;;  %v8729_v10 = vcombine.low %v3859_v45, %v3869_v28  ;;  %v3967_v25 = vshrl.u32 %v6186_v3, 16  ;;  %v6240_v39 = vld [vmem:[%s7552_s10 + $0x3c] sm:$0xe] }
 0x121   : > { %v3970_v56 = vshll.u32 %v6186_v3, 16  ;;  %v8733_v42 = vcombine.low %v3883_v63, %v3893_v36  ;;  %v8762_v45 = vrot.slane %v3949_v7, 4  ;;  %v8764_v28 = vrot.slane %v3962_v15, 5 }
 0x122   : > { %v6255_v63 = vrot.slane %v6239_v59, 9  ;;  %v4484_v36 = vrot.slane %v8444_v31, 5  ;;  %v4487_v12 = vrot.slane %v8474_v35, 5  ;;  %v6256_v47 = vrot.slane %v6240_v39, 9 }
 0x123   : > { %6684 = vmatmul.mubr.msk.bf16.vlgmr.msra.gmra.mrb[12].mxu1 %vm801_vm1, %v7220_v32  ;;  %v9610_v32 = vsel %vm7583_vm4, %v8570_v55, %v8524_v57  ;;  %v8735_v57 = vrot.slane %v3952_v58, 5  ;;  %v8737_v55 = vrot.slane %v3956_v19, 4  ;;  %v6241_v58 = vld [vmem:[%s7552_s10 + $0x48] sm:$0xe]  ;;  %v8768_v19 = vrot.slane %v3967_v25, 4 }
 0x124   : > { %6687 = vmatprep.mubr.msk.bf16.mxu1 %vm801_vm1, %v7222_v20  ;;  %v7224_v20 = vld [vmem:[%s7552_s10 + $0x78] sm:$0xff]   ;;  %v8770_v3 = vrot.slane %v3970_v56, 5  ;;  %v8784_v35 = vsel %vm7998_vm7, %v6255_v63, %v4484_v36  ;;  %v4486_v25 = vrot.slane %v4484_v36, 4  ;;  %v4491_v56 = vrot.slane %v8469_v53, 5 }
 0x125   : > { %6798 = vmatmul.mubr.msk.bf16.gmra.mrb[24].mxu0 %vm801_vm1, %v7219_v24  ;;  %v8723_v24 = vcombine.low %v9610_v32, %v3821_v29  ;;  %v3976_v29 = vshll.u32 %v8703_v4, 16  ;;  %v6242_v32 = vld [vmem:[%s7552_s10 + $0x54] sm:$0xe]  ;;  %v4498_v39 = vrot.slane %v8532_v33, 5  ;;  %v4501_v40 = vrot.slane %v8546_v37, 5 }
 0x126   : > { %6801 = vmatprep.mubr.msk.bf16.mxu0 %vm801_vm1, %v7221_v51  ;;  %v8760_v51 = vld [vmem:[%s7552_s10 + $0x9c] sm:$0xf]  ;;  %v8796_v63 = vsel %vm7998_vm7, %v4486_v25, %v4487_v12  ;;  %v8800_v53 = vsel %vm7998_vm7, %v6256_v47, %v4491_v56  ;;  %v7226_v33 = vld [vmem:[%s7552_s10 + $0x90] sm:$0xff]   ;;  %v6244_v12 = vld [vmem:[%s7552_s10 + $0x6c] sm:$0xe]  ;;  %v4515_v37 = vrot.slane %v8616_v1, 5 }
 0x127   : > { %v8777_v15 = vrot.slane %v3976_v29, 5  ;;  %v6257_v29 = vrot.slane %v6241_v58, 9  ;;  %v4508_v58 = vrot.slane %v8611_v49, 5  ;;  %v4512_v49 = vrot.slane %v8568_v9, 5  ;;  %v8898_v9 = vld [vmem:[%s7552_s10 + $0xa4] sm:$0x1] }
 0x129   : > { %v8808_v36 = vsel %vm7998_vm7, %v6257_v29, %v4498_v39 }
 0x12b   : > { %6688 = vmatmul.mubr.msk.bf16.gmra.mrb[16].mxu1 %vm801_vm1, %v7224_v20  ;;  %v4494_v20 = vrot.slane %v8522_v18, 5  ;;  %v4493_v18 = vrot.slane %v4491_v56, 4  ;;  %v6259_v56 = vrot.slane %v6243_v17, 9  ;;  %v6260_v17 = vrot.slane %v6244_v12, 9 }
 0x12c   : > { %6691 = vmatprep.mubr.msk.bf16.mxu1 %vm801_vm1, %v7225_v48  ;;  %v6258_v48 = vrot.slane %v6242_v32, 9  ;;  %v7227_v32 = vld [vmem:[%s7552_s10 + $0x9c] sm:$0xff]   ;;  %v4526_v12 = vrot.slane %v8607_v54, 5  ;;  %v7228_v54 = vld [vmem:[%s7552_s10 + $0xa8] sm:$0xff]  }
 0x12d   : > { %6802 = vmatmul.mubr.msk.bf16.gmra.mrb[28].mxu0 %vm801_vm1, %v7223_v6  ;;  %v4505_v6 = vrot.slane %v8558_v2, 5  ;;  %v8815_v47 = vsel %vm7998_vm7, %v4493_v18, %v4494_v20  ;;  %v4519_v18 = vrot.slane %v8600_v16, 5  ;;  %v8843_v1 = vsel %vm7998_vm7, %v6259_v56, %v4512_v49  ;;  %v8912_v20 = vld [vmem:[%s7552_s10 + $0xb8] sm:$0xf] }
 0x12e   : > { %6807 = vmatprep.mubr.msk.bf16.mxu0 %vm801_vm1, %v8539_v11  ;;  %v4500_v11 = vrot.slane %v4498_v39, 4  ;;  %v4533_v56 = vrot.slane %v8661_v21, 5  ;;  %v4528_v21 = vrot.slane %v4526_v12, 4  ;;  %v4561_v59 = vrot.slane %v8912_v20, 5 }
 0x12f   : > { %v8819_v2 = vsel %vm7998_vm7, %v6258_v48, %v4505_v6  ;;  %v4507_v25 = vrot.slane %v4505_v6, 4  ;;  %v6246_v6 = vld [vmem:[%s7552_s10 + $0x84] sm:$0xe]  ;;  %v8849_v16 = vsel %vm7998_vm7, %v6260_v17, %v4519_v18  ;;  %v8880_v17 = vld [vmem:[%s7552_s10 + $0xa0] sm:$0xf] }
 0x130   : > { %v8825_v39 = vsel %vm7998_vm7, %v4500_v11, %v4501_v40  ;;  %v4514_v40 = vrot.slane %v4512_v49, 4  ;;  %v4522_v11 = vrot.slane %v8638_v8, 5  ;;  %v4529_v8 = vrot.slane %v8647_v14, 5  ;;  %v6247_v49 = vld [vmem:[%s7552_s10 + $0x90] sm:$0xe] }
 0x131   : > { %v8834_v48 = vsel %vm7998_vm7, %v4507_v25, %v4508_v58  ;;  %v4521_v58 = vrot.slane %v4519_v18, 4 }
 0x132   : > { %v8856_v25 = vsel %vm7998_vm7, %v4514_v40, %v4515_v37  ;;  %v6248_v37 = vld [vmem:[%s7552_s10 + $0x9c] sm:$0xe]  ;;  %v4536_v40 = vrot.slane %v8683_v22, 5  ;;  %v9633_v0 = vcombine.low %v8819_v2, %v8834_v48 }
 0x133   : > { %6692 = vmatmul.mubr.msk.bf16.gmra.mrb[20].mxu1 %vm801_vm1, %v7226_v33  ;;  %v6261_v33 = vrot.slane %v6245_v30, 9  ;;  %v8869_v30 = vsel %vm7998_vm7, %v4521_v58, %v4522_v11  ;;  %v7229_v11 = vld [vmem:[%s7552_s10 + $0xb4] sm:$0xff]   ;;  %v8892_v58 = vsel %vm7998_vm7, %v4528_v21, %v4529_v8  ;;  %v4547_v8 = vrot.slane %v8880_v17, 5 }
 0x134   : > { %6695 = vmatprep.mubr.msk.bf16.mxu1 %vm801_vm1, %v7227_v32  ;;  %v6262_v32 = vrot.slane %v6246_v6, 9  ;;  %9611 = vst [vmem:[#allocation7_spill] sm:$0xff] %v8869_v30  ;;  %v4535_v6 = vrot.slane %v4533_v56, 4  ;;  %9614 = vst [vmem:[#allocation8_spill] sm:$0xff] %v8892_v58  ;;  %v6250_v21 = vld [vmem:[%s7552_s10 + $0xb4] sm:$0xe] }
 0x135   : > { %6808 = vmatmul.mubr.msk.bf16.vlgmr.msra.gmra.mrb[0].mxu0 %vm801_vm1, %v8550_v5  ;;  %v8873_v14 = vsel %vm7998_vm7, %v6261_v33, %v4526_v12  ;;  %v6263_v33 = vrot.slane %v6247_v49, 9  ;;  %v4540_v12 = vrot.slane %v8703_v4, 5  ;;  %v6249_v5 = vld [vmem:[%s7552_s10 + $0xa8] sm:$0xe]  ;;  %v8909_v49 = vld [vmem:[%s7552_s10 + $0xac] sm:$0xf] }
 0x136   : > { %6840 = vmatpush3.bf16.msra.mxu0 %v8543_v61  ;;  %6811 = vmatprep.mubr.msk.bf16.mxu0 %vm801_vm1, %v8716_v26  ;;  %9612 = vst [vmem:[#allocation5_spill] sm:$0xff] %v8873_v14  ;;  %v8877_v61 = vld [vmem:[%s7552_s10 + $0x98] sm:$0x1]  ;;  %v8886_v18 = vsel %vm7998_vm7, %v6262_v32, %v4533_v56  ;;  %v8904_v22 = vsel %vm7998_vm7, %v4535_v6, %v4536_v40  ;;  %v6264_v56 = vrot.slane %v6248_v37, 9  ;;  %v4550_v6 = vrot.slane %v8898_v9, 5 }
 0x137   : > { %9613 = vst [vmem:[#allocation6_spill] sm:$0xff] %v8886_v18  ;;  %v4543_v26 = vrot.slane %v8877_v61, 5  ;;  %9615 = vst [vmem:[#allocation9_spill] sm:$0xff] %v8904_v22  ;;  %v8918_v41 = vsel %vm7998_vm7, %v6263_v33, %v4540_v12  ;;  %v4542_v32 = vrot.slane %v4540_v12, 4  ;;  %v8923_v37 = vld [vmem:[%s7552_s10 + $0xb0] sm:$0x1] }
 0x138   : > { %9616 = vst [vmem:[#allocation10_spill] sm:$0xff] %v8918_v41  ;;  %v8927_v40 = vsel %vm7998_vm7, %v6264_v56, %v4547_v8  ;;  %v4549_v31 = vrot.slane %v4547_v8, 4  ;;  %v6265_v7 = vrot.slane %v6249_v5, 9  ;;  %v4554_v29 = vrot.slane %v8909_v49, 5  ;;  %v6251_v56 = vld [vmem:[%s7552_s10 + $0xc0] sm:$0xe] }
 0x139   : > { %9617 = vst [vmem:[#allocation11_spill] sm:$0xff] %v8927_v40  ;;  %v8933_v33 = vsel %vm7998_vm7, %v4542_v32, %v4543_v26  ;;  %v6266_v12 = vrot.slane %v6250_v21, 9  ;;  %v8941_v5 = vld [vmem:[%s7552_s10 + $0xbc] sm:$0x1]  ;;  %v6252_v21 = vld [vmem:[%s7552_s10 + $0xcc] sm:$0xe] }
 0x13a   : > { %9618 = vst [vmem:[#allocation12_spill] sm:$0xff] %v8933_v33  ;;  %v8947_v26 = vsel %vm7998_vm7, %v4549_v31, %v4550_v6  ;;  %v8951_v32 = vsel %vm7998_vm7, %v6265_v7, %v4554_v29  ;;  %v4556_v8 = vrot.slane %v4554_v29, 4  ;;  %v8960_v22 = vld [vmem:[%s7552_s10 + $0xc8] sm:$0x1]  ;;  %v4563_v7 = vrot.slane %v4561_v59, 4  ;;  %v7230_v29 = vld [vmem:[%s7552_s10 + $0xc0] sm:$0xff]  }
 0x13b   : > { %6696 = vmatmul.mubr.msk.bf16.gmra.mrb[24].mxu1 %vm801_vm1, %v7228_v54  ;;  %v4557_v54 = vrot.slane %v8923_v37, 5  ;;  %9619 = vst [vmem:[#allocation13_spill] sm:$0xff] %v8947_v26  ;;  %v8966_v31 = vsel %vm7998_vm7, %v6266_v12, %v4561_v59  ;;  %v4564_v6 = vrot.slane %v8941_v5, 5  ;;  %v8971_v33 = vld [vmem:[%s7552_s10 + $0xd0] sm:$0xf]  ;;  %v6267_v41 = vrot.slane %v6251_v56, 9 }
 0x13c   : > { %6699 = vmatprep.mubr.msk.bf16.mxu1 %vm801_vm1, %v7229_v11  ;;  %9620 = vst [vmem:[#allocation14_spill] sm:$0xff] %v8966_v31  ;;  %v4571_v58 = vrot.slane %v8960_v22, 5  ;;  %v8980_v11 = vld [vmem:[%s7552_s10 + $0xd4] sm:$0x1]  ;;  %v6268_v26 = vrot.slane %v6252_v21, 9  ;;  %v4575_v40 = vrot.slane %v8971_v33, 5 }
 0x13d   : > { %6812 = vmatmul.mubr.msk.bf16.gmra.mrb[4].mxu0 %vm801_vm1, %v8723_v24  ;;  %v8957_v24 = vld [vmem:[%s7552_s10 + $0xc4] sm:$0xf]  ;;  %v8986_v59 = vsel %vm7998_vm7, %v4563_v7, %v4564_v6  ;;  %v6192_v14 = vld [vmem:[%s7552_s10 + $0xa8] sm:$0xf]  ;;  %v4578_v30 = vrot.slane %v8980_v11, 5  ;;  %v9623_v12 = vshrl.u32 %v8703_v4, 16 }
 0x13e   : > { %6815 = vmatprep.mubr.msk.bf16.mxu0 %vm801_vm1, %v8727_v44  ;;  %v8975_v44 = vsel %vm7998_vm7, %v4556_v8, %v4557_v54  ;;  %v4568_v18 = vrot.slane %v8957_v24, 5  ;;  %9622 = vst [vmem:[#allocation16_spill] sm:$0xff] %v8986_v59  ;;  %v3994_v7 = vshll.u32 %v8760_v51, 16  ;;  %v9002_v21 = vsel %vm7998_vm7, %v6268_v26, %v4575_v40 }
 0x13f   : > { %9621 = vst [vmem:[#allocation15_spill] sm:$0xff] %v8975_v44  ;;  %v3982_v44 = vrot.slane %v9623_v12, 4  ;;  %v4577_v6 = vrot.slane %v4575_v40, 4  ;;  %v9624_v54 = vor.u32 %v8737_v55, %v8735_v57  ;;  %v4004_v59 = vshrl.u32 %v8880_v17, 16  ;;  %v9643_v48 = vld [vmem:[#allocation10_spill] sm:$0xff] }
 0x140   : > { %v8994_v56 = vsel %vm7998_vm7, %v6267_v41, %v4568_v18  ;;  %v4570_v8 = vrot.slane %v4568_v18, 4  ;;  %v4000_v18 = vshll.u32 %v8880_v17, 16  ;;  %v4015_v12 = vshrl.u32 %v6192_v14, 16 }
 0x141   : > { %v3960_v41 = vrot.slane %v9624_v54, 4  ;;  %v4018_v31 = vshll.u32 %v6192_v14, 16  ;;  %v9018_v40 = vsel %vm7998_vm7, %v4577_v6, %v4578_v30  ;;  %v3986_v55 = vshll.u32 %v8877_v61, 16  ;;  %v6195_v6 = vld [vmem:[%s7552_s10 + $0xb4] sm:$0xf] }
 0x142   : > { %v9012_v4 = vsel %vm7998_vm7, %v4570_v8, %v4571_v58  ;;  %v4024_v17 = vshll.u32 %v8909_v49, 16  ;;  %v6285_v58 = vcombine.low %v9002_v21, %v9018_v40  ;;  %v3973_v30 = vor.u32 %v8770_v3, %v8768_v19 }
 0x143   : > { %6700 = vmatmul.mubr.msk.bf16.gmra.mrb[28].mxu1 %vm801_vm1, %v7230_v29  ;;  %v6284_v26 = vcombine.low %v8994_v56, %v9012_v4  ;;  %v4028_v29 = vshrl.u32 %v8909_v49, 16  ;;  %v3983_v14 = vor.u32 %v3982_v44, %v8777_v15  ;;  %v3996_v61 = vrot.slane %v3994_v7, 5 }
 0x144   : > { %v9626_v49 = vsel %vm7583_vm4, %v8694_v38, %v8680_v34  ;;  %v3955_v19 = vsel %vm7583_vm4, %v8762_v45, %v8735_v57  ;;  %v9051_v3 = vrot.slane %v4000_v18, 5  ;;  %v4006_v44 = vrot.slane %v4004_v59, 4 }
 0x145   : > { %6816 = vmatmul.mubr.msk.bf16.gmra.mrb[8].mxu0 %vm801_vm1, %v8729_v10  ;;  %v9625_v10 = vshrl.u32 %v8760_v51, 16  ;;  %v3965_v51 = vsel %vm7583_vm4, %v3960_v41, %v8764_v28  ;;  %v4017_v7 = vrot.slane %v4015_v12, 4  ;;  %v4020_v34 = vrot.slane %v4018_v31, 5 }
 0x146   : > { %6819 = vmatprep.mubr.msk.bf16.mxu0 %vm801_vm1, %v8733_v42  ;;  %v9627_v42 = vsel %vm7583_vm4, %v8688_v60, %v8640_v50  ;;  %v9628_v50 = vsel %vm7583_vm4, %v8698_v52, %v8700_v23  ;;  %v9629_v60 = vsel %vm7583_vm4, %v8696_v13, %v8643_v46  ;;  %v3988_v57 = vrot.slane %v3986_v55, 5 }
 0x147   : > { %v3993_v54 = vrot.slane %v9625_v10, 4  ;;  %v6212_v8 = vcombine.low %v9627_v42, %v9626_v49  ;;  %v6213_v38 = vcombine.low %v9629_v60, %v9628_v50  ;;  %v4026_v45 = vrot.slane %v4024_v17, 5  ;;  %v6198_v42 = vld [vmem:[%s7552_s10 + $0xc0] sm:$0xf] }
 0x148   : > { %v4030_v28 = vrot.slane %v4028_v29, 4  ;;  %v3974_v41 = vrot.slane %v3973_v30, 4  ;;  %v3984_v59 = vrot.slane %v3983_v14, 4  ;;  %v4010_v31 = vshll.u32 %v8898_v9, 16 }
 0x149   : > { %v3997_v18 = vor.u32 %v3996_v61, %v3993_v54  ;;  %v6214_v12 = vcombine.low %v3955_v19, %v3965_v51  ;;  %v4007_v10 = vor.u32 %v4006_v44, %v9051_v3  ;;  %v4021_v49 = vor.u32 %v4020_v34, %v4017_v7 }
 0x14a   : > { %v4034_v52 = vshll.u32 %v8923_v37, 16  ;;  %v4039_v23 = vshrl.u32 %v6195_v6, 16  ;;  %v4031_v46 = vor.u32 %v4030_v28, %v4026_v45  ;;  %v4042_v13 = vshll.u32 %v6195_v6, 16 }
 0x14b   : > { %v4048_v55 = vshll.u32 %v8912_v20, 16  ;;  %v4052_v17 = vshrl.u32 %v8912_v20, 16  ;;  %v3979_v9 = vsel %vm7583_vm4, %v3974_v41, %v8777_v15  ;;  %v3989_v29 = vsel %vm7583_vm4, %v3984_v59, %v3988_v57  ;;  %v6201_v41 = vld [vmem:[%s7552_s10 + $0xcc] sm:$0xf] }
 0x14c   : > { %v3998_v37 = vrot.slane %v3997_v18, 4  ;;  %v4012_v30 = vrot.slane %v4010_v31, 5  ;;  %v4063_v14 = vshrl.u32 %v6198_v42, 16  ;;  %v4066_v54 = vshll.u32 %v6198_v42, 16 }
 0x14d   : > { %6820 = vmatmul.mubr.msk.bf16.gmra.mrb[12].mxu0 %vm801_vm1, %v6212_v8  ;;  %v4072_v61 = vshll.u32 %v8957_v24, 16  ;;  %v4076_v8 = vshrl.u32 %v8957_v24, 16  ;;  %v4008_v19 = vrot.slane %v4007_v10, 4  ;;  %v4022_v20 = vrot.slane %v4021_v49, 4 }
 0x14e   : > { %6823 = vmatprep.mubr.msk.bf16.mxu0 %vm801_vm1, %v6213_v38  ;;  %v4036_v51 = vrot.slane %v4034_v52, 5  ;;  %v4041_v44 = vrot.slane %v4039_v23, 4  ;;  %v4032_v7 = vrot.slane %v4031_v46, 4  ;;  %v4044_v34 = vrot.slane %v4042_v13, 5 }
 0x14f   : > { %v4050_v50 = vrot.slane %v4048_v55, 5  ;;  %v4054_v15 = vrot.slane %v4052_v17, 4  ;;  %v6215_v60 = vcombine.low %v3979_v9, %v3989_v29  ;;  %v4065_v38 = vrot.slane %v4063_v14, 4 }
 0x150   : > { %v4068_v57 = vrot.slane %v4066_v54, 5  ;;  %v4074_v28 = vrot.slane %v4072_v61, 5  ;;  %v4078_v6 = vrot.slane %v4076_v8, 4  ;;  %v4003_v59 = vsel %vm7583_vm4, %v3998_v37, %v9051_v3 }
 0x151   : > { %v4013_v24 = vsel %vm7583_vm4, %v4008_v19, %v4012_v30  ;;  %v4058_v18 = vshll.u32 %v8941_v5, 16  ;;  %v4027_v31 = vsel %vm7583_vm4, %v4022_v20, %v4026_v45  ;;  %v4037_v10 = vsel %vm7583_vm4, %v4032_v7, %v4036_v51 }
 0x152   : > { %v4045_v49 = vor.u32 %v4044_v34, %v4041_v44  ;;  %v4055_v52 = vor.u32 %v4054_v15, %v4050_v50  ;;  %v4087_v23 = vshrl.u32 %v6201_v41, 16  ;;  %v4090_v42 = vshll.u32 %v6201_v41, 16  ;;  %v7365_v15 = vld [vmem:[%s7552_s10 + $0x1c] sm:$0xf] }
 0x153   : > { %v4096_v3 = vshll.u32 %v8971_v33, 16  ;;  %v4100_v46 = vshrl.u32 %v8971_v33, 16  ;;  %v4069_v13 = vor.u32 %v4068_v57, %v4065_v38  ;;  %v4079_v5 = vor.u32 %v4078_v6, %v4074_v28  ;;  %v6237_v38 = vld [vmem:[%s7552_s10 + $0x18] sm:$0xe] }
 0x154   : > { %v6216_v55 = vcombine.low %v4003_v59, %v4013_v24  ;;  %v6217_v17 = vcombine.low %v4027_v31, %v4037_v10  ;;  %v4046_v45 = vrot.slane %v4045_v49, 4  ;;  %v4056_v9 = vrot.slane %v4055_v52, 4  ;;  %v7366_v10 = vld [vmem:[%s7552_s10 + $0x28] sm:$0xf] }
 0x155   : > { %6824 = vmatmul.mubr.msk.bf16.gmra.mrb[16].mxu0 %vm801_vm1, %v6214_v12  ;;  %v4082_v12 = vshll.u32 %v8960_v22, 16  ;;  %v4060_v29 = vrot.slane %v4058_v18, 5  ;;  %v4089_v37 = vrot.slane %v4087_v23, 4  ;;  %v4092_v30 = vrot.slane %v4090_v42, 5  ;;  %v6238_v42 = vld [vmem:[%s7552_s10 + $0x24] sm:$0xe] }
 0x156   : > { %6827 = vmatprep.mubr.msk.bf16.mxu0 %vm801_vm1, %v6215_v60  ;;  %v4098_v14 = vrot.slane %v4096_v3, 5  ;;  %v4102_v54 = vrot.slane %v4100_v46, 4  ;;  %v4070_v61 = vrot.slane %v4069_v13, 4  ;;  %v4080_v8 = vrot.slane %v4079_v5, 4  ;;  %s5765_s10 = sshll.u32 %s7543_s23, 2 }
 0x157   : > { %v4084_v19 = vrot.slane %v4082_v12, 5  ;;  %v4051_v33 = vsel %vm7583_vm4, %v4046_v45, %v4050_v50  ;;  %v4061_v22 = vsel %vm7583_vm4, %v4056_v9, %v4060_v29  ;;  %v4093_v20 = vor.u32 %v4092_v30, %v4089_v37  ;;  %v9638_v9 = vld [vmem:[#allocation8_spill] sm:$0xff]  ;;  %v9641_v29 = vld [vmem:[#allocation9_spill] sm:$0xff]  ;;  %s313_s20 = scalar_lea.vmem %s9578_s7, %s5765_s10  ;;  %s5666_s10 = scalar_lea.sflag [#allocation3], %s303_s21 }
 0x158   : > { %v4103_v51 = vor.u32 %v4102_v54, %v4098_v14  ;;  %v4106_v44 = vshll.u32 %v8980_v11, 16  ;;  %v4075_v7 = vsel %vm7583_vm4, %v4070_v61, %v4074_v28  ;;  %v4470_v60 = vrot.slane %v7365_v15, 5  ;;  %v9644_v37 = vld [vmem:[#allocation12_spill] sm:$0xff]  ;;  %v9647_v30 = vld [vmem:[#allocation13_spill] sm:$0xff]  ;;  %v9651_v61 = vld [vmem:[#allocation14_spill] sm:$0xff] }
 0x159   : > { %v4085_v34 = vsel %vm7583_vm4, %v4080_v8, %v4084_v19  ;;  %v6218_v50 = vcombine.low %v4051_v33, %v4061_v22  ;;  %v4094_v6 = vrot.slane %v4093_v20, 4  ;;  %v6253_v24 = vrot.slane %v6237_v38, 9  ;;  %v9652_v8 = vld [vmem:[#allocation16_spill] sm:$0xff] }
 0x15a   : > { %v6219_v57 = vcombine.low %v4075_v7, %v4085_v34  ;;  %v4104_v41 = vrot.slane %v4103_v51, 4  ;;  %v4108_v59 = vrot.slane %v4106_v44, 5  ;;  %v4472_v18 = vrot.slane %v4470_v60, 4  ;;  %v7231_v38 = vld [vmem:[%s9574_s3] ss:$16 sps:$4 sm:$0xff]  }
 0x15b   : > { %v4473_v11 = vrot.slane %v8430_v43, 5  ;;  %v4099_v28 = vsel %vm7583_vm4, %v4094_v6, %v4098_v14  ;;  %v4477_v49 = vrot.slane %v7366_v10, 5  ;;  %v4471_v52 = vsel %vm7998_vm7, %v6253_v24, %v4470_v60  ;;  %v9649_v14 = vld [vmem:[#allocation15_spill] sm:$0xff] }
 0x15c   : > { %v4109_v31 = vsel %vm7583_vm4, %v4104_v41, %v4108_v59  ;;  %v6254_v46 = vrot.slane %v6238_v42, 9  ;;  %v4480_v5 = vrot.slane %v8436_v27, 5  ;;  %v9631_v27 = vcombine.low %v8800_v53, %v8815_v47  ;;  %v9637_v47 = vld [vmem:[#allocation5_spill] sm:$0xff] }
 0x15d   : > { %6828 = vmatmul.mubr.msk.bf16.gmra.mrb[20].mxu0 %vm801_vm1, %v6216_v55  ;;  %v4474_v23 = vsel %vm7998_vm7, %v4472_v18, %v4473_v11  ;;  %v6220_v43 = vcombine.low %v4099_v28, %v4109_v31  ;;  %v4479_v13 = vrot.slane %v4477_v49, 4  ;;  %v9632_v45 = vcombine.low %v8808_v36, %v8825_v39  ;;  %v9640_v39 = vld [vmem:[#allocation6_spill] sm:$0xff]  ;;  %v7236_v24 = vld [vmem:[%s9574_s3 + $0x24] ss:$16 sps:$4 sm:$0xff]  }
 0x15e   : > { %6831 = vmatprep.mubr.msk.bf16.mxu0 %vm801_vm1, %v6217_v17  ;;  %v6270_v3 = vcombine.low %v4471_v52, %v4474_v23  ;;  %v4478_v62 = vsel %vm7998_vm7, %v6254_v46, %v4477_v49  ;;  %v9630_v17 = vcombine.low %v8784_v35, %v8796_v63  ;;  %v9634_v35 = vcombine.low %v8843_v1, %v8856_v25  ;;  %v9635_v63 = vld [vmem:[#allocation7_spill] sm:$0xff] }
 0x15f   : > { %v4481_v12 = vsel %vm7998_vm7, %v4479_v13, %v4480_v5  ;;  %v9636_v53 = vcombine.low %v8849_v16, %v9635_v63  ;;  %v9639_v36 = vcombine.low %v9637_v47, %v9638_v9  ;;  %v9642_v2 = vcombine.low %v9640_v39, %v9641_v29  ;;  %v9646_v25 = vld [vmem:[#allocation11_spill] sm:$0xff] }
 0x160   : > { %v6271_v55 = vcombine.low %v4478_v62, %v4481_v12  ;;  %v9645_v1 = vcombine.low %v9643_v48, %v9644_v37  ;;  %v9648_v16 = vcombine.low %v9646_v25, %v9647_v30  ;;  %v9650_v54 = vcombine.low %v8951_v32, %v9649_v14  ;;  %v7234_v18 = vld [vmem:[%s9574_s3 + $0x20] ss:$16 sps:$4 sm:$0xff]   ;;  %v7239_v11 = vld [vmem:[%s9574_s3 + $0x44] ss:$16 sps:$4 sm:$0xff]  }
 0x161   : > { %v9653_v19 = vcombine.low %v9651_v61, %v9652_v8  ;;  %v7237_v31 = vld [vmem:[%s9574_s3 + $0x40] ss:$16 sps:$4 sm:$0xff]   ;;  %v7242_v23 = vld [vmem:[%s9574_s3 + $0x64] ss:$16 sps:$4 sm:$0xff]   ;;  %v7431_v63 = vmov 0  }
 0x162   : > { %v7240_v42 = vld [vmem:[%s9574_s3 + $0x60] ss:$16 sps:$4 sm:$0xff]   ;;  %v7248_v12 = vld [vmem:[%s9574_s3 + $0xa4] ss:$16 sps:$4 sm:$0xff]   ;;  %5231 = vmatprep.mubr.bf16.mxu1 %v7431_v63 }
 0x163   : > { %v7243_v46 = vld [vmem:[%s9574_s3 + $0x80] ss:$16 sps:$4 sm:$0xff]  }
 0x164   : > { %v7252_v47 = vld [vmem:[%s9574_s3 + $0xe0] ss:$16 sps:$4 sm:$0xff]  }
 0x165   : > { %6832 = vmatmul.mubr.msk.bf16.gmra.mrb[24].mxu0 %vm801_vm1, %v6218_v50  ;;  %v7233_v50 = vld [vmem:[%s9574_s3 + $0x4] ss:$16 sps:$4 sm:$0xff]  }
 0x166   : > { %6835 = vmatprep.mubr.msk.bf16.mxu0 %vm801_vm1, %v6219_v57  ;;  %5199 = vmatprep.subr.bf16.mxu1 %v7233_v50 }
 0x167   : > { %5200 = vmatpush1.bf16.msra.mxu1 %v7231_v38 }
 0x168   : > { %5201 = vmatprep.subr.bf16.mxu1 %v7236_v24 }
 0x16b   : > { %5202 = vmatpush1.bf16.msra.mxu1 %v7234_v18 }
 0x16c   : > { %5203 = vmatprep.subr.bf16.mxu1 %v7239_v11 }
 0x16d   : > { %6836 = vmatmul.mubr.msk.bf16.gmra.mrb[28].mxu0 %vm801_vm1, %v6220_v43  ;;  %v7245_v43 = vld [vmem:[%s9574_s3 + $0x84] ss:$16 sps:$4 sm:$0xff]  }
 0x16e   : > { %6841 = vmatprep.mubr.msk.bf16.mxu0 %vm801_vm1, %v6270_v3 }
 0x16f   : > { %5204 = vmatpush1.bf16.msra.mxu1 %v7237_v31 }
 0x170   : > { %5205 = vmatprep.subr.bf16.mxu1 %v7242_v23 }
 0x173   : > { %5206 = vmatpush1.bf16.msra.mxu1 %v7240_v42 }
 0x174   : > { %5207 = vmatprep.subr.bf16.mxu1 %v7245_v43 }
 0x175   : > { %6842 = vmatmul.mubr.msk.bf16.vlgmr.msra.gmra.mrb[0].mxu0 %vm801_vm1, %v6271_v55  ;;  %v7246_v55 = vld [vmem:[%s9574_s3 + $0xa0] ss:$16 sps:$4 sm:$0xff]  }
 0x176   : > { %6845 = vmatprep.mubr.msk.bf16.mxu0 %vm801_vm1, %v9630_v17  ;;  %v7251_v17 = vld [vmem:[%s9574_s3 + $0xc4] ss:$16 sps:$4 sm:$0xff]  }
 0x177   : > { %5208 = vmatpush1.bf16.msra.mxu1 %v7243_v46 }
 0x178   : > { %5209 = vmatprep.subr.bf16.mxu1 %v7248_v12 }
 0x17b   : > { %5210 = vmatpush1.bf16.msra.mxu1 %v7246_v55 }
 0x17c   : > { %5211 = vmatprep.subr.bf16.mxu1 %v7251_v17 }
 0x17d   : > { %6846 = vmatmul.mubr.msk.bf16.gmra.mrb[4].mxu0 %vm801_vm1, %v9631_v27 }
 0x17e   : > { %6849 = vmatprep.mubr.msk.bf16.mxu0 %vm801_vm1, %v9632_v45  ;;  %v7249_v45 = vld [vmem:[%s9574_s3 + $0xc0] ss:$16 sps:$4 sm:$0xff]  }
 0x17f   : > { %5212 = vmatpush1.bf16.msra.mxu1 %v7249_v45 }
 0x185   : > { %6850 = vmatmul.mubr.msk.bf16.gmra.mrb[8].mxu0 %vm801_vm1, %v9633_v0 }
 0x186   : > { %6853 = vmatprep.mubr.msk.bf16.mxu0 %vm801_vm1, %v9634_v35  ;;  %v7254_v35 = vld [vmem:[%s9574_s3 + $0xe4] ss:$16 sps:$4 sm:$0xff]  }
 0x187   : > { %5213 = vmatprep.subr.bf16.mxu1 %v7254_v35 }
 0x188   : > { %5214 = vmatpush1.bf16.msra.mxu1 %v7252_v47 }
 0x18d   : > { %6854 = vmatmul.mubr.msk.bf16.gmra.mrb[12].mxu0 %vm801_vm1, %v9636_v53 }
 0x18e   : > { %6857 = vmatprep.mubr.msk.bf16.mxu0 %vm801_vm1, %v9639_v36  ;;  %v7257_v36 = vld [vmem:[%s9574_s3 + $0xc] ss:$16 sps:$4 sm:$0xff]  }
 0x18f   : > { %5240 = vmatprep.subr.bf16.mxu1 %v7257_v36 }
 0x195   : > { %6858 = vmatmul.mubr.msk.bf16.gmra.mrb[16].mxu0 %vm801_vm1, %v9642_v2  ;;  %v9305_v2 = vld [vmem:[%s9573_s2] ss:$0 sm:$0xff] }
 0x196   : > { %6861 = vmatprep.mubr.msk.bf16.mxu0 %vm801_vm1, %v9645_v1 }
 0x19d   : > { %6862 = vmatmul.mubr.msk.bf16.gmra.mrb[20].mxu0 %vm801_vm1, %v9648_v16 }
 0x19e   : > { %6865 = vmatprep.mubr.msk.bf16.mxu0 %vm801_vm1, %v9650_v54 }
 0x1a5   : > { %6866 = vmatmul.mubr.msk.bf16.gmra.mrb[24].mxu0 %vm801_vm1, %v9653_v19 }
 0x1a6   : > { %6869 = vmatprep.mubr.msk.bf16.mxu0 %vm801_vm1, %v6284_v26 }
 0x1ad   : > { %6870 = vmatmul.mubr.msk.bf16.gmra.mrb[28].mxu0 %vm801_vm1, %v6285_v58 }
 0x1b6   : > { %v9185_v33 = vpop.f32.mrb[0].mxu1 }
 0x1b7   : > { %v9187_v32 = vpop.f32.mrb[1].mxu1 }
 0x1b8   : > { %v9189_v22 = vpop.f32.mrb[2].mxu1 }
 0x1b9   : > { %v9191_v20 = vpop.f32.mrb[3].mxu1 }
 0x1be   : > { %v9193_v51 = vpop.f32.mrb[4].mxu1 }
 0x1bf   : > { %v9195_v44 = vpop.f32.mrb[5].mxu1 }
 0x1c0   : > { %v9197_v56 = vpop.f32.mrb[6].mxu1 }
 0x1c1   : > { %v9199_v4 = vpop.f32.mrb[7].mxu1 }
 0x1c6   : > { %v9201_v26 = vpop.f32.mrb[8].mxu1 }
 0x1c7   : > { %v9203_v21 = vpop.f32.mrb[9].mxu1 }
 0x1c8   : > { %v9205_v40 = vpop.f32.mrb[10].mxu1 }
 0x1c9   : > { %v9207_v58 = vpop.f32.mrb[11].mxu1 }
 0x1f6   : > { %v9209_v7 = vpop.f32.mrb[12].mxu1 }
 0x1f7   : > { %v9211_v34 = vpop.f32.mrb[13].mxu1 }
 0x1f8   : > { %v9213_v15 = vpop.f32.mrb[14].mxu1 }
 0x1f9   : > { %v9215_v60 = vpop.f32.mrb[15].mxu1 }
 0x1fe   : > { %v9223_v57 = vpop.f32.mrb[16].mxu1 }
 0x1ff   : > { %v9225_v6 = vpop.f32.mrb[17].mxu1 }
 0x200   : > { %v9227_v41 = vpop.f32.mrb[18].mxu1 }
 0x201   : > { %v9229_v59 = vpop.f32.mrb[19].mxu1 }
 0x206   : > { %v9240_v28 = vpop.f32.mrb[20].mxu1 }
 0x207   : > { %v9245_v10 = vpop.f32.mrb[21].mxu1 }
 0x208   : > { %v9247_v49 = vpop.f32.mrb[22].mxu1 }
 0x209   : > { %v9249_v52 = vpop.f32.mrb[23].mxu1 }
 0x20e   : > { %v9260_v3 = vpop.f32.mrb[24].mxu1 }
 0x20f   : > { %v9265_v13 = vpop.f32.mrb[25].mxu1 }
 0x210   : > { %v9267_v5 = vpop.f32.mrb[26].mxu1 }
 0x211   : > { %v9269_v62 = vpop.f32.mrb[27].mxu1 }
 0x216   : > { %v9280_v27 = vpop.f32.mrb[28].mxu1 }
 0x217   : > { %v9285_v0 = vpop.f32.mrb[29].mxu1 }
 0x218   : > { %v9291_v53 = vpop.f32.mrb[30].mxu1 }
 0x219   : > { %v9296_v9 = vpop.f32.mrb[31].mxu1 }
 0x248   : > { %v6843_v39 = vpop.f32.mrb[0].mxu0 }
 0x249   : > { %v6875_v29 = vadd.f32 %v6843_v39, %v9185_v33  ;;  %v4715_v48 = vpop.f32.mrb[1].mxu0 }
 0x24a   : > { %v6876_v37 = vadd.f32 %v4715_v48, %v9187_v32  ;;  %v6844_v1 = vpop.f32.mrb[2].mxu0 }
 0x24b   : > { %v6877_v25 = vadd.f32 %v6844_v1, %v9189_v22  ;;  %v4718_v30 = vpop.f32.mrb[3].mxu0  ;;  %v4883_v54 = vadd.f32 %v6875_v29, %v9305_v2 }
 0x24c   : > { %v4881_v16 = vadd.f32 %v6876_v37, %v9305_v2  ;;  %v6878_v14 = vadd.f32 %v4718_v30, %v9191_v20 }
 0x24d   : > { %v4884_v19 = vadd.f32 %v6877_v25, %v9305_v2  ;;  %v4915_v24 = vmax.f32 %v4883_v54, 0.0 }
 0x24e   : > { %v4882_v61 = vadd.f32 %v6878_v14, %v9305_v2  ;;  %v4913_v8 = vmax.f32 %v4881_v16, 0.0 }
 0x24f   : > { %v4916_v23 = vmax.f32 %v4884_v19, 0.0 }
 0x250   : > { %v4914_v33 = vmax.f32 %v4882_v61, 0.0  ;;  %v6847_v38 = vpop.f32.mrb[4].mxu0 }
 0x251   : > { %v6879_v50 = vadd.f32 %v6847_v38, %v9193_v51  ;;  %v4731_v32 = vpop.f32.mrb[5].mxu0 }
 0x252   : > { %v4945_v18 = vadd.f32 %v4914_v33, %v4913_v8  ;;  %v6880_v22 = vadd.f32 %v4731_v32, %v9195_v44  ;;  %v6848_v11 = vpop.f32.mrb[6].mxu0 }
 0x253   : > { %v6881_v31 = vadd.f32 %v6848_v11, %v9197_v56  ;;  %v4734_v20 = vpop.f32.mrb[7].mxu0  ;;  %v4887_v12 = vadd.f32 %v6879_v50, %v9305_v2 }
 0x254   : > { %v4946_v42 = vadd.f32 %v4945_v18, %v4915_v24  ;;  %v4885_v43 = vadd.f32 %v6880_v22, %v9305_v2  ;;  %v6882_v46 = vadd.f32 %v4734_v20, %v9199_v4 }
 0x255   : > { %v4888_v35 = vadd.f32 %v6881_v31, %v9305_v2  ;;  %v4919_v39 = vmax.f32 %v4887_v12, 0.0 }
 0x256   : > { %v4917_v55 = vmax.f32 %v4885_v43, 0.0  ;;  %v4947_v17 = vadd.f32 %v4946_v42, %v4916_v23  ;;  %v4886_v51 = vadd.f32 %v6882_v46, %v9305_v2 }
 0x257   : > { %v4920_v25 = vmax.f32 %v4888_v35, 0.0 }
 0x258   : > { %v4948_v45 = vadd.f32 %v4947_v17, %v4917_v55  ;;  %v4918_v44 = vmax.f32 %v4886_v51, 0.0  ;;  %v6851_v47 = vpop.f32.mrb[8].mxu0 }
 0x259   : > { %v6883_v56 = vadd.f32 %v6851_v47, %v9201_v26  ;;  %v4747_v36 = vpop.f32.mrb[9].mxu0 }
 0x25a   : > { %v4949_v29 = vadd.f32 %v4948_v45, %v4918_v44  ;;  %v6884_v48 = vadd.f32 %v4747_v36, %v9203_v21  ;;  %v6852_v37 = vpop.f32.mrb[10].mxu0 }
 0x25b   : > { %v6885_v4 = vadd.f32 %v6852_v37, %v9205_v40  ;;  %v4750_v1 = vpop.f32.mrb[11].mxu0  ;;  %v4891_v54 = vadd.f32 %v6883_v56, %v9305_v2 }
 0x25c   : > { %v4950_v30 = vadd.f32 %v4949_v29, %v4919_v39  ;;  %v4889_v16 = vadd.f32 %v6884_v48, %v9305_v2  ;;  %v6886_v14 = vadd.f32 %v4750_v1, %v9207_v58 }
 0x25d   : > { %v4892_v33 = vadd.f32 %v6885_v4, %v9305_v2  ;;  %v4923_v32 = vmax.f32 %v4891_v54, 0.0 }
 0x25e   : > { %v4921_v61 = vmax.f32 %v4889_v16, 0.0  ;;  %v4951_v8 = vadd.f32 %v4950_v30, %v4920_v25  ;;  %v4890_v26 = vadd.f32 %v6886_v14, %v9305_v2 }
 0x25f   : > { %v4924_v31 = vmax.f32 %v4892_v33, 0.0 }
 0x260   : > { %v4952_v19 = vadd.f32 %v4951_v8, %v4921_v61  ;;  %v4922_v21 = vmax.f32 %v4890_v26, 0.0  ;;  %v6855_v38 = vpop.f32.mrb[12].mxu0 }
 0x261   : > { %v6887_v40 = vadd.f32 %v6855_v38, %v9209_v7  ;;  %v4763_v50 = vpop.f32.mrb[13].mxu0 }
 0x262   : > { %v4953_v24 = vadd.f32 %v4952_v19, %v4922_v21  ;;  %v6888_v18 = vadd.f32 %v4763_v50, %v9211_v34  ;;  %v6856_v22 = vpop.f32.mrb[14].mxu0 }
 0x263   : > { %v6889_v58 = vadd.f32 %v6856_v22, %v9213_v15  ;;  %v4766_v11 = vpop.f32.mrb[15].mxu0  ;;  %v4895_v43 = vadd.f32 %v6887_v40, %v9305_v2 }
 0x264   : > { %v4954_v20 = vadd.f32 %v4953_v24, %v4923_v32  ;;  %v4893_v23 = vadd.f32 %v6888_v18, %v9305_v2  ;;  %v6890_v42 = vadd.f32 %v4766_v11, %v9215_v60 }
 0x265   : > { %v4896_v17 = vadd.f32 %v6889_v58, %v9305_v2  ;;  %v4927_v35 = vmax.f32 %v4895_v43, 0.0 }
 0x266   : > { %v4925_v46 = vmax.f32 %v4893_v23, 0.0  ;;  %v4955_v12 = vadd.f32 %v4954_v20, %v4924_v31  ;;  %v4894_v7 = vadd.f32 %v6890_v42, %v9305_v2 }
 0x267   : > { %v4928_v39 = vmax.f32 %v4896_v17, 0.0 }
 0x268   : > { %v4956_v55 = vadd.f32 %v4955_v12, %v4925_v46  ;;  %v4926_v34 = vmax.f32 %v4894_v7, 0.0  ;;  %v6859_v51 = vpop.f32.mrb[16].mxu0 }
 0x269   : > { %v6891_v15 = vadd.f32 %v6859_v51, %v9223_v57  ;;  %v4779_v45 = vpop.f32.mrb[17].mxu0 }
 0x26a   : > { %v4957_v44 = vadd.f32 %v4956_v55, %v4926_v34  ;;  %v6892_v47 = vadd.f32 %v4779_v45, %v9225_v6  ;;  %v6860_v56 = vpop.f32.mrb[18].mxu0 }
 0x26b   : > { %v6893_v60 = vadd.f32 %v6860_v56, %v9227_v41  ;;  %v4782_v36 = vpop.f32.mrb[19].mxu0  ;;  %v4899_v4 = vadd.f32 %v6891_v15, %v9305_v2 }
 0x26c   : > { %v4958_v29 = vadd.f32 %v4957_v44, %v4927_v35  ;;  %v4897_v48 = vadd.f32 %v6892_v47, %v9305_v2  ;;  %v6894_v37 = vadd.f32 %v4782_v36, %v9229_v59 }
 0x26d   : > { %v4900_v16 = vadd.f32 %v6893_v60, %v9305_v2  ;;  %v4931_v61 = vmax.f32 %v4899_v4, 0.0 }
 0x26e   : > { %v4929_v1 = vmax.f32 %v4897_v48, 0.0  ;;  %v4959_v25 = vadd.f32 %v4958_v29, %v4928_v39  ;;  %v4898_v57 = vadd.f32 %v6894_v37, %v9305_v2 }
 0x26f   : > { %v4932_v21 = vmax.f32 %v4900_v16, 0.0 }
 0x270   : > { %v4960_v30 = vadd.f32 %v4959_v25, %v4929_v1  ;;  %v4930_v6 = vmax.f32 %v4898_v57, 0.0  ;;  %v6863_v14 = vpop.f32.mrb[20].mxu0 }
 0x271   : > { %v6895_v41 = vadd.f32 %v6863_v14, %v9240_v28  ;;  %v4795_v54 = vpop.f32.mrb[21].mxu0 }
 0x272   : > { %v4961_v8 = vadd.f32 %v4960_v30, %v4930_v6  ;;  %v6896_v26 = vadd.f32 %v4795_v54, %v9245_v10  ;;  %v6864_v19 = vpop.f32.mrb[22].mxu0 }
 0x273   : > { %v6897_v59 = vadd.f32 %v6864_v19, %v9247_v49  ;;  %v4798_v33 = vpop.f32.mrb[23].mxu0  ;;  %v4903_v32 = vadd.f32 %v6895_v41, %v9305_v2 }
 0x274   : > { %v4962_v38 = vadd.f32 %v4961_v8, %v4931_v61  ;;  %v4901_v40 = vadd.f32 %v6896_v26, %v9305_v2  ;;  %v6898_v50 = vadd.f32 %v4798_v33, %v9249_v52 }
 0x275   : > { %v4904_v58 = vadd.f32 %v6897_v59, %v9305_v2  ;;  %v4935_v20 = vmax.f32 %v4903_v32, 0.0  ;;  %v7263_v32 = vld [vmem:[%s9574_s3 + $0x4c] ss:$16 sps:$4 sm:$0xff]  }
 0x276   : > { %v4933_v24 = vmax.f32 %v4901_v40, 0.0  ;;  %v4963_v18 = vadd.f32 %v4962_v38, %v4932_v21  ;;  %v4902_v28 = vadd.f32 %v6898_v50, %v9305_v2  ;;  %v7255_v38 = vld [vmem:[%s9574_s3 + $0x8] ss:$16 sps:$4 sm:$0xff]  }
 0x277   : > { %v4936_v12 = vmax.f32 %v4904_v58, 0.0  ;;  %v7258_v50 = vld [vmem:[%s9574_s3 + $0x28] ss:$16 sps:$4 sm:$0xff]   ;;  %v7272_v58 = vld [vmem:[%s9574_s3 + $0xac] ss:$16 sps:$4 sm:$0xff]  }
 0x278   : > { %v4964_v22 = vadd.f32 %v4963_v18, %v4933_v24  ;;  %v4934_v10 = vmax.f32 %v4902_v28, 0.0  ;;  %v6867_v11 = vpop.f32.mrb[24].mxu0  ;;  %v7261_v24 = vld [vmem:[%s9574_s3 + $0x48] ss:$16 sps:$4 sm:$0xff]   ;;  %v7266_v18 = vld [vmem:[%s9574_s3 + $0x6c] ss:$16 sps:$4 sm:$0xff]  }
 0x279   : > { %v6899_v49 = vadd.f32 %v6867_v11, %v9260_v3  ;;  %v4811_v31 = vpop.f32.mrb[25].mxu0  ;;  %v7269_v28 = vld [vmem:[%s9574_s3 + $0x8c] ss:$16 sps:$4 sm:$0xff]  }
 0x27a   : > { %v4965_v23 = vadd.f32 %v4964_v22, %v4934_v10  ;;  %v6900_v42 = vadd.f32 %v4811_v31, %v9265_v13  ;;  %v6868_v43 = vpop.f32.mrb[26].mxu0  ;;  %v7267_v22 = vld [vmem:[%s9574_s3 + $0x88] ss:$16 sps:$4 sm:$0xff]   ;;  %v7275_v11 = vld [vmem:[%s9574_s3 + $0xcc] ss:$16 sps:$4 sm:$0xff]  }
 0x27b   : > { %v6901_v52 = vadd.f32 %v6868_v43, %v9267_v5  ;;  %v4814_v46 = vpop.f32.mrb[27].mxu0  ;;  %v4907_v34 = vadd.f32 %v6899_v49, %v9305_v2  ;;  %v7270_v10 = vld [vmem:[%s9574_s3 + $0xa8] ss:$16 sps:$4 sm:$0xff]   ;;  %v7278_v31 = vld [vmem:[%s9574_s3 + $0xec] ss:$16 sps:$4 sm:$0xff]  }
 0x27c   : > { %v4966_v7 = vadd.f32 %v4965_v23, %v4935_v20  ;;  %v4905_v55 = vadd.f32 %v6900_v42, %v9305_v2  ;;  %v6902_v17 = vadd.f32 %v4814_v46, %v9269_v62  ;;  %v7273_v49 = vld [vmem:[%s9574_s3 + $0xc8] ss:$16 sps:$4 sm:$0xff]   ;;  %v7279_v23 = vld [vmem:[%s9576_s5 + $0x40] sm:$0xff]   ;;  %v7283_v46 = vld [vmem:[%s9576_s5 + $0x50] sm:$0xff]  }
 0x27d   : > { %v4908_v35 = vadd.f32 %v6901_v52, %v9305_v2  ;;  %v4939_v56 = vmax.f32 %v4907_v34, 0.0  ;;  %v7276_v20 = vld [vmem:[%s9574_s3 + $0xe8] ss:$16 sps:$4 sm:$0xff]   ;;  %v7280_v42 = vld [vmem:[%s9576_s5] sm:$0xff]  }
 0x27e   : > { %v4937_v51 = vmax.f32 %v4905_v55, 0.0  ;;  %v4967_v15 = vadd.f32 %v4966_v7, %v4936_v12  ;;  %v4906_v3 = vadd.f32 %v6902_v17, %v9305_v2  ;;  %v7281_v43 = vld [vmem:[%s9576_s5 + $0x48] sm:$0xff]   ;;  %v7284_v12 = vld [vmem:[%s9576_s5 + $0x10] sm:$0xff]   ;;  %v7285_v7 = vld [vmem:[%s9576_s5 + $0x58] sm:$0xff]  }
 0x27f   : > { %v4940_v48 = vmax.f32 %v4908_v35, 0.0  ;;  %v7282_v52 = vld [vmem:[%s9576_s5 + $0x8] sm:$0xff]   ;;  %v7286_v55 = vld [vmem:[%s9576_s5 + $0x18] sm:$0xff]   ;;  %v7287_v17 = vld [vmem:[%s9576_s5 + $0x60] sm:$0xff]  }
 0x280   : > { %v4968_v45 = vadd.f32 %v4967_v15, %v4937_v51  ;;  %v4938_v13 = vmax.f32 %v4906_v3, 0.0  ;;  %v6871_v44 = vpop.f32.mrb[28].mxu0  ;;  %v7288_v34 = vld [vmem:[%s9576_s5 + $0x20] sm:$0xff]   ;;  %v7289_v51 = vld [vmem:[%s9576_s5 + $0x68] sm:$0xff]   ;;  %v7291_v3 = vld [vmem:[%s9576_s5 + $0x70] sm:$0xff]  }
 0x281   : > { %v6903_v5 = vadd.f32 %v6871_v44, %v9280_v27  ;;  %v4827_v47 = vpop.f32.mrb[29].mxu0  ;;  %v7290_v15 = vld [vmem:[%s9576_s5 + $0x28] sm:$0xff]   ;;  %v7293_v35 = vld [vmem:[%s9576_s5 + $0x78] sm:$0xff]   ;;  %v7295_v44 = vld [vmem:[%s9576_s5 + $0xc0] sm:$0xff]  }
 0x282   : > { %v4969_v60 = vadd.f32 %v4968_v45, %v4938_v13  ;;  %v6904_v36 = vadd.f32 %v4827_v47, %v9285_v0  ;;  %v6872_v39 = vpop.f32.mrb[30].mxu0  ;;  %v7292_v45 = vld [vmem:[%s9576_s5 + $0x30] sm:$0xff]   ;;  %v7294_v13 = vld [vmem:[%s9576_s5 + $0x38] sm:$0xff]  }
 0x283   : > { %v6905_v62 = vadd.f32 %v6872_v39, %v9291_v53  ;;  %v4830_v29 = vpop.f32.mrb[31].mxu0  ;;  %v4911_v25 = vadd.f32 %v6903_v5, %v9305_v2  ;;  %v5179_v5 = vlaneseq }
 0x284   : > { %v4970_v37 = vadd.f32 %v4969_v60, %v4939_v56  ;;  %v4909_v4 = vadd.f32 %v6904_v36, %v9305_v2  ;;  %v6906_v1 = vadd.f32 %v4830_v29, %v9296_v9  ;;  %v5017_v60 = vld [vmem:[%s9575_s4] sm:$0xf] }
 0x285   : > { %v4912_v6 = vadd.f32 %v6905_v62, %v9305_v2  ;;  %v4943_v14 = vmax.f32 %v4911_v25, 0.0  ;;  %v5180_v47 = vshrl.u32 %v5179_v5, 7  ;;  %vm5316_vm8 = vcmp.lt.s32.totalorder %v5179_v5, 512 }
 0x286   : > { %v4941_v57 = vmax.f32 %v4909_v4, 0.0  ;;  %v4971_v30 = vadd.f32 %v4970_v37, %v4940_v48  ;;  %v4910_v27 = vadd.f32 %v6906_v1, %v9305_v2  ;;  %v7260_v2 = vld [vmem:[%s9574_s3 + $0x2c] ss:$16 sps:$4 sm:$0xff]  }
 0x287   : > { %v4944_v53 = vmax.f32 %v4912_v6, 0.0  ;;  %v5181_v56 = vsub.s32 0, %v5180_v47  ;;  %v5185_v36 = vsub.s32 1, %v5180_v47  ;;  %v7296_v6 = vld [vmem:[%s9576_s5 + $0x80] sm:$0xff]  }
 0x288   : > { %v4972_v16 = vadd.f32 %v4971_v30, %v4941_v57  ;;  %v4942_v0 = vmax.f32 %v4910_v27, 0.0 }
 0x289   : > { %v5182_v39 = vrot.slane %v5017_v60, %v5181_v56  ;;  %v5186_v62 = vrot.slane %v5017_v60, %v5185_v36 }
 0x28a   : > { %v4973_v41 = vadd.f32 %v4972_v16, %v4942_v0 }
 0x28c   : > { %v4974_v54 = vadd.f32 %v4973_v41, %v4943_v14  ;;  %v7297_v14 = vld [vmem:[%s9576_s5 + $0xc8] sm:$0xff]  }
 0x28d   : > { %v7298_v41 = vld [vmem:[%s9576_s5 + $0x88] sm:$0xff]  }
 0x28e   : > { %v4975_v61 = vadd.f32 %v4974_v54, %v4944_v53  ;;  %v7299_v53 = vld [vmem:[%s9576_s5 + $0xd0] sm:$0xff]  }
 0x28f   : > { %v7300_v54 = vld [vmem:[%s9576_s5 + $0x90] sm:$0xff]  }
 0x290   : > { %v4976_v8 = vrot.slane %v4975_v61, 4 }
 0x292   : > { %v4977_v26 = vadd.f32 %v4976_v8, %v4975_v61  ;;  %v7301_v61 = vld [vmem:[%s9576_s5 + $0xd8] sm:$0xff]  }
 0x293   : > { %v7302_v8 = vld [vmem:[%s9576_s5 + $0x98] sm:$0xff]  }
 0x294   : > { %v4978_v19 = vrot.slane %v4977_v26, 2 }
 0x296   : > { %v4979_v59 = vadd.f32 %v4978_v19, %v4977_v26  ;;  %v7303_v26 = vld [vmem:[%s9576_s5 + $0xe0] sm:$0xff]  }
 0x297   : > { %v7304_v19 = vld [vmem:[%s9576_s5 + $0xa0] sm:$0xff]  }
 0x298   : > { %v4980_v9 = vrot.slane %v4979_v59, 1 }
 0x29a   : > { %v4981_v33 = vadd.f32 %v4980_v9, %v4979_v59  ;;  %v7305_v59 = vld [vmem:[%s9576_s5 + $0xe8] sm:$0xff]   ;;  %v5189_v9 = vsub.s32 2, %v5180_v47 }
 0x29c   : > { %v4983_v21 = vmul.f32 0.00390625, %v4981_v33  ;;  %v7306_v33 = vld [vmem:[%s9576_s5 + $0xa8] sm:$0xff]  }
 0x29e   : > { %v4984_v40 = vpack.c.bf16 %v4983_v21, %v4983_v21  ;;  %v5193_v21 = vsub.s32 3, %v5180_v47 }
 0x2a0   : > { %5232 = vmatmul.mubr.bf16.vlgmr.msra.gmra.mrb[32].mxu1 %v4984_v40 }
 0x2a1   : > { %5241 = vmatpush1.bf16.msra.mxu1 %v7255_v38  ;;  %5272 = vmatprep.mubr.bf16.mxu1 %v7431_v63  ;;  %v7264_v63 = vld [vmem:[%s9574_s3 + $0x68] ss:$16 sps:$4 sm:$0xff]   ;;  %v7307_v38 = vld [vmem:[%s9576_s5 + $0xf0] sm:$0xff]  }
 0x2a2   : > { %5242 = vmatprep.subr.bf16.mxu1 %v7260_v2 }
 0x2a5   : > { %5243 = vmatpush1.bf16.msra.mxu1 %v7258_v50  ;;  %v5190_v50 = vrot.slane %v5017_v60, %v5189_v9 }
 0x2a6   : > { %5244 = vmatprep.subr.bf16.mxu1 %v7263_v32  ;;  %v5194_v32 = vrot.slane %v5017_v60, %v5193_v21 }
 0x2a9   : > { %5245 = vmatpush1.bf16.msra.mxu1 %v7261_v24  ;;  %v7308_v24 = vld [vmem:[%s9576_s5 + $0xb0] sm:$0xff]  }
 0x2aa   : > { %5246 = vmatprep.subr.bf16.mxu1 %v7266_v18  ;;  %v7309_v18 = vld [vmem:[%s9576_s5 + $0xf8] sm:$0xff]  }
 0x2ad   : > { %5247 = vmatpush1.bf16.msra.mxu1 %v7264_v63 }
 0x2ae   : > { %5248 = vmatprep.subr.bf16.mxu1 %v7269_v28 }
 0x2b1   : > { %5249 = vmatpush1.bf16.msra.mxu1 %v7267_v22 }
 0x2b2   : > { %5250 = vmatprep.subr.bf16.mxu1 %v7272_v58 }
 0x2b5   : > { %5251 = vmatpush1.bf16.msra.mxu1 %v7270_v10 }
 0x2b6   : > { %5252 = vmatprep.subr.bf16.mxu1 %v7275_v11 }
 0x2b9   : > { %5253 = vmatpush1.bf16.msra.mxu1 %v7273_v49  ;;  %v7310_v49 = vld [vmem:[%s9576_s5 + $0xb8] sm:$0xff]  }
 0x2ba   : > { %5254 = vmatprep.subr.bf16.mxu1 %v7278_v31 }
 0x2bd   : > { %5255 = vmatpush1.bf16.msra.mxu1 %v7276_v20 }
 0x2be   : > { %6523 = vmatprep.subr.bf16.mxu1 %v7279_v23 }
 0x2c0   : > { %5273 = vmatmul.mubr.bf16.vlgmr.msra.gmra.mrb[36].mxu1 %v4984_v40  ;;  %v7432_v40 = vmov 1966171168  }
 0x2c1   : > { %6524 = vmatpush3.bf16.msra.mxu1 %v7280_v42  ;;  %v5292_v2 = vunpack.c.l.s4 %v7432_v40 }
 0x2c2   : > { %6525 = vmatprep.subr.bf16.mxu1 %v7281_v43 }
 0x2c3   : > { %v5293_v63 = vunpack.c.0.s8 %v5292_v2 }
 0x2c5   : > { %6526 = vmatpush3.bf16.msra.mxu1 %v7282_v52  ;;  %v5296_v23 = vsub.s32 %v5293_v63, %v5180_v47 }
 0x2c6   : > { %6527 = vmatprep.subr.bf16.mxu1 %v7283_v46 }
 0x2c9   : > { %6528 = vmatpush3.bf16.msra.mxu1 %v7284_v12 }
 0x2ca   : > { %6529 = vmatprep.subr.bf16.mxu1 %v7285_v7 }
 0x2cd   : > { %6530 = vmatpush3.bf16.msra.mxu1 %v7286_v55 }
 0x2ce   : > { %6531 = vmatprep.subr.bf16.mxu1 %v7287_v17 }
 0x2d1   : > { %6532 = vmatpush3.bf16.msra.mxu1 %v7288_v34 }
 0x2d2   : > { %6533 = vmatprep.subr.bf16.mxu1 %v7289_v51 }
 0x2d5   : > { %6534 = vmatpush3.bf16.msra.mxu1 %v7290_v15 }
 0x2d6   : > { %6535 = vmatprep.subr.bf16.mxu1 %v7291_v3 }
 0x2d9   : > { %6536 = vmatpush3.bf16.msra.mxu1 %v7292_v45 }
 0x2da   : > { %6537 = vmatprep.subr.bf16.mxu1 %v7293_v35  ;;  %v5387_v35 = vld [vmem:[%s9577_s6] sm:$0x1] }
 0x2dd   : > { %6538 = vmatpush3.bf16.msra.mxu1 %v7294_v13 }
 0x2de   : > { %6545 = vmatprep.subr.bf16.mxu1 %v7295_v44 }
 0x373   : > { %v5233_v29 = vpop.f32.mrb[32].mxu1 }
 0x374   : > { %v5234_v48 = vadd.f32 %v5233_v29, %v5182_v39  ;;  %v5235_v37 = vpop.f32.mrb[33].mxu1 }
 0x375   : > { %v5236_v4 = vadd.f32 %v5235_v37, %v5186_v62  ;;  %v5237_v1 = vpop.f32.mrb[34].mxu1 }
 0x376   : > { %v5281_v25 = vmax.f32 %v5234_v48, 0.0  ;;  %v5238_v57 = vpop.f32.mrb[35].mxu1 }
 0x377   : > { %v5282_v30 = vmax.f32 %v5236_v4, 0.0 }
 0x378   : > { %v5319_v0 = vpack.c.bf16 %v5281_v25, %v5281_v25 }
 0x379   : > { %v5289_v27 = vcombine.low %v5281_v25, %v5282_v30  ;;  %v5320_v16 = vpack.c.bf16 %v5282_v30, %v5282_v30 }
 0x37b   : > { %5612 = vmatprep.mubr.bf16.mxu1 %v5320_v16  ;;  %v5297_v12 = vrot.slane %v5289_v27, %v5296_v23 }
 0x37c   : > { %5613 = vmatmul.mubr.bf16.vlgmr.msra.gmra.mrb[40].mxu1 %v5319_v0 }
 0x37d   : > { %6546 = vmatpush3.bf16.msra.mxu1 %v7296_v6 }
 0x37e   : > { %6547 = vmatprep.subr.bf16.mxu1 %v7297_v14 }
 0x381   : > { %6548 = vmatpush3.bf16.msra.mxu1 %v7298_v41 }
 0x382   : > { %6549 = vmatprep.subr.bf16.mxu1 %v7299_v53 }
 0x385   : > { %6550 = vmatpush3.bf16.msra.mxu1 %v7300_v54 }
 0x386   : > { %6551 = vmatprep.subr.bf16.mxu1 %v7301_v61 }
 0x389   : > { %6552 = vmatpush3.bf16.msra.mxu1 %v7302_v8 }
 0x38a   : > { %6553 = vmatprep.subr.bf16.mxu1 %v7303_v26 }
 0x38d   : > { %6554 = vmatpush3.bf16.msra.mxu1 %v7304_v19 }
 0x38e   : > { %6555 = vmatprep.subr.bf16.mxu1 %v7305_v59 }
 0x391   : > { %6556 = vmatpush3.bf16.msra.mxu1 %v7306_v33 }
 0x392   : > { %6557 = vmatprep.subr.bf16.mxu1 %v7307_v38 }
 0x393   : > { %v5274_v28 = vpop.f32.mrb[36].mxu1 }
 0x394   : > { %v5275_v22 = vadd.f32 %v5274_v28, %v5190_v50  ;;  %v5276_v58 = vpop.f32.mrb[37].mxu1 }
 0x395   : > { %v5277_v10 = vadd.f32 %v5276_v58, %v5194_v32  ;;  %v5278_v11 = vpop.f32.mrb[38].mxu1  ;;  %6558 = vmatpush3.bf16.msra.mxu1 %v7308_v24 }
 0x396   : > { %v5283_v31 = vmax.f32 %v5275_v22, 0.0  ;;  %v5279_v20 = vpop.f32.mrb[39].mxu1  ;;  %6559 = vmatprep.subr.bf16.mxu1 %v7309_v18 }
 0x397   : > { %v5284_v42 = vmax.f32 %v5277_v10, 0.0 }
 0x398   : > { %v5321_v46 = vpack.c.bf16 %v5283_v31, %v5283_v31 }
 0x399   : > { %v5290_v43 = vcombine.low %v5283_v31, %v5284_v42  ;;  %v5322_v52 = vpack.c.bf16 %v5284_v42, %v5284_v42  ;;  %6560 = vmatpush3.bf16.msra.mxu1 %v7310_v49 }
 0x39b   : > { %v5304_v7 = vrot.slane %v5290_v43, %v5296_v23  ;;  %5652 = vmatprep.mubr.bf16.mxu1 %v5322_v52 }
 0x39c   : > { %5653 = vmatmul.mubr.bf16.vlgmr.msra.gmra.mrb[44].mxu1 %v5321_v46 }
 0x39d   : > { %v5305_v55 = vcombine.low %v5297_v12, %v5304_v7 }
 0x39f   : > { %v5312_v17 = vrot.slane %v5305_v55, %v5296_v23 }
 0x3a1   : > { %5318 = vst.msk [vmem:[%s313_s20] sm:$0xf] %vm5316_vm8, %v5312_v17  ;;  %s7373_s20 = scalar_lea.vmem %s7372_s19, 32 }
 0x3a2   : > { %p7375_p1 = scmp.lt.s32.totalorder %s7373_s20, %s7367_s9 }
 0x3a4   : > { %p7376_p2 = por %p7375_p1, %p7374_p0 }
 0x3a6   : > { %p7377_p3 = pnand %p7376_p2, %p7370_p13 }
 0x44f   : > { %v6539_v34 = vpop.f32.mrb[40].mxu1 }
 0x450   : > { %v6540_v51 = vpop.f32.mrb[41].mxu1 }
 0x451   : > { %v6541_v15 = vadd.f32 %v6540_v51, %v6539_v34  ;;  %v6542_v3 = vpop.f32.mrb[42].mxu1 }
 0x452   : > { %v6543_v45 = vpop.f32.mrb[43].mxu1 }
 0x453   : > { %v5615_v47 = vadd.f32 %v6541_v15, %v5387_v35 }
 0x46f   : > { %v6561_v13 = vpop.f32.mrb[44].mxu1 }
 0x470   : > { %v6562_v44 = vpop.f32.mrb[45].mxu1 }
 0x471   : > { %v6563_v5 = vadd.f32 %v6562_v44, %v6561_v13  ;;  %v6564_v56 = vpop.f32.mrb[46].mxu1 }
 0x472   : > { %v6565_v60 = vpop.f32.mrb[47].mxu1 }
 0x473   : > { %v5655_v36 = vadd.f32 %v6563_v5, %v5615_v47 }
 0x475   : > { %5660 = vst [vmem:[%s304_s25] sm:$0x1] %v5655_v36 }
 0x476   : > { %7380 = shalt.err (!%p7377_p3)
}
 0x477   : > { %s7381_s21 = scalar_lea.hbm %s9529_s17, 16  ;;  %s7385_s24 = scalar_lea.hbm %s9579_s8, 32 }
 0x478   : > { %p7382_p4 = scmp.ne.s32.totalorder %s9529_s17, %s7381_s21  ;;  %p7386_p9 = scmp.lt.u32.totalorder %s9529_s17, %s9579_s8 }
 0x479   : > { %p7387_p10 = scmp.lt.u32.totalorder %s7385_s24, %s7381_s21  ;;  %p7389_p12 = scmp.lt.u32.totalorder %s7381_s21, %s9529_s17 }
 0x47a   : > { %p7383_p7 = pnand %p7382_p4, %p7517_p5 }
 0x47b   : > { %p7388_p11 = por %p7387_p10, %p7386_p9 }
 0x47c   : > { %p7384_p8 = pneg %p7383_p7 }
 0x47d   : > { %p7390_p13 = por %p7389_p12, %p7388_p11 }
 0x47f   : > { %p7391_p0 = pnand %p7390_p13, %p7384_p8 }
 0x481   : > { %7394 = shalt.err (!%p7391_p0)
}
 0x482   : > { %7142 = dma.vmem_to_hbm [thread:$0]  (%p7517_p5), %s9531_s26, 16, %s9529_s17, %s5666_s10  }
 0x483 PF: > { %p7148_p1 = scmp.ge.s32.totalorder %s7429_s30, 2  ;;  %s5700_s13 = sand.u32 1, %s7417_s27  }
 0x484   : > { %s5701_s9 = scalar_lea.sflag [#allocation3], %s5700_s13 }
 0x485   : > { %p7145_p2 = pnand %p7148_p1, %p7521_p6 }
 0x487   : > { %7412 = dma.done.wait (!%p7145_p2), %s5701_s9, 16  }
 0x488   : > { %7414 = vsyncadd (!%p7145_p2), %s5701_s9, 4294967280  ;;  %p19_p3 = scmp.ge.s32.totalorder %s7504_s11, 4   ;;  %s9654_s27 = smov %s7421_s28 }
 0x489   : > { %s9655_s28 = smov %s7425_s29  ;;  %s9656_s29 = smov %s7515_s14 }
 0x48a   : > { %s9657_s30 = smov %s7504_s11  ;;  %21 = sbr.rel (!%p19_p3) target bundleno = 3 (0x3), region = 105 }
 0x491   :  { %5705 = vsyncpa [#allocation3], 1 }
 0x492   :  { %5707 = vsyncpa [#allocation3 + $0x1], 1 }

</bundles_post_ra>
